<compile_context>
chip_gen: v5e
topology: v5e:2x2
jax: 0.10.0
libtpu: 0.0.40
codegen_flags: <defaults>
</compile_context>

<pallas_src>
import functools

import jax
import jax.numpy as jnp
import numpy as np
from jax.experimental import pallas as pl
from jax.experimental.pallas import tpu as pltpu


# ---------------------------------------------------------------------------
# Parameter folding (pure JAX, runs once in the wrapper)
# ---------------------------------------------------------------------------

# For output phase a (rows) / b (cols) and collapsed tap dh / dw, the original
# 3x3 kernel rows/cols that hit the same original-resolution pixel:
#   phase 0: {0} and {1,2}   (reads original rows i-1, i)
#   phase 1: {0,1} and {2}   (reads original rows i,   i+1)
_PHASE_TAP_SETS = (((0,), (1, 2)), ((0, 1), (2,)))


def _fold_bias_bn(conv_bias, bn_gamma, bn_beta, bn_mean, bn_var, eps):
    """Fold conv bias + BatchNorm into per-channel scale/shift (f32)."""
    # TODO(synk): PyTorch BatchNorm2d in .train() mode would use batch statistics;
    # this uses the provided running stats, i.e. eval/inference semantics.
    scale = (bn_gamma / jnp.sqrt(bn_var + eps)).astype(jnp.float32)
    shift = ((conv_bias - bn_mean) * scale + bn_beta).astype(jnp.float32)
    return scale, shift


def _fold_phase_weights(w_hwio, scale):
    """conv3x3(nearest_up2(x)) == 4 phase-wise 2x2 convs on the ORIGINAL x.

    Returns (4, 2, 2, Cin, Cout) f32 [phase=2a+b, dh, dw, cin, cout] with the BN
    scale already folded into the weights.
    """
    w = w_hwio.astype(jnp.float32) * scale.astype(jnp.float32)   # scale over cout
    cin, cout = w.shape[2], w.shape[3]
    phases = []
    for a in range(2):
        for b in range(2):
            taps = []
            for dh in range(2):
                for dw in range(2):
                    acc = jnp.zeros((cin, cout), jnp.float32)
                    for kh in _PHASE_TAP_SETS[a][dh]:
                        for kw in _PHASE_TAP_SETS[b][dw]:
                            acc = acc + w[kh, kw]
                    taps.append(acc)
            phases.append(jnp.stack(taps, 0).reshape(2, 2, cin, cout))
    return jnp.stack(phases, 0)


def _build_fused_weights(w_phase, pair_fuse):
    """Lay the folded phase weights out for the fused matmul(s).

    Full fusion (pair_fuse=False, 256-wide MXU):
        one weight (1, 9*Cin, 4*Cout); rows ordered (t_h, t_w, cin) over the 9
        original-resolution taps, columns ordered (a, b, cout); taps a phase does
        not use are zero-padded.
    Pair fusion (pair_fuse=True, 128-wide MXU):
        two weights (2, 6*Cin, 2*Cout), one per row phase a; rows (dh, t_w, cin),
        columns (b, cout).
    Also returns, per weight, the ordered tuple of (t_h, t_w) taps to concatenate.
    """
    cin, cout = w_phase.shape[-2], w_phase.shape[-1]
    if not pair_fuse:
        wf = jnp.zeros((3, 3, cin, 2, 2, cout), jnp.float32)
        for a in range(2):
            for b in range(2):
                for dh in range(2):
                    for dw in range(2):
                        wf = wf.at[a + dh, b + dw, :, a, b, :].set(
                            w_phase[2 * a + b, dh, dw])
        w_fused = wf.reshape(1, 9 * cin, 4 * cout)
        groups = (tuple((th_, tw_) for th_ in range(3) for tw_ in range(3)),)
    else:
        mats, groups = [], []
        for a in range(2):
            wg = jnp.zeros((2, 3, cin, 2, cout), jnp.float32)
            for b in range(2):
                for dh in range(2):
                    for dw in range(2):
                        wg = wg.at[dh, b + dw, :, b, :].set(
                            w_phase[2 * a + b, dh, dw])
            mats.append(wg.reshape(6 * cin, 2 * cout))
            groups.append(tuple((a + dh, tw_) for dh in range(2) for tw_ in range(3)))
        w_fused = jnp.stack(mats, 0)
        groups = tuple(groups)
    return w_fused, groups


def _prepare_params(w_hwio, conv_bias, bn_gamma, bn_beta, bn_mean, bn_var, eps,
                    pair_fuse):
    """Returns (bf16 fused weights, static tap groups, (1, 2*Cout) f32 shift)."""
    cout = w_hwio.shape[-1]
    scale, shift = _fold_bias_bn(conv_bias, bn_gamma, bn_beta, bn_mean, bn_var, eps)
    w_phase = _fold_phase_weights(w_hwio, scale)           # BN scale folded in
    w_fused, groups = _build_fused_weights(w_phase, pair_fuse)
    shift2 = jnp.tile(shift, 2).reshape(1, 2 * cout)       # column order (b, cout)
    return w_fused.astype(jnp.bfloat16), groups, shift2


def _mxu_is_128_wide():
    """True for TPU generations with a 128-wide MXU (v2..v5) -> pair fusion.
    v6e / v7x (256-wide MXU) -> full 9-tap fusion."""
    try:
        kind = jax.devices()[0].device_kind.lower()
    except Exception:
        return False
    return any(t in kind for t in ("v2", "v3", "v4", "v5"))


# ---------------------------------------------------------------------------
# Pallas kernel
# ---------------------------------------------------------------------------

def _up_conv_kernel(x_ref, w_ref, shift_ref, o_ref, *, tap_groups):
    """One (batch, row-tile) step of the fused upsample+conv3x3+BN+ReLU.

    x_ref:     (1, H+2, W+2, Cin)   bf16 zero-padded ORIGINAL-resolution image;
                                    block index constant along the row axis, so it
                                    stays resident in VMEM per image.
    w_ref:     (G, K, Nout)         bf16 fused weights (G=1: K=9*Cin, Nout=4*Cout;
                                    G=2: K=6*Cin, Nout=2*Cout), BN scale folded in.
    shift_ref: (1, 2*Cout)          f32 folded conv-bias+BN shift, (b, cout) order.
    o_ref:     (1, TH, 2, W, 2*Cout) output; row phase interleaved in-kernel so
                                    NHWC is a free reshape in the wrapper; lane
                                    width 2*Cout -> unmasked stores.
    """
    r = pl.program_id(1)
    cin = x_ref.shape[3]
    wdim = x_ref.shape[2] - 2            # original-resolution width W
    th = o_ref.shape[1]                  # row-tile height TH (original resolution)
    thw = th * wdim
    two_cout = o_ref.shape[4]

    row0 = pl.multiple_of(r * th, th)
    win = x_ref[0, pl.ds(row0, th + 2), :, :]                # (TH+2, W+2, Cin)

    # The 9 shifted original-resolution taps, each built ONCE (and reused by every
    # phase group that needs it), flattened to (TH*W, Cin).
    taps = {(t_h, t_w): win[t_h:t_h + th, t_w:t_w + wdim, :].reshape(thw, cin)
            for t_h in range(3) for t_w in range(3)}

    # One fat matmul per group: G=1 -> (M, 9*Cin) x (9*Cin, 4*Cout) fills a
    # 256-wide MXU; G=2 -> two (M, 6*Cin) x (6*Cin, 2*Cout) for 128-wide MXUs.
    halves = []                                              # row phase a = 0 / 1
    for g, group in enumerate(tap_groups):
        patch = jnp.concatenate([taps[t] for t in group], axis=-1)   # (M, K) bf16
        y = jnp.dot(patch, w_ref[g], preferred_element_type=jnp.float32)
        if len(tap_groups) == 1:
            halves = [y[:, :two_cout], y[:, two_cout:]]      # split row phases
        else:
            halves.append(y)

    shift = shift_ref[0]                                     # (2*Cout,) f32
    for a in range(2):                                       # interleave row phases
        o_ref[0, :, a, :, :] = jnp.maximum(
            halves[a].reshape(th, wdim, two_cout) + shift, 0.0).astype(o_ref.dtype)


# ---------------------------------------------------------------------------
# Wrappers
# ---------------------------------------------------------------------------

def up_conv_forward_nhwc(x_nhwc, w_hwio, conv_bias, bn_gamma, bn_beta, bn_mean,
                         bn_var, eps=1e-5, tile_h=None, pair_fuse=None,
                         out_dtype=jnp.float32):
    """NHWC entry point: (N, H, W, Cin) -> (N, 2H, 2W, Cout). Use this directly
    when the surrounding graph is channels-last to avoid NCHW<->NHWC transposes."""
    N, H, W, Cin = x_nhwc.shape
    Cout = w_hwio.shape[-1]
    if pair_fuse is None:
        pair_fuse = _mxu_is_128_wide()
    if tile_h is None or H % tile_h != 0:
        tile_h = H                       # one row tile per image kills step overhead
    R = H // tile_h

    # bf16 activations for the MXU; +1 halo pad of the ORIGINAL-resolution image
    # only (no 4x-sized upsampled intermediate in HBM).
    xp = jnp.pad(x_nhwc.astype(jnp.bfloat16), ((0, 0), (1, 1), (1, 1), (0, 0)))

    w_fused, groups, shift2 = _prepare_params(
        w_hwio, conv_bias, bn_gamma, bn_beta, bn_mean, bn_var, eps, pair_fuse)

    # Whole padded image stays resident in VMEM across the row axis; guard it
    # against the smallest (v7x, 64 MiB) VMEM.
    in_bytes = (H + 2) * (W + 2) * Cin * 2
    assert in_bytes <= 32 * 1024 * 1024, (
        "resident padded input exceeds the VMEM budget; "
        "TODO(synk): switch to a manually DMA'd row-tile + 2-row-halo pipeline")

    # VMEM budget computed from the actual block / temporary sizes (2x margin),
    # capped at v7x's 64 MiB physical VMEM.
    M = tile_h * W
    K = w_fused.shape[1]
    out_itemsize = np.dtype(out_dtype).itemsize
    block_bytes = 2 * (in_bytes + w_fused.size * 2 + shift2.size * 4
                       + tile_h * 2 * W * 2 * Cout * out_itemsize)
    temp_bytes = (9 * M * Cin * 2            # taps
                  + M * K * 2                # im2col patch
                  + 2 * M * 2 * Cout * 4 * 2)  # matmul results + epilogue (f32)
    vmem_limit = int(min(max(2 * (block_bytes + temp_bytes), 16 << 20), 64 << 20))

    out = pl.pallas_call(
        functools.partial(_up_conv_kernel, tap_groups=groups),
        out_shape=jax.ShapeDtypeStruct((N, H, 2, W, 2 * Cout), out_dtype),
        grid_spec=pltpu.PrefetchScalarGridSpec(
            num_scalar_prefetch=0,
            grid=(N, R),
            in_specs=[
                pl.BlockSpec((1, H + 2, W + 2, Cin), lambda n, r: (n, 0, 0, 0)),
                pl.BlockSpec(w_fused.shape, lambda n, r: (0, 0, 0)),
                pl.BlockSpec((1, 2 * Cout), lambda n, r: (0, 0)),
            ],
            out_specs=pl.BlockSpec((1, tile_h, 2, W, 2 * Cout),
                                   lambda n, r: (n, r, 0, 0, 0)),
        ),
        compiler_params=pltpu.CompilerParams(
            # Row axis must stay "arbitrary": the input block is resident across
            # it, so a megacore split on r would re-fetch the whole image per core.
            dimension_semantics=("parallel", "arbitrary"),
            vmem_limit_bytes=vmem_limit),
    )(xp, w_fused, shift2)

    # Phase axes were interleaved in-kernel -> NHWC is a free (contiguous) reshape.
    return out.reshape(N, 2 * H, 2 * W, Cout)


def up_conv_forward(x_nchw, w_hwio, conv_bias, bn_gamma, bn_beta, bn_mean, bn_var,
                    eps=1e-5, tile_h=None, pair_fuse=None):
    """NCHW entry point matching the PyTorch module: (N, Cin, H, W) -> (N, Cout, 2H, 2W)."""
    x_nhwc = jnp.transpose(x_nchw, (0, 2, 3, 1))
    y = up_conv_forward_nhwc(x_nhwc, w_hwio, conv_bias, bn_gamma, bn_beta,
                             bn_mean, bn_var, eps=eps, tile_h=tile_h,
                             pair_fuse=pair_fuse, out_dtype=jnp.float32)
    return jnp.transpose(y, (0, 3, 1, 2)).astype(x_nchw.dtype)


# ---------------------------------------------------------------------------
# References for correctness checking
# ---------------------------------------------------------------------------

def _reference_forward_f32(x_nchw, w_hwio, conv_bias, bn_gamma, bn_beta,
                           bn_mean, bn_var, eps=1e-5):
    """Pure-JAX f32 reference of the module semantics (upsample->conv->BN->ReLU)."""
    x = jnp.transpose(x_nchw, (0, 2, 3, 1)).astype(jnp.float32)
    x = jnp.repeat(jnp.repeat(x, 2, axis=1), 2, axis=2)
    y = jax.lax.conv_general_dilated(
        x, w_hwio.astype(jnp.float32), window_strides=(1, 1),
        padding=((1, 1), (1, 1)), dimension_numbers=("NHWC", "HWIO", "NHWC"))
    y = y + conv_bias
    y = (y - bn_mean) / jnp.sqrt(bn_var + eps) * bn_gamma + bn_beta
    y = jnp.maximum(y, 0.0)
    return jnp.transpose(y, (0, 3, 1, 2))


def _reference_forward_matched_precision(x_nchw, w_fused_bf16, tap_groups, shift2):
    """Plain-JAX reference using the SAME bf16 fused weights / patch formulation
    as the kernel (f32 accumulation and epilogue), for a tight tolerance check."""
    N, Cin, H, W = x_nchw.shape
    two_cout = shift2.shape[-1]
    cout = two_cout // 2
    x = jnp.transpose(x_nchw, (0, 2, 3, 1)).astype(jnp.bfloat16)
    xp = jnp.pad(x, ((0, 0), (1, 1), (1, 1), (0, 0)))
    taps = {(th_, tw_): xp[:, th_:th_ + H, tw_:tw_ + W, :].reshape(N, H * W, Cin)
            for th_ in range(3) for tw_ in range(3)}
    halves = []
    for g, group in enumerate(tap_groups):
        patch = jnp.concatenate([taps[t] for t in group], axis=-1)
        y = jnp.einsum('nmk,ko->nmo', patch, w_fused_bf16[g],
                       preferred_element_type=jnp.float32)
        if len(tap_groups) == 1:
            halves = [y[..., :two_cout], y[..., two_cout:]]
        else:
            halves.append(y)
    out = jnp.stack([jnp.maximum(h.reshape(N, H, W, two_cout) + shift2[0], 0.0)
                     for h in halves], axis=2)               # (N, H, 2, W, 2*Cout)
    out = out.reshape(N, 2 * H, 2 * W, cout)
    return jnp.transpose(out, (0, 3, 1, 2))


if __name__ == "__main__":
    key = jax.random.PRNGKey(0)
    k_x, k_w, k_b, k_g, k_be, k_m, k_v = jax.random.split(key, 7)

    # Shapes implied by shallow_fea_fusion.upsam = up_conv(ch_in=128, ch_out=64).
    N, ch_in, ch_out, H, W = 2, 128, 64, 16, 16

    x = jax.random.normal(k_x, (N, ch_in, H, W), dtype=jnp.float32)

    # Deterministic parameter init (shapes from nn.Conv2d / nn.BatchNorm2d).
    w_hwio = jax.random.normal(k_w, (3, 3, ch_in, ch_out), dtype=jnp.float32) * 0.05
    conv_bias = jax.random.normal(k_b, (ch_out,), dtype=jnp.float32) * 0.1
    bn_gamma = jax.random.uniform(k_g, (ch_out,), minval=0.5, maxval=1.5)
    bn_beta = jax.random.normal(k_be, (ch_out,), dtype=jnp.float32) * 0.1
    bn_mean = jax.random.normal(k_m, (ch_out,), dtype=jnp.float32) * 0.1
    bn_var = jax.random.uniform(k_v, (ch_out,), minval=0.5, maxval=1.5)

    ref_f32 = _reference_forward_f32(x, w_hwio, conv_bias, bn_gamma, bn_beta,
                                     bn_mean, bn_var)

    # Validate BOTH MXU-width variants (full 9-tap fusion for 256-wide v6e/v7x,
    # pair fusion for 128-wide v2..v5 chips); both are correct on any TPU.
    for pair_fuse in (False, True):
        out = up_conv_forward(x, w_hwio, conv_bias, bn_gamma, bn_beta,
                              bn_mean, bn_var, pair_fuse=pair_fuse)
        out = jax.block_until_ready(out)
        assert out.shape == (N, ch_out, 2 * H, 2 * W), out.shape

        # 1) Tight check against a plain-JAX reference at MATCHED precision
        #    (identical bf16 fused weights / bf16 activations, f32 accumulation).
        w_fused, groups, shift2 = _prepare_params(
            w_hwio, conv_bias, bn_gamma, bn_beta, bn_mean, bn_var, 1e-5, pair_fuse)
        ref_match = _reference_forward_matched_precision(x, w_fused, groups, shift2)
        err_m = jnp.max(jnp.abs(out - ref_match))
        assert jnp.allclose(out, ref_match, atol=3e-3, rtol=3e-3), (
            f"pair_fuse={pair_fuse}: mismatch vs matched-precision ref: {err_m}")

        # 2) Sanity check against exact f32 module semantics; tolerance reflects
        #    bf16 MXU inputs (accumulation and epilogue are f32).
        err_f = jnp.max(jnp.abs(out - ref_f32))
        assert jnp.allclose(out, ref_f32, atol=1e-1, rtol=1e-1), (
            f"pair_fuse={pair_fuse}: mismatch vs f32 ref: {err_f}")

    # Device-selected default path (same kernel as one of the two above).
    _ = jax.block_until_ready(up_conv_forward(
        x, w_hwio, conv_bias, bn_gamma, bn_beta, bn_mean, bn_var))

    print("KERNEL_OK")
</pallas_src>

<mosaic_0001>
module attributes {stable_mosaic.version = 11 : i64} {
  func.func @_up_conv_kernel(%arg0: i32, %arg1: i32, %arg2: memref<1x18x18x128xbf16, #tpu.memory_space<vmem>>, %arg3: memref<1x1152x256xbf16, #tpu.memory_space<vmem>>, %arg4: memref<1x128xf32, #tpu.memory_space<vmem>>, %arg5: memref<1x16x2x16x128xf32, #tpu.memory_space<vmem>>) attributes {dimension_semantics = [#tpu.dimension_semantics<parallel>, #tpu.dimension_semantics<arbitrary>], iteration_bounds = array<i64: 2, 1>, scalar_prefetch = 0 : i64, scratch_operands = 0 : i64, tpu.core_type = #tpu.core_type<tc>, window_params = [{transform_indices = @transform_0, window_bounds = array<i64: 1, 18, 18, 128>}, {pipeline_mode = #tpu.pipeline_mode<synchronous>, transform_indices = @transform_1, window_bounds = array<i64: 1, 1152, 256>}, {pipeline_mode = #tpu.pipeline_mode<synchronous>, transform_indices = @transform_2, window_bounds = array<i64: 1, 128>}, {transform_indices = @transform_3, window_bounds = array<i64: 1, 16, 2, 16, 128>}]} {
    %c16_i32 = arith.constant 16 : i32
    %0 = arith.muli %arg1, %c16_i32 : i32
    %1 = tpu.assume_multiple %0, 16 : i32
    %c0 = arith.constant 0 : index
    %2 = arith.index_cast %1 : i32 to index
    %c0_0 = arith.constant 0 : index
    %c0_1 = arith.constant 0 : index
    %3 = vector.load %arg2[%c0, %2, %c0_0, %c0_1] : memref<1x18x18x128xbf16, #tpu.memory_space<vmem>>, vector<1x18x18x128xbf16>
    %4 = vector.shape_cast %3 : vector<1x18x18x128xbf16> to vector<18x18x128xbf16>
    %5 = vector.extract_strided_slice %4 {offsets = [0, 0, 0], sizes = [16, 16, 128], strides = [1, 1, 1]} : vector<18x18x128xbf16> to vector<16x16x128xbf16>
    %6 = vector.shape_cast %5 : vector<16x16x128xbf16> to vector<256x128xbf16>
    %7 = vector.extract_strided_slice %4 {offsets = [0, 1, 0], sizes = [16, 16, 128], strides = [1, 1, 1]} : vector<18x18x128xbf16> to vector<16x16x128xbf16>
    %8 = vector.shape_cast %7 : vector<16x16x128xbf16> to vector<256x128xbf16>
    %9 = vector.extract_strided_slice %4 {offsets = [0, 2, 0], sizes = [16, 16, 128], strides = [1, 1, 1]} : vector<18x18x128xbf16> to vector<16x16x128xbf16>
    %10 = vector.shape_cast %9 : vector<16x16x128xbf16> to vector<256x128xbf16>
    %11 = vector.extract_strided_slice %4 {offsets = [1, 0, 0], sizes = [16, 16, 128], strides = [1, 1, 1]} : vector<18x18x128xbf16> to vector<16x16x128xbf16>
    %12 = vector.shape_cast %11 : vector<16x16x128xbf16> to vector<256x128xbf16>
    %13 = vector.extract_strided_slice %4 {offsets = [1, 1, 0], sizes = [16, 16, 128], strides = [1, 1, 1]} : vector<18x18x128xbf16> to vector<16x16x128xbf16>
    %14 = vector.shape_cast %13 : vector<16x16x128xbf16> to vector<256x128xbf16>
    %15 = vector.extract_strided_slice %4 {offsets = [1, 2, 0], sizes = [16, 16, 128], strides = [1, 1, 1]} : vector<18x18x128xbf16> to vector<16x16x128xbf16>
    %16 = vector.shape_cast %15 : vector<16x16x128xbf16> to vector<256x128xbf16>
    %17 = vector.extract_strided_slice %4 {offsets = [2, 0, 0], sizes = [16, 16, 128], strides = [1, 1, 1]} : vector<18x18x128xbf16> to vector<16x16x128xbf16>
    %18 = vector.shape_cast %17 : vector<16x16x128xbf16> to vector<256x128xbf16>
    %19 = vector.extract_strided_slice %4 {offsets = [2, 1, 0], sizes = [16, 16, 128], strides = [1, 1, 1]} : vector<18x18x128xbf16> to vector<16x16x128xbf16>
    %20 = vector.shape_cast %19 : vector<16x16x128xbf16> to vector<256x128xbf16>
    %21 = vector.extract_strided_slice %4 {offsets = [2, 2, 0], sizes = [16, 16, 128], strides = [1, 1, 1]} : vector<18x18x128xbf16> to vector<16x16x128xbf16>
    %22 = vector.shape_cast %21 : vector<16x16x128xbf16> to vector<256x128xbf16>
    %23 = tpu.concatenate %6, %8, %10, %12, %14, %16, %18, %20, %22 in 1 : vector<256x128xbf16>, vector<256x128xbf16>, vector<256x128xbf16>, vector<256x128xbf16>, vector<256x128xbf16>, vector<256x128xbf16>, vector<256x128xbf16>, vector<256x128xbf16>, vector<256x128xbf16> -> vector<256x1152xbf16>
    %c0_2 = arith.constant 0 : index
    %c0_3 = arith.constant 0 : index
    %c0_4 = arith.constant 0 : index
    %24 = vector.load %arg3[%c0_2, %c0_3, %c0_4] : memref<1x1152x256xbf16, #tpu.memory_space<vmem>>, vector<1x1152x256xbf16>
    %25 = vector.shape_cast %24 : vector<1x1152x256xbf16> to vector<1152x256xbf16>
    %cst = arith.constant dense<0.000000e+00> : vector<256x256xf32>
    %26 = tpu.matmul %23, %25, %cst {dimension_numbers = #tpu.dot_dimension_numbers<[1], [0], [0], [1], [0, 0, 1, 1], [], []>} : vector<256x1152xbf16>, vector<1152x256xbf16>, vector<256x256xf32> -> vector<256x256xf32>
    %27 = vector.extract_strided_slice %26 {offsets = [0, 0], sizes = [256, 128], strides = [1, 1]} : vector<256x256xf32> to vector<256x128xf32>
    %28 = vector.extract_strided_slice %26 {offsets = [0, 128], sizes = [256, 128], strides = [1, 1]} : vector<256x256xf32> to vector<256x128xf32>
    %c0_5 = arith.constant 0 : index
    %c0_6 = arith.constant 0 : index
    %29 = vector.load %arg4[%c0_5, %c0_6] : memref<1x128xf32, #tpu.memory_space<vmem>>, vector<1x128xf32>
    %30 = vector.shape_cast %29 : vector<1x128xf32> to vector<128xf32>
    %31 = vector.shape_cast %27 : vector<256x128xf32> to vector<16x16x128xf32>
    %32 = vector.shape_cast %30 : vector<128xf32> to vector<1x1x128xf32>
    %33 = vector.broadcast %32 : vector<1x1x128xf32> to vector<16x16x128xf32>
    %34 = arith.addf %31, %33 : vector<16x16x128xf32>
    %cst_7 = arith.constant 0.000000e+00 : f32
    %35 = vector.broadcast %cst_7 : f32 to vector<16x16x128xf32>
    %36 = arith.maximumf %34, %35 : vector<16x16x128xf32>
    %c0_8 = arith.constant 0 : index
    %c0_9 = arith.constant 0 : index
    %c0_10 = arith.constant 0 : index
    %c0_11 = arith.constant 0 : index
    %c0_12 = arith.constant 0 : index
    %37 = vector.load %arg5[%c0_8, %c0_9, %c0_10, %c0_11, %c0_12] : memref<1x16x2x16x128xf32, #tpu.memory_space<vmem>>, vector<1x16x1x16x128xf32>
    %38 = vector.shape_cast %37 : vector<1x16x1x16x128xf32> to vector<16x16x128xf32>
    %39 = vector.shape_cast %36 : vector<16x16x128xf32> to vector<1x16x1x16x128xf32>
    tpu.vector_store %arg5[%c0_8, %c0_9, %c0_10, %c0_11, %c0_12], %39 {strides = array<i32>} : memref<1x16x2x16x128xf32, #tpu.memory_space<vmem>>, vector<1x16x1x16x128xf32>,
    %40 = vector.shape_cast %28 : vector<256x128xf32> to vector<16x16x128xf32>
    %41 = vector.shape_cast %30 : vector<128xf32> to vector<1x1x128xf32>
    %42 = vector.broadcast %41 : vector<1x1x128xf32> to vector<16x16x128xf32>
    %43 = arith.addf %40, %42 : vector<16x16x128xf32>
    %cst_13 = arith.constant 0.000000e+00 : f32
    %44 = vector.broadcast %cst_13 : f32 to vector<16x16x128xf32>
    %45 = arith.maximumf %43, %44 : vector<16x16x128xf32>
    %c0_14 = arith.constant 0 : index
    %c0_15 = arith.constant 0 : index
    %c1 = arith.constant 1 : index
    %c0_16 = arith.constant 0 : index
    %c0_17 = arith.constant 0 : index
    %46 = vector.load %arg5[%c0_14, %c0_15, %c1, %c0_16, %c0_17] : memref<1x16x2x16x128xf32, #tpu.memory_space<vmem>>, vector<1x16x1x16x128xf32>
    %47 = vector.shape_cast %46 : vector<1x16x1x16x128xf32> to vector<16x16x128xf32>
    %48 = vector.shape_cast %45 : vector<16x16x128xf32> to vector<1x16x1x16x128xf32>
    tpu.vector_store %arg5[%c0_14, %c0_15, %c1, %c0_16, %c0_17], %48 {strides = array<i32>} : memref<1x16x2x16x128xf32, #tpu.memory_space<vmem>>, vector<1x16x1x16x128xf32>,
    return
  }
  func.func @transform_0(%arg0: i32, %arg1: i32) -> (i32, i32, i32, i32) {
    %c0_i32 = arith.constant 0 : i32
    %c0_i32_0 = arith.constant 0 : i32
    %c0_i32_1 = arith.constant 0 : i32
    %c0_i32_2 = arith.constant 0 : i32
    return %arg0, %c0_i32, %c0_i32_0, %c0_i32_1 : i32, i32, i32, i32
  }
  func.func @transform_1(%arg0: i32, %arg1: i32) -> (i32, i32, i32) {
    %c0_i32 = arith.constant 0 : i32
    %c0_i32_0 = arith.constant 0 : i32
    %c0_i32_1 = arith.constant 0 : i32
    %c0_i32_2 = arith.constant 0 : i32
    return %c0_i32, %c0_i32_0, %c0_i32_1 : i32, i32, i32
  }
  func.func @transform_2(%arg0: i32, %arg1: i32) -> (i32, i32) {
    %c0_i32 = arith.constant 0 : i32
    %c0_i32_0 = arith.constant 0 : i32
    %c0_i32_1 = arith.constant 0 : i32
    return %c0_i32, %c0_i32_0 : i32, i32
  }
  func.func @transform_3(%arg0: i32, %arg1: i32) -> (i32, i32, i32, i32, i32) {
    %c0_i32 = arith.constant 0 : i32
    %c0_i32_0 = arith.constant 0 : i32
    %c0_i32_1 = arith.constant 0 : i32
    %c0_i32_2 = arith.constant 0 : i32
    return %arg0, %arg1, %c0_i32, %c0_i32_0, %c0_i32_1 : i32, i32, i32, i32, i32
  }
}

</mosaic_0001>

<bundles_post_ra>
// kernel: tpu_custom_call.1
= control target key start
LH: loop header
LB: loop body
LE: loop exit
PB: predicated region body
PF: predicated region fallthrough
CT: control target
= control target key end

     0   :  { %8 = vsyncpa [#allocation3], 0  ;;  %s6526_s0 = inlined_call_operand.vmem [shape: bf16[2,18,18,128], index: 0, kind: input, shape index: {}]   ;;  %s6527_s1 = inlined_call_operand.hbm [shape: bf16[1,1152,256], index: 1, kind: input, shape index: {}]   ;;  %s6528_s2 = inlined_call_operand.vmem [shape: f32[1,128], index: 2, kind: input, shape index: {}]   ;;  %s6529_s3 = inlined_call_operand.hbm [shape: f32[2,16,2,16,128], index: 3, kind: output, shape index: {}]  }
   0x1   :  { %9 = vsyncpa [#allocation4], 0 }
   0x2   :  { %11 = vsyncpa [#allocation4 + $0x1], 0  ;;  %s5034_s12 = smov 0   ;;  %s5036_s13 = smov 0  }
   0x3   :  { %s5038_s14 = smov 0   ;;  %s5040_s15 = smov 0  }
   0x4   :  { %s5042_s16 = smov 0   ;;  %s5044_s17 = smov 0  }
   0x5 LB: > { %s3862_s18 = sadd.s32 4294967295, %s5007_s17   ;;  %s3863_s19 = sadd.s32 4294967294, %s5007_s17   ;;  %s5007_s17 = sphi %s5044_s17, %s17_s17   ;;  %s5003_s16 = sphi %s5042_s16, %s6790_s16   ;;  %s4999_s15 = sphi %s5040_s15, %s6789_s15   ;;  %s4995_s14 = sphi %s5038_s14, %s6788_s14   ;;  %s4991_s13 = sphi %s5036_s13, %s6787_s13   ;;  %s4987_s12 = sphi %s5034_s12, %s6786_s12  }
   0x6   : > { %s29_s20 = sadd.s32 1, %s5003_s16  ;;  %s106_s21 = sadd.s32 1, %s4995_s14 }
   0x7   : > { %p31_p0 = scmp.ge.s32.totalorder %s29_s20, 2  ;;  %p116_p1 = scmp.ne.s32.totalorder %s4995_s14, %s4991_s13 }
   0x8   : > { %p117_p2 = scmp.eq.s32.totalorder %s3862_s18, 1  ;;  %p122_p3 = scmp.ne.s32.totalorder %s4991_s13, %s4987_s12 }
   0x9   : > { %s6792_s20 = smov (%p31_p0, %s29_s20), 0  ;;  %p123_p5 = scmp.eq.s32.totalorder %s3863_s19, 1 }
   0xa   : > { %p5074_p4 = por %p117_p2, %p116_p1  ;;  %s101_s23 = ssub.s32 %s5003_s16, %s6792_s20 }
   0xb   : > { %p3864_p6 = scmp.ge.s32.totalorder %s5007_s17, 1  ;;  %p104_p7 = scmp.eq.s32.totalorder %s101_s23, 0 }
   0xc   : > { %p5081_p8 = por %p123_p5, %p122_p3  ;;  %p130_p9 = scmp.lt.s32.totalorder %s5007_s17, 3 }
   0xd   : > { %s5087_s25 = scalar_select %p104_p7, %s4995_s14, %s106_s21  }
   0xe   : > { %p131_p10 = pnand %p3864_p6, %p130_p9  ;;  %p4768_p11 = scmp.eq.s32.totalorder %s3862_s18, 0 }
   0xf   : > { %s141_s28 = sshll.u32 %s6527_s1, 4  ;;  %s5009_s29 = smov [#allocation2]   ;;  %s142_s28 = int_to_ptr.hbm [resolvable:$true] %s141_s28 }
  0x10   : > { %p4760_p12 = pneg %p131_p10  ;;  %s143_s30 = sshll.u32 %s5009_s29, 4  ;;  %s144_s30 = int_to_ptr.vmem [resolvable:$true] %s143_s30 }
  0x11   : > { %s5010_s4 = smov 128   ;;  %s5011_s5 = smov 8  }
  0x12   : > { %p4761_p13 = pnand %p4768_p11, %p4760_p12  ;;  %170 = sbr.rel (%p131_p10) target bundleno = 1351 (0x547), region = 32 }
  0x14   : > { %4763 = dma.hbm_to_vmem [thread:$0]  (!%p4761_p13), %s142_s28, 18432, %s144_s30, [#allocation3], %s5010_s4, %s5010_s4, %s5011_s5  }
  0x17   : > { %4978 = dma.done.wait (%p4768_p11), [#allocation3], 18432  }
  0x18   : > { %4980 = vsyncadd (%p4768_p11), [#allocation3], 4294948864  ;;  %p195_p0 = scmp.lt.s32.totalorder %s4999_s15, 1  ;;  %v4019_v0 = vld [vmem:[#allocation2 + $0x70] sm:$0xf]  ;;  %vm694_vm3 = vcmask 1042432  }
  0x19   : > { %v4607_v1 = vld [vmem:[#allocation2 + $0x74] sm:$0xf0]  ;;  %v4083_v2 = vld [vmem:[#allocation2 + $0xf0] sm:$0xf]  ;;  %v4011_v5 = vld [vmem:[#allocation2 + $0x60] sm:$0xf] }
  0x1a   : > { %s5094_s6 = scalar_select %p195_p0, %s4999_s15, 1  ;;  %v4020_v3 = vor.u32 %v4607_v1, %v4019_v0  ;;  %v4623_v4 = vld [vmem:[#allocation2 + $0xf4] sm:$0xf0]  ;;  %v4605_v6 = vld [vmem:[#allocation2 + $0x64] sm:$0xf0]  ;;  %vm695_vm4 = vcmask 1046532  }
  0x1b   : > { %v4084_v7 = vor.u32 %v4623_v4, %v4083_v2  ;;  %v4075_v8 = vld [vmem:[#allocation2 + $0xe0] sm:$0xf]  ;;  %v4621_v9 = vld [vmem:[#allocation2 + $0xe4] sm:$0xf0]  ;;  %v4012_v10 = vor.u32 %v4605_v6, %v4011_v5  ;;  %v4003_v12 = vld [vmem:[#allocation2 + $0x50] sm:$0xf] }
  0x1c   : > { %4737 = vmatpush.bf16.msra.mxu2 %v4020_v3  ;;  %1957 = vmatpush.bf16.msra.mxu0 %v4020_v3  ;;  %v4076_v11 = vor.u32 %v4621_v9, %v4075_v8  ;;  %v4603_v13 = vld [vmem:[#allocation2 + $0x54] sm:$0xf0]  ;;  %s4753_s7 = smul.u32 216, %s5094_s6  ;;  %v4067_v14 = vld [vmem:[#allocation2 + $0xd0] sm:$0xf]  ;;  %vm5434_vm5 = vmor %vm694_vm3, %vm695_vm4  ;;  %s192_s11 = sand.u32 1, %s4991_s13  }
  0x1d   : > { %4745 = vmatpush.bf16.msra.mxu3 %v4084_v7  ;;  %2046 = vmatpush.bf16.msra.mxu1 %v4084_v7  ;;  %v4619_v15 = vld [vmem:[#allocation2 + $0xd4] sm:$0xf0]  ;;  %v4004_v16 = vor.u32 %v4603_v13, %v4003_v12  ;;  %v3995_v17 = vld [vmem:[#allocation2 + $0x40] sm:$0xf]  ;;  %v4601_v19 = vld [vmem:[#allocation2 + $0x44] sm:$0xf0] }
  0x1e   : > { %v4068_v18 = vor.u32 %v4619_v15, %v4067_v14  ;;  %v4059_v20 = vld [vmem:[#allocation2 + $0xc0] sm:$0xf]  ;;  %v4617_v21 = vld [vmem:[#allocation2 + $0xc4] sm:$0xf0]  ;;  %s5100_s10 = scalar_lea.vmem %s6526_s0, %s4753_s7  ;;  %vm259_vm0 = vsmask.f32 3328  ;;  %v3996_v25 = vor.u32 %v4601_v19, %v3995_v17 }
  0x1f   : > { %v3987_v22 = vld [vmem:[#allocation2 + $0x30] sm:$0xf]  ;;  %v4599_v23 = vld [vmem:[#allocation2 + $0x34] sm:$0xf0]  ;;  %v4060_v26 = vor.u32 %v4617_v21, %v4059_v20  ;;  %v229_v27 = vld [vmem:[%s5100_s10 + $0x60] sm:$0xf] }
  0x20   : > { %4738 = vmatpush.bf16.msra.mxu2 %v4012_v10  ;;  %1958 = vmatpush.bf16.msra.mxu0 %v4012_v10  ;;  %v4051_v24 = vld [vmem:[#allocation2 + $0xb0] sm:$0xf]  ;;  %v230_v28 = vld [vmem:[%s5100_s10 + $0x64] sm:$0xf]  ;;  %v231_v29 = vld [vmem:[%s5100_s10 + $0x68] sm:$0x1]  ;;  %v3988_v42 = vor.u32 %v4599_v23, %v3987_v22 }
  0x21   : > { %4746 = vmatpush.bf16.msra.mxu3 %v4076_v11  ;;  %2047 = vmatpush.bf16.msra.mxu1 %v4076_v11  ;;  %v4615_v30 = vld [vmem:[#allocation2 + $0xb4] sm:$0xf0]  ;;  %v455_v31 = vshrl.u32 %v229_v27, 16  ;;  %v458_v32 = vshll.u32 %v229_v27, 16  ;;  %v464_v33 = vshll.u32 %v230_v28, 16  ;;  %v468_v34 = vshrl.u32 %v230_v28, 16 }
  0x22   : > { %vm260_vm1 = vsmask.f32 7440  ;;  %v474_v35 = vshll.u32 %v231_v29, 16  ;;  %v205_v36 = vld [vmem:[%s5100_s10] sm:$0xf]  ;;  %v4052_v43 = vor.u32 %v4615_v30, %v4051_v24  ;;  %s3869_s21 = sshll.u32 %s192_s11, 9 }
  0x23   : > { %v457_v37 = vrot.slane %v455_v31, 4  ;;  %v460_v38 = vrot.slane %v458_v32, 5  ;;  %v5106_v39 = vrot.slane %v464_v33, 5  ;;  %v470_v40 = vrot.slane %v468_v34, 4  ;;  %v206_v41 = vld [vmem:[%s5100_s10 + $0x4] sm:$0xf]  ;;  %vm5113_vm2 = vmor %vm259_vm0, %vm260_vm1 }
  0x24   : > { %4739 = vmatpush.bf16.msra.mxu2 %v4004_v16  ;;  %1959 = vmatpush.bf16.msra.mxu0 %v4004_v16  ;;  %v3979_v44 = vld [vmem:[#allocation2 + $0x20] sm:$0xf]  ;;  %v207_v45 = vld [vmem:[%s5100_s10 + $0x8] sm:$0x1]  ;;  %v263_v46 = vshrl.u32 %v205_v36, 16  ;;  %v266_v47 = vshll.u32 %v205_v36, 16 }
  0x25   : > { %4747 = vmatpush.bf16.msra.mxu3 %v4068_v18  ;;  %2048 = vmatpush.bf16.msra.mxu1 %v4068_v18  ;;  %v4597_v48 = vld [vmem:[#allocation2 + $0x24] sm:$0xf0]  ;;  %v4043_v49 = vld [vmem:[#allocation2 + $0xa0] sm:$0xf]  ;;  %v461_v50 = vor.u32 %v460_v38, %v457_v37  ;;  %v471_v51 = vor.u32 %v470_v40, %v5106_v39  ;;  %v272_v52 = vshll.u32 %v206_v41, 16  ;;  %v276_v53 = vshrl.u32 %v206_v41, 16 }
  0x26   : > { %v4613_v54 = vld [vmem:[#allocation2 + $0xa4] sm:$0xf0]  ;;  %v476_v55 = vrot.slane %v474_v35, 5  ;;  %v265_v56 = vrot.slane %v263_v46, 4  ;;  %v268_v57 = vrot.slane %v266_v47, 5  ;;  %v282_v58 = vshll.u32 %v207_v45, 16 }
  0x27   : > { %v3971_v59 = vld [vmem:[#allocation2 + $0x10] sm:$0xf]  ;;  %v4595_v60 = vld [vmem:[#allocation2 + $0x14] sm:$0xf0]  ;;  %v462_v63 = vrot.slane %v461_v50, 4  ;;  %v472_v0 = vrot.slane %v471_v51, 4  ;;  %v3980_v3 = vor.u32 %v4597_v48, %v3979_v44  ;;  %v4044_v8 = vor.u32 %v4613_v54, %v4043_v49 }
  0x28   : > { %4740 = vmatpush.bf16.msra.mxu2 %v3996_v25  ;;  %1960 = vmatpush.bf16.msra.mxu0 %v3996_v25  ;;  %v4035_v61 = vld [vmem:[#allocation2 + $0x90] sm:$0xf]  ;;  %v274_v1 = vrot.slane %v272_v52, 5  ;;  %v278_v2 = vrot.slane %v276_v53, 4  ;;  %v4611_v4 = vld [vmem:[#allocation2 + $0x94] sm:$0xf0]  ;;  %v269_v7 = vor.u32 %v268_v57, %v265_v56  ;;  %v3972_v22 = vor.u32 %v4595_v60, %v3971_v59 }
  0x29   : > { %4748 = vmatpush.bf16.msra.mxu3 %v4060_v26  ;;  %2049 = vmatpush.bf16.msra.mxu1 %v4060_v26  ;;  %v3963_v5 = vld [vmem:[#allocation2] sm:$0xf]  ;;  %v4593_v6 = vld [vmem:[#allocation2 + $0x4] sm:$0xf0]  ;;  %v284_v10 = vrot.slane %v282_v58, 5  ;;  %v467_v15 = vsel %vm5113_vm2, %v462_v63, %v5106_v39  ;;  %v477_v16 = vsel %vm5113_vm2, %v472_v0, %v476_v55  ;;  %v4036_v23 = vor.u32 %v4611_v4, %v4035_v61  ;;  %s5914_s23 = scalar_lea.vmem [#allocation5], %s3869_s21 }
  0x2a   : > { %v279_v9 = vor.u32 %v278_v2, %v274_v1  ;;  %v232_v11 = vld [vmem:[%s5100_s10 + $0x6c] sm:$0xf]  ;;  %v233_v12 = vld [vmem:[%s5100_s10 + $0x70] sm:$0xf]  ;;  %v4027_v13 = vld [vmem:[#allocation2 + $0x80] sm:$0xf]  ;;  %v3964_v24 = vor.u32 %v4593_v6, %v3963_v5  ;;  %v957_v33 = vunpack.c.l.b16 %v467_v15  ;;  %v958_v34 = vunpack.c.l.b16 %v477_v16 }
  0x2b   : > { %v4609_v14 = vld [vmem:[#allocation2 + $0x84] sm:$0xf0]  ;;  %v270_v17 = vrot.slane %v269_v7, 4  ;;  %v479_v19 = vshrl.u32 %v232_v11, 16  ;;  %v482_v20 = vshll.u32 %v232_v11, 16  ;;  %v488_v21 = vshll.u32 %v233_v12, 16 }
  0x2c   : > { %4741 = vmatpush.bf16.msra.mxu2 %v3988_v42  ;;  %1961 = vmatpush.bf16.msra.mxu0 %v3988_v42  ;;  %v280_v18 = vrot.slane %v279_v9, 4  ;;  %v492_v25 = vshrl.u32 %v233_v12, 16  ;;  %v208_v26 = vld [vmem:[%s5100_s10 + $0xc] sm:$0xf]  ;;  %v4028_v27 = vor.u32 %v4609_v14, %v4027_v13  ;;  %v4147_v28 = vld [vmem:[#allocation2 + $0x170] sm:$0xf]  ;;  %v5146_v6 = vpack.c.b16 %v958_v34, %v957_v33 }
  0x2d   : > { %4749 = vmatpush.bf16.msra.mxu3 %v4052_v43  ;;  %2050 = vmatpush.bf16.msra.mxu1 %v4052_v43  ;;  %v4639_v29 = vld [vmem:[#allocation2 + $0x174] sm:$0xf0]  ;;  %v275_v30 = vsel %vm5113_vm2, %v270_v17, %v274_v1  ;;  %v5130_v32 = vld [vmem:[%s5100_s10 + $0x10] sm:$0xf]  ;;  %v481_v37 = vrot.slane %v479_v19, 4  ;;  %v484_v38 = vrot.slane %v482_v20, 5 }
  0x2e   : > { %v285_v31 = vsel %vm5113_vm2, %v280_v18, %v284_v10  ;;  %v4211_v35 = vld [vmem:[#allocation2 + $0x1f0] sm:$0xf]  ;;  %v4655_v36 = vld [vmem:[#allocation2 + $0x1f4] sm:$0xf0]  ;;  %v234_v39 = vld [vmem:[%s5100_s10 + $0x74] sm:$0x1]  ;;  %v941_v44 = vunpack.c.l.b16 %v275_v30  ;;  %v4148_v52 = vor.u32 %v4639_v29, %v4147_v28 }
  0x2f   : > { %v5133_v40 = vrot.slane %v488_v21, 5  ;;  %v494_v41 = vrot.slane %v492_v25, 4  ;;  %v287_v42 = vshrl.u32 %v208_v26, 16  ;;  %v290_v43 = vshll.u32 %v208_v26, 16  ;;  %v4275_v46 = vld [vmem:[#allocation2 + $0x270] sm:$0xf] }
  0x30   : > { %4742 = vmatpush.bf16.msra.mxu2 %v3980_v3  ;;  %1962 = vmatpush.bf16.msra.mxu0 %v3980_v3  ;;  %v942_v45 = vunpack.c.l.b16 %v285_v31  ;;  %v4671_v47 = vld [vmem:[#allocation2 + $0x274] sm:$0xf0]  ;;  %v4339_v48 = vld [vmem:[#allocation2 + $0x2f0] sm:$0xf]  ;;  %v5136_v49 = vld [vmem:[%s5100_s10 + $0x14] sm:$0x1]  ;;  %v4212_v53 = vor.u32 %v4655_v36, %v4211_v35  ;;  %v485_v59 = vor.u32 %v484_v38, %v481_v37 }
  0x31   : > { %4750 = vmatpush.bf16.msra.mxu3 %v4044_v8  ;;  %2051 = vmatpush.bf16.msra.mxu1 %v4044_v8  ;;  %v296_v50 = vshll.u32 %v5130_v32, 16  ;;  %v300_v51 = vshrl.u32 %v5130_v32, 16  ;;  %v4687_v54 = vld [vmem:[#allocation2 + $0x2f4] sm:$0xf0]  ;;  %v4139_v55 = vld [vmem:[#allocation2 + $0x160] sm:$0xf]  ;;  %v495_v2 = vor.u32 %v494_v41, %v5133_v40  ;;  %v4276_v11 = vor.u32 %v4671_v47, %v4275_v46 }
  0x32   : > { %v289_v56 = vrot.slane %v287_v42, 4  ;;  %v292_v57 = vrot.slane %v290_v43, 5  ;;  %v4582_v58 = vld [vmem:[%s5100_s10 + $0x60] sm:$0xff]  ;;  %v498_v60 = vshll.u32 %v234_v39, 16  ;;  %v4637_v61 = vld [vmem:[#allocation2 + $0x164] sm:$0xf0]  ;;  %v5148_v7 = vpack.c.b16 %v942_v45, %v941_v44 }
  0x33   : > { %v5141_v63 = vrot.slane %v296_v50, 5  ;;  %v302_v0 = vrot.slane %v300_v51, 4  ;;  %v4574_v1 = vld [vmem:[%s5100_s10] sm:$0xff]  ;;  %v306_v3 = vshll.u32 %v5136_v49, 16  ;;  %v4653_v5 = vld [vmem:[#allocation2 + $0x1e4] sm:$0xf0]  ;;  %v4340_v12 = vor.u32 %v4687_v54, %v4339_v48 }
  0x34   : > { %4743 = vmatpush.bf16.msra.mxu2 %v3972_v22  ;;  %1963 = vmatpush.bf16.msra.mxu0 %v3972_v22  ;;  %v4203_v4 = vld [vmem:[#allocation2 + $0x1e0] sm:$0xf]  ;;  %6599 = vst [vmem:[#allocation8_spill] sm:$0xff] %v5146_v6  ;;  %v293_v8 = vor.u32 %v292_v57, %v289_v56  ;;  %v4669_v10 = vld [vmem:[#allocation2 + $0x264] sm:$0xf0]  ;;  %v486_v17 = vrot.slane %v485_v59, 4  ;;  %v4140_v19 = vor.u32 %v4637_v61, %v4139_v55 }
  0x35   : > { %4751 = vmatpush.bf16.msra.mxu3 %v4036_v23  ;;  %2052 = vmatpush.bf16.msra.mxu1 %v4036_v23  ;;  %6600 = vst [vmem:[#allocation9_spill] sm:$0xff] %v5148_v7  ;;  %v4267_v9 = vld [vmem:[#allocation2 + $0x260] sm:$0xf]  ;;  %v303_v13 = vor.u32 %v302_v0, %v5141_v63  ;;  %v4685_v15 = vld [vmem:[#allocation2 + $0x2e4] sm:$0xf0]  ;;  %v500_v18 = vrot.slane %v498_v60, 5  ;;  %v4204_v20 = vor.u32 %v4653_v5, %v4203_v4 }
  0x36   : > { %v4331_v14 = vld [vmem:[#allocation2 + $0x2e0] sm:$0xf]  ;;  %v235_v16 = vld [vmem:[%s5100_s10 + $0x78] sm:$0xf]  ;;  %v236_v21 = vld [vmem:[%s5100_s10 + $0x7c] sm:$0xf]  ;;  %v491_v47 = vsel %vm5113_vm2, %v486_v17, %v5133_v40 }
  0x37   : > { %v496_v22 = vrot.slane %v495_v2, 4  ;;  %v308_v23 = vrot.slane %v306_v3, 5  ;;  %v5157_v25 = vld [vmem:[%s5100_s10 + $0x1c] sm:$0xf]  ;;  %v294_v26 = vrot.slane %v293_v8, 4  ;;  %v4332_v28 = vor.u32 %v4685_v15, %v4331_v14  ;;  %v4583_v14 = vld [vmem:[%s5100_s10 + $0x6c] sm:$0xff] }
  0x38   : > { %4744 = vmatpush.bf16.msra.mxu2 %v3964_v24  ;;  %1964 = vmatpush.bf16.msra.mxu0 %v3964_v24  ;;  %v5154_v24 = vld [vmem:[%s5100_s10 + $0x18] sm:$0xf]  ;;  %v503_v29 = vshrl.u32 %v235_v16, 16  ;;  %v4131_v30 = vld [vmem:[#allocation2 + $0x150] sm:$0xf]  ;;  %v304_v33 = vrot.slane %v303_v13, 4  ;;  %v959_v3 = vunpack.c.l.b16 %v491_v47 }
  0x39   : > { %4752 = vmatpush.bf16.msra.mxu3 %v4028_v27  ;;  %2053 = vmatpush.bf16.msra.mxu1 %v4028_v27  ;;  %v4268_v27 = vor.u32 %v4669_v10, %v4267_v9  ;;  %v4635_v31 = vld [vmem:[#allocation2 + $0x154] sm:$0xf0]  ;;  %v506_v34 = vshll.u32 %v235_v16, 16  ;;  %v512_v35 = vshll.u32 %v236_v21, 16  ;;  %v516_v36 = vshrl.u32 %v236_v21, 16  ;;  %v5187_v15 = vld [vmem:[%s5100_s10 + $0xc] sm:$0xff] }
  0x3a   : > { %v4132_v37 = vor.u32 %v4635_v31, %v4131_v30  ;;  %v311_v38 = vshrl.u32 %v5154_v24, 16  ;;  %v314_v39 = vshll.u32 %v5154_v24, 16  ;;  %v4195_v41 = vld [vmem:[#allocation2 + $0x1d0] sm:$0xf]  ;;  %v4651_v42 = vld [vmem:[#allocation2 + $0x1d4] sm:$0xf0]  ;;  %v501_v48 = vsel %vm5113_vm2, %v496_v22, %v500_v18 }
  0x3b   : > { %2005 = vmatmul.bf16.vlgmr.msra.gmra.mxu2 %v4582_v58  ;;  %1965 = vmatmul.bf16.vlgmr.msra.gmra.mxu0 %v4574_v1  ;;  %v320_v43 = vshll.u32 %v5157_v25, 16  ;;  %v324_v44 = vshrl.u32 %v5157_v25, 16  ;;  %v4259_v45 = vld [vmem:[#allocation2 + $0x250] sm:$0xf]  ;;  %v4667_v46 = vld [vmem:[#allocation2 + $0x254] sm:$0xf0]  ;;  %v299_v50 = vsel %vm5113_vm2, %v294_v26, %v5141_v63  ;;  %v4196_v56 = vor.u32 %v4651_v42, %v4195_v41 }
  0x3c   : > { %2135 = vmatpush.bf16.msrb.mxu2 %v4148_v52  ;;  %2094 = vmatmul.bf16.vlgmr.msra.gmra.mxu3 %v5146_v6  ;;  %v505_v51 = vrot.slane %v503_v29, 4  ;;  %v4323_v52 = vld [vmem:[#allocation2 + $0x2d0] sm:$0xf]  ;;  %v508_v54 = vrot.slane %v506_v34, 5  ;;  %v5175_v55 = vrot.slane %v512_v35, 5  ;;  %v518_v58 = vrot.slane %v516_v36, 4 }
  0x3d   : > { %2224 = vmatpush.bf16.msrb.mxu3 %v4212_v53  ;;  %2054 = vmatmul.bf16.vlgmr.msra.gmra.mxu1 %v5148_v7  ;;  %v309_v53 = vsel %vm5113_vm2, %v304_v33, %v308_v23  ;;  %v4683_v40 = vld [vmem:[#allocation2 + $0x2d4] sm:$0xf0]  ;;  %v237_v57 = vld [vmem:[%s5100_s10 + $0x80] sm:$0x1]  ;;  %v313_v59 = vrot.slane %v311_v38, 4  ;;  %v316_v60 = vrot.slane %v314_v39, 5  ;;  %v4260_v61 = vor.u32 %v4667_v46, %v4259_v45 }
  0x3e   : > { %2313 = vmatpush.bf16.msrb.mxu0 %v4276_v11  ;;  %2402 = vmatpush.bf16.msrb.mxu1 %v4340_v12  ;;  %v5179_v63 = vld [vmem:[%s5100_s10 + $0x20] sm:$0x1]  ;;  %v5181_v0 = vrot.slane %v320_v43, 5  ;;  %v326_v1 = vrot.slane %v324_v44, 4  ;;  %v4324_v2 = vor.u32 %v4683_v40, %v4323_v52  ;;  %v960_v4 = vunpack.c.l.b16 %v501_v48  ;;  %v238_v17 = vld [vmem:[%s5100_s10 + $0x84] sm:$0xf] }
  0x3f   : > { %v943_v5 = vunpack.c.l.b16 %v299_v50  ;;  %v944_v8 = vunpack.c.l.b16 %v309_v53  ;;  %v509_v9 = vor.u32 %v508_v54, %v505_v51  ;;  %v522_v10 = vshll.u32 %v237_v57, 16  ;;  %v5197_v23 = vld [vmem:[%s5100_s10 + $0x24] sm:$0xf]  ;;  %v5201_v35 = vld [vmem:[%s5100_s10 + $0x28] sm:$0xf]  ;;  %s4736_s30 = sshll.u32 %s4999_s15, 9 }
  0x40   : > { %2136 = vmatpush.bf16.msrb.mxu2 %v4140_v19  ;;  %v519_v11 = vor.u32 %v518_v58, %v5175_v55  ;;  %v317_v12 = vor.u32 %v316_v60, %v313_v59  ;;  %v330_v13 = vshll.u32 %v5179_v63, 16  ;;  %v327_v16 = vor.u32 %v326_v1, %v5181_v0  ;;  %v4123_v36 = vld [vmem:[#allocation2 + $0x140] sm:$0xf]  ;;  %v4649_v43 = vld [vmem:[#allocation2 + $0x1c4] sm:$0xf0]  ;;  %s3771_s6 = scalar_lea.hbm %s6529_s3, %s4736_s30  ;;  %s3772_s7 = sshll.u32 %s5914_s23, 4  ;;  %s3773_s7 = int_to_ptr.vmem [resolvable:$true] %s3772_s7 }
  0x41   : > { %2225 = vmatpush.bf16.msrb.mxu3 %v4204_v20  ;;  %v5191_v18 = vpack.c.b16 %v960_v4, %v959_v3  ;;  %v5193_v19 = vpack.c.b16 %v944_v8, %v943_v5  ;;  %v239_v20 = vld [vmem:[%s5100_s10 + $0x88] sm:$0xf]  ;;  %v510_v21 = vrot.slane %v509_v9, 4  ;;  %v524_v22 = vrot.slane %v522_v10, 5  ;;  %v4187_v42 = vld [vmem:[#allocation2 + $0x1c0] sm:$0xf] }
  0x42   : > { %2314 = vmatpush.bf16.msrb.mxu0 %v4268_v27  ;;  %2403 = vmatpush.bf16.msrb.mxu1 %v4332_v28  ;;  %v520_v26 = vrot.slane %v519_v11, 4  ;;  %v318_v27 = vrot.slane %v317_v12, 4  ;;  %v332_v28 = vrot.slane %v330_v13, 5  ;;  %v527_v29 = vshrl.u32 %v238_v17, 16  ;;  %v4251_v44 = vld [vmem:[#allocation2 + $0x240] sm:$0xf] }
  0x43   : > { %6601 = vst [vmem:[#allocation10_spill] sm:$0xff] %v5191_v18  ;;  %v328_v30 = vrot.slane %v327_v16, 4  ;;  %v530_v31 = vshll.u32 %v238_v17, 16  ;;  %v536_v33 = vshll.u32 %v239_v20, 16  ;;  %v540_v34 = vshrl.u32 %v239_v20, 16  ;;  %v4584_v20 = vld [vmem:[%s5100_s10 + $0x78] sm:$0xff] }
  0x44   : > { %2137 = vmatpush.bf16.msrb.mxu2 %v4132_v37  ;;  %6602 = vst [vmem:[#allocation11_spill] sm:$0xff] %v5193_v19  ;;  %v4633_v37 = vld [vmem:[#allocation2 + $0x144] sm:$0xf0]  ;;  %v335_v38 = vshrl.u32 %v5197_v23, 16  ;;  %v338_v39 = vshll.u32 %v5197_v23, 16  ;;  %v344_v45 = vshll.u32 %v5201_v35, 16  ;;  %v4188_v47 = vor.u32 %v4649_v43, %v4187_v42 }
  0x45   : > { %2226 = vmatpush.bf16.msrb.mxu3 %v4196_v56  ;;  %v4124_v41 = vor.u32 %v4633_v37, %v4123_v36  ;;  %v348_v46 = vshrl.u32 %v5201_v35, 16  ;;  %v4665_v48 = vld [vmem:[#allocation2 + $0x244] sm:$0xf0]  ;;  %v4315_v50 = vld [vmem:[#allocation2 + $0x2c0] sm:$0xf]  ;;  %v515_v51 = vsel %vm5113_vm2, %v510_v21, %v5175_v55  ;;  %v525_v54 = vsel %vm5113_vm2, %v520_v26, %v524_v22  ;;  %v5232_v21 = vld [vmem:[%s5100_s10 + $0x18] sm:$0xff] }
  0x46   : > { %2315 = vmatpush.bf16.msrb.mxu0 %v4260_v61  ;;  %2404 = vmatpush.bf16.msrb.mxu1 %v4324_v2  ;;  %v4252_v52 = vor.u32 %v4665_v48, %v4251_v44  ;;  %v4681_v53 = vld [vmem:[#allocation2 + $0x2c4] sm:$0xf0]  ;;  %v323_v56 = vsel %vm5113_vm2, %v318_v27, %v5181_v0  ;;  %v529_v40 = vrot.slane %v527_v29, 4  ;;  %v333_v58 = vsel %vm5113_vm2, %v328_v30, %v332_v28  ;;  %v240_v59 = vld [vmem:[%s5100_s10 + $0x8c] sm:$0x1]  ;;  %s3774_s8 = sshll.u32 %s3771_s6, 4  ;;  %s3775_s8 = int_to_ptr.hbm [resolvable:$true] %s3774_s8 }
  0x47   : > { %v4316_v57 = vor.u32 %v4681_v53, %v4315_v50  ;;  %v532_v60 = vrot.slane %v530_v31, 5  ;;  %v5220_v61 = vrot.slane %v536_v33, 5  ;;  %v542_v55 = vrot.slane %v540_v34, 4  ;;  %v5223_v1 = vld [vmem:[%s5100_s10 + $0x2c] sm:$0x1]  ;;  %s3757_s15 = scalar_lea.sflag [#allocation4], %s192_s11 }
  0x48   : > { %2138 = vmatpush.bf16.msrb.mxu2 %v4124_v41  ;;  %v337_v2 = vrot.slane %v335_v38, 4  ;;  %v340_v3 = vrot.slane %v338_v39, 5  ;;  %v5225_v0 = vrot.slane %v344_v45, 5  ;;  %v350_v4 = vrot.slane %v348_v46, 4  ;;  %v241_v22 = vld [vmem:[%s5100_s10 + $0x90] sm:$0xf] }
  0x49   : > { %2227 = vmatpush.bf16.msrb.mxu3 %v4188_v47  ;;  %v961_v5 = vunpack.c.l.b16 %v515_v51  ;;  %v962_v8 = vunpack.c.l.b16 %v525_v54  ;;  %v945_v9 = vunpack.c.l.b16 %v323_v56  ;;  %v946_v10 = vunpack.c.l.b16 %v333_v58  ;;  %v242_v28 = vld [vmem:[%s5100_s10 + $0x94] sm:$0xf]  ;;  %v5241_v29 = vld [vmem:[%s5100_s10 + $0x30] sm:$0xf]  ;;  %v4631_v47 = vld [vmem:[#allocation2 + $0x134] sm:$0xf0] }
  0x4a   : > { %2316 = vmatpush.bf16.msrb.mxu0 %v4252_v52  ;;  %2405 = vmatpush.bf16.msrb.mxu1 %v4316_v57  ;;  %v533_v11 = vor.u32 %v532_v60, %v529_v40  ;;  %v543_v12 = vor.u32 %v542_v55, %v5220_v61  ;;  %v546_v13 = vshll.u32 %v240_v59, 16  ;;  %v341_v16 = vor.u32 %v340_v3, %v337_v2  ;;  %v5244_v36 = vld [vmem:[%s5100_s10 + $0x34] sm:$0xf]  ;;  %v4115_v46 = vld [vmem:[#allocation2 + $0x130] sm:$0xf]  ;;  %s4939_s9 = sshra.s32 %s3775_s8, 4  ;;  %s4940_s9 = int_to_ptr.hbm [resolvable:$true] %s4939_s9 }
  0x4b   : > { %2010 = vmatmul.bf16.gmra.mxu2 %v4583_v14  ;;  %1970 = vmatmul.bf16.gmra.mxu0 %v5187_v15  ;;  %v354_v14 = vshll.u32 %v5223_v1, 16  ;;  %v351_v17 = vor.u32 %v350_v4, %v5225_v0  ;;  %v5235_v26 = vpack.c.b16 %v962_v8, %v961_v5  ;;  %v5237_v27 = vpack.c.b16 %v946_v10, %v945_v9  ;;  %v4179_v52 = vld [vmem:[#allocation2 + $0x1b0] sm:$0xf]  ;;  %v4647_v53 = vld [vmem:[#allocation2 + $0x1b4] sm:$0xf0]  ;;  %s4945_s21 = scalar_lea.hbm %s6529_s3, 1024  ;;  %p4946_p5 = scmp.lt.s32.totalorder %s4940_s9, %s6529_s3 }
  0x4c   : > { %2099 = vmatmul.bf16.gmra.mxu3 %v5191_v18  ;;  %v534_v30 = vrot.slane %v533_v11, 4  ;;  %v544_v31 = vrot.slane %v543_v12, 4  ;;  %v548_v33 = vrot.slane %v546_v13, 5  ;;  %v342_v37 = vrot.slane %v341_v16, 4  ;;  %v4243_v54 = vld [vmem:[#allocation2 + $0x230] sm:$0xf] }
  0x4d   : > { %2059 = vmatmul.bf16.gmra.mxu1 %v5193_v19  ;;  %6603 = vst [vmem:[#allocation12_spill] sm:$0xff] %v5235_v26  ;;  %v356_v34 = vrot.slane %v354_v14, 5  ;;  %v352_v38 = vrot.slane %v351_v17, 4  ;;  %v551_v39 = vshrl.u32 %v241_v22, 16  ;;  %v554_v41 = vshll.u32 %v241_v22, 16 }
  0x4e   : > { %v560_v42 = vshll.u32 %v242_v28, 16  ;;  %v564_v43 = vshrl.u32 %v242_v28, 16  ;;  %v359_v44 = vshrl.u32 %v5241_v29, 16  ;;  %v362_v45 = vshll.u32 %v5241_v29, 16  ;;  %v4663_v40 = vld [vmem:[#allocation2 + $0x234] sm:$0xf0] }
  0x4f   : > { %v368_v48 = vshll.u32 %v5244_v36, 16  ;;  %v372_v50 = vshrl.u32 %v5244_v36, 16  ;;  %v4116_v51 = vor.u32 %v4631_v47, %v4115_v46  ;;  %v4180_v56 = vor.u32 %v4647_v53, %v4179_v52  ;;  %v4307_v57 = vld [vmem:[#allocation2 + $0x2b0] sm:$0xf]  ;;  %v4679_v58 = vld [vmem:[#allocation2 + $0x2b4] sm:$0xf0] }
  0x50   : > { %v4244_v59 = vor.u32 %v4663_v40, %v4243_v54  ;;  %v4308_v60 = vor.u32 %v4679_v58, %v4307_v57  ;;  %v539_v55 = vsel %vm5113_vm2, %v534_v30, %v5220_v61  ;;  %v549_v2 = vsel %vm5113_vm2, %v544_v31, %v548_v33  ;;  %v243_v5 = vld [vmem:[%s5100_s10 + $0x98] sm:$0x1]  ;;  %v5397_v7 = vld [vmem:[%s5100_s10 + $0x5c] sm:$0x1] }
  0x51   : > { %2139 = vmatpush.bf16.msrb.mxu2 %v4116_v51  ;;  %v347_v3 = vsel %vm5113_vm2, %v342_v37, %v5225_v0  ;;  %v357_v4 = vsel %vm5113_vm2, %v352_v38, %v356_v34  ;;  %2228 = vmatpush.bf16.msrb.mxu3 %v4180_v56  ;;  %v553_v8 = vrot.slane %v551_v39, 4  ;;  %v556_v9 = vrot.slane %v554_v41, 5  ;;  %v5267_v61 = vld [vmem:[%s5100_s10 + $0x38] sm:$0x1]  ;;  %v4585_v38 = vld [vmem:[%s5100_s10 + $0x84] sm:$0xff] }
  0x52   : > { %v5264_v10 = vrot.slane %v560_v42, 5  ;;  %v566_v11 = vrot.slane %v564_v43, 4  ;;  %2317 = vmatpush.bf16.msrb.mxu0 %v4244_v59  ;;  %2406 = vmatpush.bf16.msrb.mxu1 %v4308_v60  ;;  %v361_v12 = vrot.slane %v359_v44, 4  ;;  %v364_v13 = vrot.slane %v362_v45, 5  ;;  %v5276_v39 = vld [vmem:[%s5100_s10 + $0x24] sm:$0xff] }
  0x53   : > { %v5269_v0 = vrot.slane %v368_v48, 5  ;;  %v374_v14 = vrot.slane %v372_v50, 4  ;;  %v963_v16 = vunpack.c.l.b16 %v539_v55  ;;  %v964_v17 = vunpack.c.l.b16 %v549_v2  ;;  %v244_v41 = vld [vmem:[%s5100_s10 + $0x9c] sm:$0xf]  ;;  %v245_v44 = vld [vmem:[%s5100_s10 + $0xa0] sm:$0xf] }
  0x54   : > { %v948_v22 = vunpack.c.l.b16 %v357_v4  ;;  %v557_v28 = vor.u32 %v556_v9, %v553_v8  ;;  %v567_v30 = vor.u32 %v566_v11, %v5264_v10  ;;  %v570_v31 = vshll.u32 %v243_v5, 16  ;;  %v5285_v45 = vld [vmem:[%s5100_s10 + $0x3c] sm:$0xf]  ;;  %v5288_v51 = vld [vmem:[%s5100_s10 + $0x40] sm:$0xf] }
  0x55   : > { %v378_v33 = vshll.u32 %v5267_v61, 16  ;;  %v365_v34 = vor.u32 %v364_v13, %v361_v12  ;;  %v375_v37 = vor.u32 %v374_v14, %v5269_v0  ;;  %v5279_v42 = vpack.c.b16 %v964_v17, %v963_v16  ;;  %v4107_v60 = vld [vmem:[#allocation2 + $0x120] sm:$0xf]  ;;  %v4629_v55 = vld [vmem:[#allocation2 + $0x124] sm:$0xf0] }
  0x56   : > { %v558_v46 = vrot.slane %v557_v28, 4  ;;  %v568_v47 = vrot.slane %v567_v30, 4  ;;  %v572_v48 = vrot.slane %v570_v31, 5  ;;  %v575_v54 = vshrl.u32 %v244_v41, 16  ;;  %v4171_v5 = vld [vmem:[#allocation2 + $0x1a0] sm:$0xf] }
  0x57   : > { %6604 = vst [vmem:[#allocation13_spill] sm:$0xff] %v5279_v42  ;;  %v380_v50 = vrot.slane %v378_v33, 5  ;;  %v366_v52 = vrot.slane %v365_v34, 4  ;;  %v376_v53 = vrot.slane %v375_v37, 4  ;;  %v578_v56 = vshll.u32 %v244_v41, 16 }
  0x58   : > { %v584_v40 = vshll.u32 %v245_v44, 16  ;;  %v588_v57 = vshrl.u32 %v245_v44, 16  ;;  %v383_v58 = vshrl.u32 %v5285_v45, 16  ;;  %v386_v59 = vshll.u32 %v5285_v45, 16  ;;  %v4645_v8 = vld [vmem:[#allocation2 + $0x1a4] sm:$0xf0] }
  0x59   : > { %v392_v2 = vshll.u32 %v5288_v51, 16  ;;  %v4108_v4 = vor.u32 %v4629_v55, %v4107_v60  ;;  %v4235_v9 = vld [vmem:[#allocation2 + $0x220] sm:$0xf]  ;;  %v4172_v11 = vor.u32 %v4645_v8, %v4171_v5  ;;  %v4661_v12 = vld [vmem:[#allocation2 + $0x224] sm:$0xf0]  ;;  %v371_v28 = vsel %vm5113_vm2, %v366_v52, %v5269_v0  ;;  %v5320_v60 = vld [vmem:[%s5100_s10 + $0x30] sm:$0xff] }
  0x5a   : > { %v4299_v13 = vld [vmem:[#allocation2 + $0x2a0] sm:$0xf]  ;;  %v4677_v14 = vld [vmem:[#allocation2 + $0x2a4] sm:$0xf0]  ;;  %v4236_v16 = vor.u32 %v4661_v12, %v4235_v9  ;;  %v381_v30 = vsel %vm5113_vm2, %v376_v53, %v380_v50  ;;  %v577_v31 = vrot.slane %v575_v54, 4  ;;  %v580_v33 = vrot.slane %v578_v56, 5 }
  0x5b   : > { %2015 = vmatmul.bf16.gmra.mxu2 %v4584_v20  ;;  %1975 = vmatmul.bf16.gmra.mxu0 %v5232_v21  ;;  %v947_v20 = vunpack.c.l.b16 %v347_v3  ;;  %v396_v3 = vshrl.u32 %v5288_v51, 16  ;;  %v4300_v17 = vor.u32 %v4677_v14, %v4299_v13  ;;  %v5307_v34 = vrot.slane %v584_v40, 5  ;;  %v5313_v0 = vld [vmem:[%s5100_s10 + $0x44] sm:$0x1]  ;;  %v5329_v9 = vld [vmem:[%s5100_s10 + $0x48] sm:$0xf] }
  0x5c   : > { %2104 = vmatmul.bf16.gmra.mxu3 %v5235_v26  ;;  %2140 = vmatpush.bf16.msrb.mxu2 %v4108_v4  ;;  %v590_v37 = vrot.slane %v588_v57, 4  ;;  %v388_v41 = vrot.slane %v386_v59, 5  ;;  %v5310_v44 = vrot.slane %v392_v2, 5  ;;  %v949_v50 = vunpack.c.l.b16 %v371_v28  ;;  %v4586_v59 = vld [vmem:[%s5100_s10 + $0x90] sm:$0xff]  ;;  %v248_v4 = vld [vmem:[%s5100_s10 + $0xac] sm:$0xf] }
  0x5d   : > { %2064 = vmatmul.bf16.gmra.mxu1 %v5237_v27  ;;  %v5281_v43 = vpack.c.b16 %v948_v22, %v947_v20  ;;  %v563_v20 = vsel %vm5113_vm2, %v558_v46, %v5264_v10  ;;  %v573_v22 = vsel %vm5113_vm2, %v568_v47, %v572_v48  ;;  %2229 = vmatpush.bf16.msrb.mxu3 %v4172_v11  ;;  %v246_v10 = vld [vmem:[%s5100_s10 + $0xa4] sm:$0x1]  ;;  %v398_v46 = vrot.slane %v396_v3, 4  ;;  %v247_v3 = vld [vmem:[%s5100_s10 + $0xa8] sm:$0xf] }
  0x5e   : > { %2318 = vmatpush.bf16.msrb.mxu0 %v4236_v16  ;;  %2407 = vmatpush.bf16.msrb.mxu1 %v4300_v17  ;;  %v965_v47 = vunpack.c.l.b16 %v563_v20  ;;  %v966_v48 = vunpack.c.l.b16 %v573_v22  ;;  %v950_v52 = vunpack.c.l.b16 %v381_v30  ;;  %v581_v53 = vor.u32 %v580_v33, %v577_v31  ;;  %v5333_v28 = vld [vmem:[%s5100_s10 + $0x4c] sm:$0xf]  ;;  %v4099_v30 = vld [vmem:[#allocation2 + $0x110] sm:$0xf]  ;;  %v4627_v31 = vld [vmem:[#allocation2 + $0x114] sm:$0xf0] }
  0x5f   : > { %v594_v54 = vshll.u32 %v246_v10, 16  ;;  %v591_v56 = vor.u32 %v590_v37, %v5307_v34  ;;  %v399_v57 = vor.u32 %v398_v46, %v5310_v44  ;;  %v599_v16 = vshrl.u32 %v247_v3, 16  ;;  %v4227_v46 = vld [vmem:[#allocation2 + $0x210] sm:$0xf] }
  0x60   : > { %v5322_v55 = vpack.c.b16 %v966_v48, %v965_v47  ;;  %v5324_v2 = vpack.c.b16 %v950_v52, %v949_v50  ;;  %v582_v5 = vrot.slane %v581_v53, 4  ;;  %v602_v17 = vshll.u32 %v247_v3, 16  ;;  %v4659_v48 = vld [vmem:[#allocation2 + $0x214] sm:$0xf0]  ;;  %v4291_v50 = vld [vmem:[#allocation2 + $0x290] sm:$0xf] }
  0x61   : > { %v596_v8 = vrot.slane %v594_v54, 5  ;;  %v592_v11 = vrot.slane %v591_v56, 4  ;;  %v400_v13 = vrot.slane %v399_v57, 4  ;;  %v608_v20 = vshll.u32 %v248_v4, 16  ;;  %v4675_v52 = vld [vmem:[#allocation2 + $0x294] sm:$0xf0] }
  0x62   : > { %6605 = vst [vmem:[#allocation14_spill] sm:$0xff] %v5322_v55  ;;  %v612_v22 = vshrl.u32 %v248_v4, 16  ;;  %v407_v33 = vshrl.u32 %v5329_v9, 16  ;;  %v410_v37 = vshll.u32 %v5329_v9, 16  ;;  %v4100_v10 = vor.u32 %v4627_v31, %v4099_v30 }
  0x63   : > { %v416_v53 = vshll.u32 %v5333_v28, 16  ;;  %v420_v54 = vshrl.u32 %v5333_v28, 16  ;;  %v4228_v56 = vor.u32 %v4659_v48, %v4227_v46  ;;  %v587_v57 = vsel %vm5113_vm2, %v582_v5, %v5307_v34 }
  0x64   : > { %2141 = vmatpush.bf16.msrb.mxu2 %v4100_v10  ;;  %v601_v4 = vrot.slane %v599_v16, 4  ;;  %v604_v30 = vrot.slane %v602_v17, 5  ;;  %v5351_v31 = vrot.slane %v608_v20, 5  ;;  %v614_v34 = vrot.slane %v612_v22, 4  ;;  %v5357_v16 = vld [vmem:[%s5100_s10 + $0x50] sm:$0x1] }
  0x65   : > { %2319 = vmatpush.bf16.msrb.mxu0 %v4228_v56  ;;  %v409_v5 = vrot.slane %v407_v33, 4  ;;  %v5354_v10 = vrot.slane %v416_v53, 5  ;;  %v4587_v22 = vld [vmem:[%s5100_s10 + $0x9c] sm:$0xff] }
  0x66   : > { %v605_v17 = vor.u32 %v604_v30, %v601_v4  ;;  %v615_v20 = vor.u32 %v614_v34, %v5351_v31  ;;  %v5362_v33 = vld [vmem:[%s5100_s10 + $0x3c] sm:$0xff]  ;;  %v4625_v34 = vld [vmem:[#allocation2 + $0x104] sm:$0xf0] }
  0x67   : > { %v4091_v30 = vld [vmem:[#allocation2 + $0x100] sm:$0xf] }
  0x68   : > { %v606_v53 = vrot.slane %v605_v17, 4  ;;  %v4283_v17 = vld [vmem:[#allocation2 + $0x280] sm:$0xf] }
  0x6b   : > { %2020 = vmatmul.bf16.gmra.mxu2 %v4585_v38  ;;  %1980 = vmatmul.bf16.gmra.mxu0 %v5276_v39  ;;  %v385_v38 = vrot.slane %v383_v58, 4  ;;  %v402_v58 = vshll.u32 %v5313_v0, 16 }
  0x6c   : > { %2109 = vmatmul.bf16.gmra.mxu3 %v5279_v42 }
  0x6d   : > { %2069 = vmatmul.bf16.gmra.mxu1 %v5281_v43  ;;  %v389_v40 = vor.u32 %v388_v41, %v385_v38  ;;  %v404_v14 = vrot.slane %v402_v58, 5  ;;  %v4163_v38 = vld [vmem:[#allocation2 + $0x190] sm:$0xf]  ;;  %v4643_v41 = vld [vmem:[#allocation2 + $0x194] sm:$0xf0]  ;;  %v597_v58 = vsel %vm5113_vm2, %v592_v11, %v596_v8  ;;  %v412_v8 = vrot.slane %v410_v37, 5 }
  0x6e   : > { %v4164_v47 = vor.u32 %v4643_v41, %v4163_v38  ;;  %v249_v11 = vld [vmem:[%s5100_s10 + $0xb0] sm:$0x1]  ;;  %v422_v38 = vrot.slane %v420_v54, 4  ;;  %v616_v54 = vrot.slane %v615_v20, 4  ;;  %v4673_v20 = vld [vmem:[#allocation2 + $0x284] sm:$0xf0] }
  0x6f   : > { %v390_v12 = vrot.slane %v389_v40, 4  ;;  %v4292_v40 = vor.u32 %v4675_v52, %v4291_v50  ;;  %v405_v3 = vsel %vm5113_vm2, %v400_v13, %v404_v14  ;;  %v618_v41 = vshll.u32 %v249_v11, 16  ;;  %v250_v52 = vld [vmem:[%s5100_s10 + $0xb4] sm:$0xf] }
  0x70   : > { %2230 = vmatpush.bf16.msrb.mxu3 %v4164_v47  ;;  %v952_v14 = vunpack.c.l.b16 %v405_v3  ;;  %v413_v46 = vor.u32 %v412_v8, %v409_v5  ;;  %v423_v37 = vor.u32 %v422_v38, %v5354_v10  ;;  %v426_v47 = vshll.u32 %v5357_v16, 16  ;;  %v5376_v5 = vld [vmem:[%s5100_s10 + $0x54] sm:$0xf]  ;;  %v5379_v8 = vld [vmem:[%s5100_s10 + $0x58] sm:$0xf] }
  0x71   : > { %2408 = vmatpush.bf16.msrb.mxu1 %v4292_v40  ;;  %v620_v56 = vrot.slane %v618_v41, 5  ;;  %v623_v3 = vshrl.u32 %v250_v52, 16  ;;  %v626_v4 = vshll.u32 %v250_v52, 16  ;;  %v4092_v11 = vor.u32 %v4625_v34, %v4091_v30  ;;  %v4155_v38 = vld [vmem:[#allocation2 + $0x180] sm:$0xf] }
  0x72   : > { %v414_v40 = vrot.slane %v413_v46, 4 }
  0x73   : > { %2142 = vmatpush.bf16.msrb.mxu2 %v4092_v11  ;;  %v621_v52 = vsel %vm5113_vm2, %v616_v54, %v620_v56  ;;  %v434_v11 = vshll.u32 %v5376_v5, 16 }
  0x74   : > { %v419_v30 = vsel %vm5113_vm2, %v414_v40, %v5354_v10  ;;  %v628_v10 = vrot.slane %v626_v4, 5 }
  0x7b   : > { %2025 = vmatmul.bf16.gmra.mxu2 %v4586_v59  ;;  %1985 = vmatmul.bf16.gmra.mxu0 %v5320_v60  ;;  %v395_v59 = vsel %vm5113_vm2, %v390_v12, %v5310_v44  ;;  %v967_v44 = vunpack.c.l.b16 %v587_v57  ;;  %v968_v12 = vunpack.c.l.b16 %v597_v58  ;;  %v424_v57 = vrot.slane %v423_v37, 4 }
  0x7c   : > { %2114 = vmatmul.bf16.gmra.mxu3 %v5322_v55  ;;  %v951_v13 = vunpack.c.l.b16 %v395_v59  ;;  %v428_v58 = vrot.slane %v426_v47, 5  ;;  %v251_v59 = vld [vmem:[%s5100_s10 + $0xb8] sm:$0xf]  ;;  %v4284_v37 = vor.u32 %v4673_v20, %v4283_v17  ;;  %v611_v47 = vsel %vm5113_vm2, %v606_v53, %v5351_v31 }
  0x7d   : > { %2074 = vmatmul.bf16.gmra.mxu1 %v5324_v2  ;;  %v5366_v48 = vpack.c.b16 %v968_v12, %v967_v44  ;;  %v4641_v44 = vld [vmem:[#allocation2 + $0x184] sm:$0xf0]  ;;  %v4219_v12 = vld [vmem:[#allocation2 + $0x200] sm:$0xf]  ;;  %v632_v41 = vshll.u32 %v251_v59, 16  ;;  %v636_v46 = vshrl.u32 %v251_v59, 16  ;;  %v969_v40 = vunpack.c.l.b16 %v611_v47 }
  0x7e   : > { %v5368_v50 = vpack.c.b16 %v952_v14, %v951_v13  ;;  %v4156_v13 = vor.u32 %v4641_v44, %v4155_v38  ;;  %v4657_v14 = vld [vmem:[#allocation2 + $0x204] sm:$0xf0]  ;;  %v429_v34 = vsel %vm5113_vm2, %v424_v57, %v428_v58  ;;  %v431_v59 = vshrl.u32 %v5376_v5, 16  ;;  %2409 = vmatpush.bf16.msrb.mxu1 %v4284_v37 }
  0x7f   : > { %6606 = vst [vmem:[#allocation15_spill] sm:$0xff] %v5366_v48  ;;  %v440_v38 = vshll.u32 %v5379_v8, 16  ;;  %v444_v31 = vshrl.u32 %v5379_v8, 16  ;;  %v625_v53 = vrot.slane %v623_v3, 4  ;;  %v634_v54 = vrot.slane %v632_v41, 5 }
  0x80   : > { %2231 = vmatpush.bf16.msrb.mxu3 %v4156_v13  ;;  %v638_v56 = vrot.slane %v636_v46, 4  ;;  %v970_v57 = vunpack.c.l.b16 %v621_v52  ;;  %v953_v58 = vunpack.c.l.b16 %v419_v30  ;;  %v954_v44 = vunpack.c.l.b16 %v429_v34 }
  0x81   : > { %v433_v13 = vrot.slane %v431_v59, 4  ;;  %v442_v17 = vrot.slane %v440_v38, 5  ;;  %v446_v20 = vrot.slane %v444_v31, 4  ;;  %v629_v37 = vor.u32 %v628_v10, %v625_v53  ;;  %v4703_v38 = vld [vmem:[#allocation2 + $0x374] sm:$0xf0] }
  0x82   : > { %v639_v55 = vor.u32 %v638_v56, %v634_v54  ;;  %v5403_v4 = vpack.c.b16 %v970_v57, %v969_v40  ;;  %v5405_v41 = vpack.c.b16 %v954_v44, %v953_v58  ;;  %v450_v52 = vshll.u32 %v5397_v7, 16  ;;  %v4467_v31 = vld [vmem:[#allocation2 + $0x3f0] sm:$0xf]  ;;  %v4719_v57 = vld [vmem:[#allocation2 + $0x3f4] sm:$0xf0] }
  0x83   : > { %v447_v47 = vor.u32 %v446_v20, %v442_v17  ;;  %v630_v30 = vrot.slane %v629_v37, 4  ;;  %v4468_v58 = vor.u32 %v4719_v57, %v4467_v31  ;;  %v706_v31 = vrot.slane %v5130_v32, 5  ;;  %v4827_v57 = vld [vmem:[%s5100_s10 + $0x8] sm:$0x1]  ;;  %v4828_v32 = vld [vmem:[%s5100_s10 + $0xc] sm:$0xf] }
  0x84   : > { %6607 = vst [vmem:[#allocation16_spill] sm:$0xff] %v5403_v4  ;;  %v640_v34 = vrot.slane %v639_v55, 4  ;;  %v452_v56 = vrot.slane %v450_v52, 5  ;;  %v4589_v52 = vld [vmem:[%s5100_s10 + $0xb4] sm:$0xff] }
  0x85   : > { %v448_v10 = vrot.slane %v447_v47, 4  ;;  %2580 = vmatpush.bf16.msra.mxu3 %v4468_v58  ;;  %v635_v55 = vsel %vm5113_vm2, %v630_v30, %v634_v54  ;;  %v5421_v54 = vld [vmem:[%s5100_s10 + $0x54] sm:$0xff]  ;;  %v702_v58 = vrot.slane %v4827_v57, 5 }
  0x86   : > { %v971_v37 = vunpack.c.l.b16 %v635_v55 }
  0x8b   : > { %2030 = vmatmul.bf16.gmra.mxu2 %v4587_v22  ;;  %1990 = vmatmul.bf16.gmra.mxu0 %v5362_v33  ;;  %v4220_v22 = vor.u32 %v4657_v14, %v4219_v12  ;;  %v252_v12 = vld [vmem:[%s5100_s10 + $0xbc] sm:$0x1]  ;;  %v436_v14 = vrot.slane %v434_v11, 5  ;;  %v4403_v11 = vld [vmem:[#allocation2 + $0x370] sm:$0xf] }
  0x8c   : > { %2119 = vmatmul.bf16.gmra.mxu3 %v5366_v48  ;;  %v4588_v48 = vld [vmem:[%s5100_s10 + $0xa8] sm:$0xff]  ;;  %v642_v3 = vshll.u32 %v252_v12, 16  ;;  %v4404_v40 = vor.u32 %v4703_v38, %v4403_v11  ;;  %v453_v12 = vsel %vm5113_vm2, %v448_v10, %v452_v56  ;;  %v4606_v11 = vld [vmem:[#allocation2 + $0x74] sm:$0xf]  ;;  %v4021_v38 = vld [vmem:[#allocation2 + $0x78] sm:$0xf0] }
  0x8d   : > { %2079 = vmatmul.bf16.gmra.mxu1 %v5368_v50  ;;  %2320 = vmatpush.bf16.msrb.mxu0 %v4220_v22  ;;  %v5401_v22 = vld [vmem:[%s5100_s10 + $0x48] sm:$0xff]  ;;  %v437_v46 = vor.u32 %v436_v14, %v433_v13  ;;  %v4531_v13 = vld [vmem:[#allocation2 + $0x470] sm:$0xf]  ;;  %v4735_v14 = vld [vmem:[#allocation2 + $0x474] sm:$0xf0]  ;;  %v956_v47 = vunpack.c.l.b16 %v453_v12  ;;  %v709_v12 = vrot.slane %v5136_v49, 5 }
  0x8e   : > { %v644_v59 = vrot.slane %v642_v3, 5  ;;  %2491 = vmatpush.bf16.msra.mxu2 %v4404_v40  ;;  %v4532_v20 = vor.u32 %v4735_v14, %v4531_v13  ;;  %v4826_v10 = vld [vmem:[%s5100_s10] sm:$0xf] }
  0x8f   : > { %v438_v53 = vrot.slane %v437_v46, 4  ;;  %v3871_v56 = vrot.slane %v4826_v10, 9  ;;  %v4701_v10 = vld [vmem:[#allocation2 + $0x364] sm:$0xf0] }
  0x91   : > { %v443_v44 = vsel %vm5113_vm2, %v438_v53, %v442_v17  ;;  %2669 = vmatpush.bf16.msra.mxu0 %v4532_v20  ;;  %v4825_v17 = vld [vmem:[%s5100_s10 + $0x4] sm:$0xf]  ;;  %v4024_v53 = vor.u32 %v4606_v11, %v4021_v38 }
  0x92   : > { %v955_v46 = vunpack.c.l.b16 %v443_v44  ;;  %v708_v44 = vrot.slane %v706_v31, 4 }
  0x93   : > { %2758 = vmatpush.bf16.msra.mxu1 %v4024_v53 }
  0x9b   : > { %2035 = vmatmul.bf16.gmra.mxu2 %v4588_v48  ;;  %1995 = vmatmul.bf16.gmra.mxu0 %v5401_v22  ;;  %v645_v48 = vsel %vm5113_vm2, %v640_v34, %v644_v59  ;;  %v5425_v34 = vpack.c.b16 %v956_v47, %v955_v46  ;;  %v699_v59 = vrot.slane %v4825_v17, 5 }
  0x9c   : > { %2124 = vmatmul.bf16.gmra.mxu3 %v5403_v4  ;;  %v972_v3 = vunpack.c.l.b16 %v645_v48  ;;  %v3872_v48 = vrot.slane %v4828_v32, 9 }
  0x9d   : > { %2084 = vmatmul.bf16.gmra.mxu1 %v5405_v41  ;;  %6609 = vst [vmem:[#allocation18_spill] sm:$0xff] %v5425_v34  ;;  %v701_v40 = vrot.slane %v699_v59, 4  ;;  %v700_v13 = vsel %vm5434_vm5, %v3871_v56, %v699_v59  ;;  %v713_v59 = vrot.slane %v5157_v25, 5  ;;  %v4459_v56 = vld [vmem:[#allocation2 + $0x3e0] sm:$0xf] }
  0x9e   : > { %v5423_v30 = vpack.c.b16 %v972_v3, %v971_v37  ;;  %v707_v20 = vsel %vm5434_vm5, %v3872_v48, %v706_v31  ;;  %v710_v37 = vsel %vm5434_vm5, %v708_v44, %v709_v12  ;;  %v1005_v3 = vunpack.c.l.b16 %v700_v13  ;;  %v4395_v31 = vld [vmem:[#allocation2 + $0x360] sm:$0xf]  ;;  %v4717_v25 = vld [vmem:[#allocation2 + $0x3e4] sm:$0xf0] }
  0x9f   : > { %v703_v14 = vsel %vm5434_vm5, %v701_v40, %v702_v58  ;;  %v1007_v47 = vunpack.c.l.b16 %v707_v20  ;;  %v3873_v40 = vrot.slane %v5154_v24, 9  ;;  %v715_v57 = vrot.slane %v713_v59, 4 }
  0xa0   : > { %6608 = vst [vmem:[#allocation17_spill] sm:$0xff] %v5423_v30  ;;  %v1006_v46 = vunpack.c.l.b16 %v703_v14  ;;  %v716_v58 = vrot.slane %v5179_v63, 5  ;;  %v4396_v32 = vor.u32 %v4701_v10, %v4395_v31  ;;  %v4460_v44 = vor.u32 %v4717_v25, %v4459_v56  ;;  %v4523_v63 = vld [vmem:[#allocation2 + $0x460] sm:$0xf] }
  0xa1   : > { %v714_v20 = vsel %vm5434_vm5, %v3873_v40, %v713_v59  ;;  %v4013_v59 = vld [vmem:[#allocation2 + $0x68] sm:$0xf0] }
  0xa2   : > { %v5448_v17 = vpack.c.b16 %v1006_v46, %v1005_v3  ;;  %2492 = vmatpush.bf16.msra.mxu2 %v4396_v32  ;;  %2581 = vmatpush.bf16.msra.mxu3 %v4460_v44  ;;  %v717_v24 = vsel %vm5434_vm5, %v715_v57, %v716_v58  ;;  %v4733_v3 = vld [vmem:[#allocation2 + $0x464] sm:$0xf0]  ;;  %v4604_v32 = vld [vmem:[#allocation2 + $0x64] sm:$0xf]  ;;  %v720_v57 = vrot.slane %v5201_v35, 5 }
  0xa3   : > { %v4524_v46 = vor.u32 %v4733_v3, %v4523_v63  ;;  %v4016_v58 = vor.u32 %v4604_v32, %v4013_v59  ;;  %v727_v32 = vrot.slane %v5244_v36, 5  ;;  %v4715_v36 = vld [vmem:[#allocation2 + $0x3d4] sm:$0xf0] }
  0xa4   : > { %6612 = vst [vmem:[#allocation19_spill] sm:$0xff] %v5448_v17  ;;  %v722_v44 = vrot.slane %v720_v57, 4 }
  0xa5   : > { %2670 = vmatpush.bf16.msra.mxu0 %v4524_v46  ;;  %2759 = vmatpush.bf16.msra.mxu1 %v4016_v58  ;;  %v4451_v58 = vld [vmem:[#allocation2 + $0x3d0] sm:$0xf] }
  0xab   : > { %2040 = vmatmul.bf16.gmra.mxu2 %v4589_v52  ;;  %2000 = vmatmul.bf16.gmra.mxu0 %v5421_v54  ;;  %v1008_v52 = vunpack.c.l.b16 %v710_v37 }
  0xac   : > { %2129 = vmatmul.bf16.gmra.mxu3 %v5423_v30 }
  0xad   : > { %2089 = vmatmul.bf16.gmra.mxu1 %v5425_v34  ;;  %v5450_v11 = vpack.c.b16 %v1008_v52, %v1007_v47  ;;  %v1009_v47 = vunpack.c.l.b16 %v714_v20  ;;  %v1010_v52 = vunpack.c.l.b16 %v717_v24 }
  0xaf   : > { %6613 = vst [vmem:[#allocation20_spill] sm:$0xff] %v5450_v11  ;;  %v5471_v56 = vpack.c.b16 %v1010_v52, %v1009_v47 }
  0xb8   : > { %v1966_v49 = vpop.f32.mrf.mxu0 }
  0xba   : > { %v2055_v38 = vpop.f32.mrf.mxu1 }
  0xbb   : > { %v5453_v53 = vadd.f32 %v2055_v38, %v1966_v49  ;;  %2143 = vmatmul.bf16.vlgmr.msrb.gmra.mxu2 %v5448_v17  ;;  %2321 = vmatmul.bf16.vlgmr.msrb.gmra.mxu0 %v5193_v19 }
  0xbc   : > { %2232 = vmatmul.bf16.vlgmr.msrb.gmra.mxu3 %v5187_v15 }
  0xbd   : > { %2410 = vmatmul.bf16.vlgmr.msrb.gmra.mxu1 %v5450_v11 }
  0xbe   : > { %v2006_v48 = vpop.f32.mrf.mxu2 }
  0xbf   : > { %v2095_v12 = vpop.f32.mrf.mxu3 }
  0xc0   : > { %v5461_v13 = vadd.f32 %v2095_v12, %v2006_v48  ;;  %v1968_v14 = vpop.f32.mrf.mxu0  ;;  %v3874_v48 = vrot.slane %v5197_v23, 9  ;;  %v723_v12 = vrot.slane %v5223_v1, 5 }
  0xc2   : > { %v2057_v15 = vpop.f32.mrf.mxu1  ;;  %v721_v63 = vsel %vm5434_vm5, %v3874_v48, %v720_v57  ;;  %v4699_v57 = vld [vmem:[#allocation2 + $0x354] sm:$0xf0]  ;;  %v3875_v48 = vrot.slane %v5241_v29, 9 }
  0xc3   : > { %v5467_v37 = vadd.f32 %v2057_v15, %v1968_v14  ;;  %v1011_v46 = vunpack.c.l.b16 %v721_v63 }
  0xc6   : > { %v2008_v49 = vpop.f32.mrf.mxu2 }
  0xc7   : > { %v2097_v38 = vpop.f32.mrf.mxu3 }
  0xc8   : > { %v5469_v31 = vadd.f32 %v2097_v38, %v2008_v49  ;;  %v1971_v10 = vpop.f32.mrf.mxu0 }
  0xca   : > { %v2060_v40 = vpop.f32.mrf.mxu1 }
  0xcb   : > { %v5474_v25 = vadd.f32 %v2060_v40, %v1971_v10  ;;  %2148 = vmatmul.bf16.gmra.mxu2 %v5450_v11  ;;  %2326 = vmatmul.bf16.gmra.mxu0 %v5237_v27  ;;  %v4387_v40 = vld [vmem:[#allocation2 + $0x350] sm:$0xf] }
  0xcc   : > { %2237 = vmatmul.bf16.gmra.mxu3 %v5232_v21  ;;  %v724_v21 = vsel %vm5434_vm5, %v722_v44, %v723_v12  ;;  %v729_v44 = vrot.slane %v727_v32, 4  ;;  %v730_v12 = vrot.slane %v5267_v61, 5  ;;  %v4515_v61 = vld [vmem:[#allocation2 + $0x450] sm:$0xf] }
  0xcd   : > { %2415 = vmatmul.bf16.gmra.mxu1 %v5471_v56  ;;  %v1012_v23 = vunpack.c.l.b16 %v724_v21 }
  0xce   : > { %v2011_v14 = vpop.f32.mrf.mxu2  ;;  %v731_v29 = vsel %vm5434_vm5, %v729_v44, %v730_v12  ;;  %v734_v44 = vrot.slane %v5288_v51, 5 }
  0xcf   : > { %v2100_v15 = vpop.f32.mrf.mxu3  ;;  %v5492_v38 = vpack.c.b16 %v1012_v23, %v1011_v46  ;;  %v728_v46 = vsel %vm5434_vm5, %v3875_v48, %v727_v32  ;;  %v4005_v32 = vld [vmem:[#allocation2 + $0x58] sm:$0xf0] }
  0xd0   : > { %v5482_v35 = vadd.f32 %v2100_v15, %v2011_v14  ;;  %v1973_v20 = vpop.f32.mrf.mxu0  ;;  %v4388_v14 = vor.u32 %v4699_v57, %v4387_v40 }
  0xd2   : > { %v2062_v24 = vpop.f32.mrf.mxu1  ;;  %2493 = vmatpush.bf16.msra.mxu2 %v4388_v14 }
  0xd3   : > { %v5488_v3 = vadd.f32 %v2062_v24, %v1973_v20  ;;  %v4452_v20 = vor.u32 %v4715_v36, %v4451_v58 }
  0xd5   : > { %2582 = vmatpush.bf16.msra.mxu3 %v4452_v20 }
  0xd6   : > { %v2013_v47 = vpop.f32.mrf.mxu2 }
  0xd7   : > { %v2102_v52 = vpop.f32.mrf.mxu3 }
  0xd8   : > { %v5490_v1 = vadd.f32 %v2102_v52, %v2013_v47  ;;  %v1976_v49 = vpop.f32.mrf.mxu0  ;;  %v4731_v47 = vld [vmem:[#allocation2 + $0x454] sm:$0xf0] }
  0xd9   : > { %v4516_v52 = vor.u32 %v4731_v47, %v4515_v61 }
  0xda   : > { %v2065_v10 = vpop.f32.mrf.mxu1 }
  0xdb   : > { %v5495_v59 = vadd.f32 %v2065_v10, %v1976_v49  ;;  %2153 = vmatmul.bf16.gmra.mxu2 %v5471_v56  ;;  %2331 = vmatmul.bf16.gmra.mxu0 %v5281_v43  ;;  %v1013_v49 = vunpack.c.l.b16 %v728_v46  ;;  %v1014_v10 = vunpack.c.l.b16 %v731_v29 }
  0xdc   : > { %2242 = vmatmul.bf16.gmra.mxu3 %v5276_v39  ;;  %2671 = vmatpush.bf16.msra.mxu0 %v4516_v52 }
  0xdd   : > { %2420 = vmatmul.bf16.gmra.mxu1 %v5492_v38  ;;  %v5513_v36 = vpack.c.b16 %v1014_v10, %v1013_v49 }
  0xde   : > { %v2016_v15 = vpop.f32.mrf.mxu2 }
  0xdf   : > { %v2105_v24 = vpop.f32.mrf.mxu3 }
  0xe0   : > { %v5503_v63 = vadd.f32 %v2105_v24, %v2016_v15  ;;  %v1978_v21 = vpop.f32.mrf.mxu0  ;;  %v4602_v15 = vld [vmem:[#allocation2 + $0x54] sm:$0xf]  ;;  %v3876_v24 = vrot.slane %v5285_v45, 9 }
  0xe1   : > { %v4008_v12 = vor.u32 %v4602_v15, %v4005_v32 }
  0xe2   : > { %v2067_v39 = vpop.f32.mrf.mxu1  ;;  %v735_v52 = vsel %vm5434_vm5, %v3876_v24, %v734_v44  ;;  %v4697_v24 = vld [vmem:[#allocation2 + $0x344] sm:$0xf0] }
  0xe3   : > { %v5509_v23 = vadd.f32 %v2067_v39, %v1978_v21  ;;  %v736_v21 = vrot.slane %v734_v44, 4  ;;  %v737_v39 = vrot.slane %v5313_v0, 5  ;;  %2760 = vmatpush.bf16.msra.mxu1 %v4008_v12  ;;  %v1015_v10 = vunpack.c.l.b16 %v735_v52  ;;  %v4379_v44 = vld [vmem:[#allocation2 + $0x340] sm:$0xf] }
  0xe6   : > { %v2018_v40 = vpop.f32.mrf.mxu2 }
  0xe7   : > { %v2107_v57 = vpop.f32.mrf.mxu3 }
  0xe8   : > { %v5511_v58 = vadd.f32 %v2107_v57, %v2018_v40  ;;  %v1981_v14 = vpop.f32.mrf.mxu0 }
  0xea   : > { %v2070_v48 = vpop.f32.mrf.mxu1 }
  0xeb   : > { %v5516_v20 = vadd.f32 %v2070_v48, %v1981_v14  ;;  %2158 = vmatmul.bf16.gmra.mxu2 %v5492_v38  ;;  %2336 = vmatmul.bf16.gmra.mxu0 %v5324_v2  ;;  %v741_v48 = vrot.slane %v5333_v28, 5  ;;  %v4713_v28 = vld [vmem:[#allocation2 + $0x3c4] sm:$0xf0] }
  0xec   : > { %2247 = vmatmul.bf16.gmra.mxu3 %v5320_v60  ;;  %v738_v60 = vsel %vm5434_vm5, %v736_v21, %v737_v39  ;;  %v4443_v21 = vld [vmem:[#allocation2 + $0x3c0] sm:$0xf]  ;;  %v3877_v39 = vrot.slane %v5329_v9, 9 }
  0xed   : > { %2425 = vmatmul.bf16.gmra.mxu1 %v5513_v36  ;;  %v1016_v45 = vunpack.c.l.b16 %v738_v60  ;;  %v4444_v52 = vor.u32 %v4713_v28, %v4443_v21 }
  0xee   : > { %v2021_v46 = vpop.f32.mrf.mxu2 }
  0xef   : > { %v2110_v29 = vpop.f32.mrf.mxu3  ;;  %v5534_v15 = vpack.c.b16 %v1016_v45, %v1015_v10  ;;  %2583 = vmatpush.bf16.msra.mxu3 %v4444_v52 }
  0xf0   : > { %v5524_v51 = vadd.f32 %v2110_v29, %v2021_v46  ;;  %v1983_v61 = vpop.f32.mrf.mxu0  ;;  %v743_v46 = vrot.slane %v741_v48, 4  ;;  %v744_v29 = vrot.slane %v5357_v16, 5  ;;  %v4507_v16 = vld [vmem:[#allocation2 + $0x440] sm:$0xf] }
  0xf2   : > { %v2072_v47 = vpop.f32.mrf.mxu1  ;;  %v745_v9 = vsel %vm5434_vm5, %v743_v46, %v744_v29  ;;  %v748_v46 = vrot.slane %v5379_v8, 5 }
  0xf3   : > { %v5530_v49 = vadd.f32 %v2072_v47, %v1983_v61  ;;  %v4380_v61 = vor.u32 %v4697_v24, %v4379_v44  ;;  %v1018_v24 = vunpack.c.l.b16 %v745_v9  ;;  %v751_v9 = vrot.slane %v5397_v7, 5 }
  0xf5   : > { %2494 = vmatpush.bf16.msra.mxu2 %v4380_v61 }
  0xf6   : > { %v2023_v40 = vpop.f32.mrf.mxu2 }
  0xf7   : > { %v2112_v57 = vpop.f32.mrf.mxu3 }
  0xf8   : > { %v5532_v0 = vadd.f32 %v2112_v57, %v2023_v40  ;;  %v1986_v14 = vpop.f32.mrf.mxu0  ;;  %v742_v40 = vsel %vm5434_vm5, %v3877_v39, %v741_v48  ;;  %v3997_v48 = vld [vmem:[#allocation2 + $0x48] sm:$0xf0] }
  0xf9   : > { %v1017_v44 = vunpack.c.l.b16 %v742_v40  ;;  %v750_v40 = vrot.slane %v748_v46, 4 }
  0xfa   : > { %v2075_v32 = vpop.f32.mrf.mxu1 }
  0xfb   : > { %v5537_v12 = vadd.f32 %v2075_v32, %v1986_v14  ;;  %2163 = vmatmul.bf16.gmra.mxu2 %v5513_v36  ;;  %2341 = vmatmul.bf16.gmra.mxu0 %v5368_v50  ;;  %v4729_v14 = vld [vmem:[#allocation2 + $0x444] sm:$0xf0]  ;;  %v5555_v52 = vpack.c.b16 %v1018_v24, %v1017_v44 }
  0xfc   : > { %2252 = vmatmul.bf16.gmra.mxu3 %v5362_v33  ;;  %v4508_v32 = vor.u32 %v4729_v14, %v4507_v16 }
  0xfd   : > { %2430 = vmatmul.bf16.gmra.mxu1 %v5534_v15  ;;  %6615 = vst [vmem:[#allocation22_spill] sm:$0xff] %v5555_v52 }
  0xfe   : > { %v2026_v47 = vpop.f32.mrf.mxu2  ;;  %2672 = vmatpush.bf16.msra.mxu0 %v4508_v32 }
  0xff   : > { %v2115_v60 = vpop.f32.mrf.mxu3 }
 0x100   : > { %v5545_v10 = vadd.f32 %v2115_v60, %v2026_v47  ;;  %v1988_v45 = vpop.f32.mrf.mxu0  ;;  %v4600_v60 = vld [vmem:[#allocation2 + $0x44] sm:$0xf] }
 0x101   : > { %v4000_v29 = vor.u32 %v4600_v60, %v3997_v48 }
 0x102   : > { %v2077_v33 = vpop.f32.mrf.mxu1 }
 0x103   : > { %v5551_v57 = vadd.f32 %v2077_v33, %v1988_v45  ;;  %v3878_v33 = vrot.slane %v5376_v5, 9  ;;  %2761 = vmatpush.bf16.msra.mxu1 %v4000_v29 }
 0x105   : > { %v749_v24 = vsel %vm5434_vm5, %v3878_v33, %v748_v46  ;;  %v4371_v33 = vld [vmem:[#allocation2 + $0x330] sm:$0xf] }
 0x106   : > { %v2028_v21 = vpop.f32.mrf.mxu2  ;;  %v1019_v5 = vunpack.c.l.b16 %v749_v24 }
 0x107   : > { %v2117_v61 = vpop.f32.mrf.mxu3 }
 0x108   : > { %v5553_v28 = vadd.f32 %v2117_v61, %v2028_v21  ;;  %v1991_v47 = vpop.f32.mrf.mxu0 }
 0x10a   : > { %6614 = vst [vmem:[#allocation21_spill] sm:$0xff] %v5553_v28  ;;  %v2080_v39 = vpop.f32.mrf.mxu1 }
 0x10b   : > { %v5558_v45 = vadd.f32 %v2080_v39, %v1991_v47  ;;  %2168 = vmatmul.bf16.gmra.mxu2 %v5534_v15  ;;  %2346 = vmatmul.bf16.gmra.mxu0 %v5405_v41 }
 0x10c   : > { %2257 = vmatmul.bf16.gmra.mxu3 %v5401_v22  ;;  %v752_v22 = vsel %vm5434_vm5, %v750_v40, %v751_v9  ;;  %v4695_v40 = vld [vmem:[#allocation2 + $0x334] sm:$0xf0]  ;;  %v4435_v9 = vld [vmem:[#allocation2 + $0x3b0] sm:$0xf] }
 0x10d   : > { %2435 = vmatmul.bf16.gmra.mxu1 %v5555_v52  ;;  %v1020_v61 = vunpack.c.l.b16 %v752_v22  ;;  %v4831_v22 = vld [vmem:[%s5100_s10 + $0x68] sm:$0x1] }
 0x10e   : > { %v2031_v16 = vpop.f32.mrf.mxu2 }
 0x10f   : > { %v2120_v8 = vpop.f32.mrf.mxu3  ;;  %v5576_v39 = vpack.c.b16 %v1020_v61, %v1019_v5  ;;  %v758_v5 = vrot.slane %v4831_v22, 5  ;;  %v4372_v61 = vor.u32 %v4695_v40, %v4371_v33  ;;  %v4499_v33 = vld [vmem:[#allocation2 + $0x430] sm:$0xf]  ;;  %v4727_v40 = vld [vmem:[#allocation2 + $0x434] sm:$0xf0] }
 0x110   : > { %v5566_v14 = vadd.f32 %v2120_v8, %v2031_v16  ;;  %v1993_v32 = vpop.f32.mrf.mxu0  ;;  %v4829_v16 = vld [vmem:[%s5100_s10 + $0x64] sm:$0xf] }
 0x111   : > { %6618 = vst [vmem:[#allocation25_spill] sm:$0xff] %v5576_v39  ;;  %v755_v8 = vrot.slane %v4829_v16, 5  ;;  %2495 = vmatpush.bf16.msra.mxu2 %v4372_v61  ;;  %v4500_v61 = vor.u32 %v4727_v40, %v4499_v33  ;;  %v4834_v33 = vld [vmem:[%s5100_s10 + $0x6c] sm:$0xf] }
 0x112   : > { %6616 = vst [vmem:[#allocation23_spill] sm:$0xff] %v5566_v14  ;;  %v2082_v44 = vpop.f32.mrf.mxu1  ;;  %v3880_v40 = vrot.slane %v4834_v33, 9 }
 0x113   : > { %v5572_v21 = vadd.f32 %v2082_v44, %v1993_v32  ;;  %v4830_v32 = vld [vmem:[%s5100_s10 + $0x60] sm:$0xf]  ;;  %v757_v24 = vrot.slane %v755_v8, 4  ;;  %2673 = vmatpush.bf16.msra.mxu0 %v4500_v61 }
 0x114   : > { %v3879_v44 = vrot.slane %v4830_v32, 9 }
 0x115   : > { %v759_v32 = vsel %vm5434_vm5, %v757_v24, %v758_v5  ;;  %v3989_v5 = vld [vmem:[#allocation2 + $0x38] sm:$0xf0] }
 0x116   : > { %v2033_v47 = vpop.f32.mrf.mxu2  ;;  %v756_v19 = vsel %vm5434_vm5, %v3879_v44, %v755_v8  ;;  %v4832_v44 = vld [vmem:[%s5100_s10 + $0x70] sm:$0xf] }
 0x117   : > { %v2122_v7 = vpop.f32.mrf.mxu3  ;;  %v1021_v22 = vunpack.c.l.b16 %v756_v19  ;;  %v4598_v19 = vld [vmem:[#allocation2 + $0x34] sm:$0xf] }
 0x118   : > { %v5574_v60 = vadd.f32 %v2122_v7, %v2033_v47  ;;  %v1996_v48 = vpop.f32.mrf.mxu0  ;;  %v4711_v47 = vld [vmem:[#allocation2 + $0x3b4] sm:$0xf0] }
 0x11a   : > { %6617 = vst [vmem:[#allocation24_spill] sm:$0xff] %v5574_v60  ;;  %v2085_v29 = vpop.f32.mrf.mxu1  ;;  %v4836_v60 = vld [vmem:[%s5100_s10 + $0x7c] sm:$0xf] }
 0x11b   : > { %v5579_v46 = vadd.f32 %v2085_v29, %v1996_v48  ;;  %2173 = vmatmul.bf16.gmra.mxu2 %v5555_v52  ;;  %2351 = vmatmul.bf16.gmra.mxu0 %v5425_v34  ;;  %v4436_v48 = vor.u32 %v4711_v47, %v4435_v9  ;;  %v1022_v9 = vunpack.c.l.b16 %v759_v32  ;;  %v3992_v32 = vor.u32 %v4598_v19, %v3989_v5 }
 0x11c   : > { %2262 = vmatmul.bf16.gmra.mxu3 %v5421_v54  ;;  %v769_v14 = vrot.slane %v4836_v60, 5  ;;  %v4709_v60 = vld [vmem:[#allocation2 + $0x3a4] sm:$0xf0] }
 0x11d   : > { %2440 = vmatmul.bf16.gmra.mxu1 %v5576_v39  ;;  %2584 = vmatpush.bf16.msra.mxu3 %v4436_v48 }
 0x11e   : > { %v2036_v7 = vpop.f32.mrf.mxu2  ;;  %2762 = vmatpush.bf16.msra.mxu1 %v3992_v32 }
 0x11f   : > { %v2125_v29 = vpop.f32.mrf.mxu3 }
 0x120   : > { %v5587_v16 = vadd.f32 %v2125_v29, %v2036_v7  ;;  %v1998_v11 = vpop.f32.mrf.mxu0 }
 0x122   : > { %6619 = vst [vmem:[#allocation26_spill] sm:$0xff] %v5587_v16  ;;  %v2087_v54 = vpop.f32.mrf.mxu1  ;;  %v5597_v16 = vpack.c.b16 %v1022_v9, %v1021_v22  ;;  %v4835_v9 = vld [vmem:[%s5100_s10 + $0x74] sm:$0x1] }
 0x123   : > { %v5593_v17 = vadd.f32 %v2087_v54, %v1998_v11  ;;  %v762_v11 = vrot.slane %v4832_v44, 5  ;;  %v5605_v54 = vld [vmem:[%s5100_s10 + $0x60] sm:$0xff]  ;;  %v765_v61 = vrot.slane %v4835_v9, 5 }
 0x124   : > { %6621 = vst [vmem:[#allocation28_spill] sm:$0xff] %v5597_v16 }
 0x125   : > { %6622 = vst [vmem:[#allocation29_spill] sm:$0xff] %v5605_v54  ;;  %v764_v22 = vrot.slane %v762_v11, 4 }
 0x126   : > { %v2038_v47 = vpop.f32.mrf.mxu2 }
 0x127   : > { %v2127_v7 = vpop.f32.mrf.mxu3  ;;  %v766_v19 = vsel %vm5434_vm5, %v764_v22, %v765_v61  ;;  %v4427_v22 = vld [vmem:[#allocation2 + $0x3a0] sm:$0xf]  ;;  %v4838_v61 = vld [vmem:[%s5100_s10 + $0x78] sm:$0xf] }
 0x128   : > { %v5595_v48 = vadd.f32 %v2127_v7, %v2038_v47  ;;  %v2001_v29 = vpop.f32.mrf.mxu0 }
 0x12a   : > { %6620 = vst [vmem:[#allocation27_spill] sm:$0xff] %v5595_v48  ;;  %v2090_v8 = vpop.f32.mrf.mxu1  ;;  %v763_v48 = vsel %vm5434_vm5, %v3880_v40, %v762_v11  ;;  %v5627_v11 = vld [vmem:[%s5100_s10 + $0x6c] sm:$0xff]  ;;  %v4693_v40 = vld [vmem:[#allocation2 + $0x324] sm:$0xf0] }
 0x12b   : > { %v5600_v24 = vadd.f32 %v2090_v8, %v2001_v29  ;;  %2178 = vmatmul.bf16.gmra.mxu2 %v5576_v39  ;;  %2356 = vmatmul.bf16.gmra.mxu0 %v5146_v6  ;;  %v1023_v33 = vunpack.c.l.b16 %v763_v48  ;;  %v1024_v6 = vunpack.c.l.b16 %v766_v19  ;;  %6626 = vst [vmem:[#allocation33_spill] sm:$0xff] %v5627_v11  ;;  %v4363_v48 = vld [vmem:[#allocation2 + $0x320] sm:$0xf] }
 0x12c   : > { %2267 = vmatmul.bf16.gmra.mxu3 %v5605_v54 }
 0x12d   : > { %2445 = vmatmul.bf16.gmra.mxu1 %v5597_v16 }
 0x12e   : > { %v2041_v47 = vpop.f32.mrf.mxu2 }
 0x12f   : > { %v2130_v7 = vpop.f32.mrf.mxu3 }
 0x130   : > { %v5611_v29 = vadd.f32 %v2130_v7, %v2041_v47  ;;  %v2003_v8 = vpop.f32.mrf.mxu0  ;;  %v5621_v7 = vpack.c.b16 %v1024_v6, %v1023_v33  ;;  %v771_v6 = vrot.slane %v769_v14, 4  ;;  %v4364_v33 = vor.u32 %v4693_v40, %v4363_v48  ;;  %v4491_v48 = vld [vmem:[#allocation2 + $0x420] sm:$0xf]  ;;  %v4725_v40 = vld [vmem:[#allocation2 + $0x424] sm:$0xf0] }
 0x132   : > { %6623 = vst [vmem:[#allocation30_spill] sm:$0xff] %v5611_v29  ;;  %v2092_v44 = vpop.f32.mrf.mxu1  ;;  %2496 = vmatpush.bf16.msra.mxu2 %v4364_v33 }
 0x133   : > { %v5617_v5 = vadd.f32 %v2092_v44, %v2003_v8  ;;  %6625 = vst [vmem:[#allocation32_spill] sm:$0xff] %v5621_v7  ;;  %v3881_v8 = vrot.slane %v4838_v61, 9  ;;  %v4839_v44 = vld [vmem:[%s5100_s10 + $0x80] sm:$0x1] }
 0x134   : > { %v772_v19 = vrot.slane %v4839_v44, 5 }
 0x135   : > { %v770_v39 = vsel %vm5434_vm5, %v3881_v8, %v769_v14 }
 0x136   : > { %v2043_v9 = vpop.f32.mrf.mxu2  ;;  %v773_v61 = vsel %vm5434_vm5, %v771_v6, %v772_v19  ;;  %v1025_v28 = vunpack.c.l.b16 %v770_v39 }
 0x137   : > { %v2132_v32 = vpop.f32.mrf.mxu3 }
 0x138   : > { %v5619_v54 = vadd.f32 %v2132_v32, %v2043_v9  ;;  %v2322_v47 = vpop.f32.mrf.mxu0  ;;  %v4428_v32 = vor.u32 %v4709_v60, %v4427_v22  ;;  %v1026_v22 = vunpack.c.l.b16 %v773_v61  ;;  %v4492_v60 = vor.u32 %v4725_v40, %v4491_v48  ;;  %v4843_v48 = vld [vmem:[%s5100_s10 + $0x8c] sm:$0x1] }
 0x139   : > { %v779_v40 = vrot.slane %v4843_v48, 5 }
 0x13a   : > { %6624 = vst [vmem:[#allocation31_spill] sm:$0xff] %v5619_v54  ;;  %v2411_v29 = vpop.f32.mrf.mxu1  ;;  %2585 = vmatpush.bf16.msra.mxu3 %v4428_v32  ;;  %2674 = vmatpush.bf16.msra.mxu0 %v4492_v60  ;;  %v5641_v8 = vpack.c.b16 %v1026_v22, %v1025_v28  ;;  %v5647_v32 = vld [vmem:[%s5100_s10 + $0x78] sm:$0xff]  ;;  %v4842_v28 = vld [vmem:[%s5100_s10 + $0x84] sm:$0xf] }
 0x13b   : > { %2183 = vmatmul.bf16.gmra.mxu2 %v5597_v16  ;;  %2361 = vmatmul.bf16.gmra.mxu0 %v5191_v18  ;;  %v3882_v61 = vrot.slane %v4842_v28, 9 }
 0x13c   : > { %2272 = vmatmul.bf16.gmra.mxu3 %v5627_v11  ;;  %6627 = vst [vmem:[#allocation34_spill] sm:$0xff] %v5641_v8 }
 0x13d   : > { %2450 = vmatmul.bf16.gmra.mxu1 %v5621_v7 }
 0x13e   : > { %v2144_v9 = vpop.f32.mrf.mxu2 }
 0x13f   : > { %v2145_v54 = vadd.f32 %v2144_v9, %v5453_v53  ;;  %v2233_v18 = vpop.f32.mrf.mxu3  ;;  %v3981_v9 = vld [vmem:[#allocation2 + $0x28] sm:$0xf0] }
 0x140   : > { %v2324_v16 = vpop.f32.mrf.mxu0 }
 0x141   : > { %v2234_v11 = vadd.f32 %v2233_v18, %v2145_v54 }
 0x142   : > { %v2413_v34 = vpop.f32.mrf.mxu1 }
 0x143   : > { %v2323_v44 = vadd.f32 %v2322_v47, %v2234_v11  ;;  %v4840_v11 = vld [vmem:[%s5100_s10 + $0x88] sm:$0xf] }
 0x144   : > { %v776_v19 = vrot.slane %v4840_v11, 5 }
 0x145   : > { %v5638_v53 = vadd.f32 %v2411_v29, %v2323_v44  ;;  %v4596_v29 = vld [vmem:[#allocation2 + $0x24] sm:$0xf] }
 0x146   : > { %v2146_v33 = vpop.f32.mrf.mxu2  ;;  %v778_v44 = vrot.slane %v776_v19, 4  ;;  %v777_v11 = vsel %vm5434_vm5, %v3882_v61, %v776_v19  ;;  %v4844_v61 = vld [vmem:[%s5100_s10 + $0x94] sm:$0xf] }
 0x147   : > { %v2147_v18 = vadd.f32 %v2146_v33, %v5467_v37  ;;  %v2235_v54 = vpop.f32.mrf.mxu3  ;;  %v3984_v37 = vor.u32 %v4596_v29, %v3981_v9  ;;  %v1027_v28 = vunpack.c.l.b16 %v777_v11  ;;  %v4419_v11 = vld [vmem:[#allocation2 + $0x390] sm:$0xf] }
 0x148   : > { %v2327_v14 = vpop.f32.mrf.mxu0  ;;  %v780_v29 = vsel %vm5434_vm5, %v778_v44, %v779_v40  ;;  %v5670_v40 = vld [vmem:[%s5100_s10 + $0x84] sm:$0xff] }
 0x149   : > { %v2236_v6 = vadd.f32 %v2235_v54, %v2147_v18  ;;  %2763 = vmatpush.bf16.msra.mxu1 %v3984_v37  ;;  %6631 = vst [vmem:[#allocation38_spill] sm:$0xff] %v5670_v40 }
 0x14a   : > { %v2416_v47 = vpop.f32.mrf.mxu1 }
 0x14b   : > { %v2325_v39 = vadd.f32 %v2324_v16, %v2236_v6  ;;  %2188 = vmatmul.bf16.gmra.mxu2 %v5621_v7  ;;  %2366 = vmatmul.bf16.gmra.mxu0 %v5235_v26 }
 0x14c   : > { %2277 = vmatmul.bf16.gmra.mxu3 %v5647_v32 }
 0x14d   : > { %2455 = vmatmul.bf16.gmra.mxu1 %v5641_v8  ;;  %v5653_v22 = vadd.f32 %v2413_v34, %v2325_v39  ;;  %v1028_v34 = vunpack.c.l.b16 %v780_v29 }
 0x14e   : > { %v2149_v16 = vpop.f32.mrf.mxu2 }
 0x14f   : > { %6628 = vst [vmem:[#allocation35_spill] sm:$0xff] %v5653_v22  ;;  %v2150_v60 = vadd.f32 %v2149_v16, %v5474_v25  ;;  %v2238_v33 = vpop.f32.mrf.mxu3  ;;  %v783_v22 = vrot.slane %v4844_v61, 5 }
 0x150   : > { %v2329_v18 = vpop.f32.mrf.mxu0 }
 0x151   : > { %v2239_v54 = vadd.f32 %v2238_v33, %v2150_v60  ;;  %v5663_v60 = vpack.c.b16 %v1028_v34, %v1027_v28  ;;  %v785_v29 = vrot.slane %v783_v22, 4 }
 0x152   : > { %v2418_v6 = vpop.f32.mrf.mxu1 }
 0x153   : > { %v2328_v9 = vadd.f32 %v2327_v14, %v2239_v54  ;;  %6630 = vst [vmem:[#allocation37_spill] sm:$0xff] %v5663_v60  ;;  %v4845_v14 = vld [vmem:[%s5100_s10 + $0x90] sm:$0xf]  ;;  %v4691_v54 = vld [vmem:[#allocation2 + $0x314] sm:$0xf0] }
 0x155   : > { %v5660_v39 = vadd.f32 %v2416_v47, %v2328_v9  ;;  %v3883_v47 = vrot.slane %v4845_v14, 9  ;;  %v4847_v9 = vld [vmem:[%s5100_s10 + $0x98] sm:$0x1] }
 0x156   : > { %v2151_v37 = vpop.f32.mrf.mxu2  ;;  %v786_v28 = vrot.slane %v4847_v9, 5 }
 0x157   : > { %6629 = vst [vmem:[#allocation36_spill] sm:$0xff] %v5660_v39  ;;  %v2152_v25 = vadd.f32 %v2151_v37, %v5488_v3  ;;  %v2240_v48 = vpop.f32.mrf.mxu3  ;;  %v4355_v3 = vld [vmem:[#allocation2 + $0x310] sm:$0xf] }
 0x158   : > { %v2332_v16 = vpop.f32.mrf.mxu0  ;;  %v4356_v34 = vor.u32 %v4691_v54, %v4355_v3  ;;  %v787_v9 = vsel %vm5434_vm5, %v785_v29, %v786_v28 }
 0x159   : > { %v2241_v33 = vadd.f32 %v2240_v48, %v2152_v25 }
 0x15a   : > { %v2421_v19 = vpop.f32.mrf.mxu1  ;;  %2497 = vmatpush.bf16.msra.mxu2 %v4356_v34 }
 0x15b   : > { %v2330_v44 = vadd.f32 %v2329_v18, %v2241_v33  ;;  %2193 = vmatmul.bf16.gmra.mxu2 %v5641_v8  ;;  %2371 = vmatmul.bf16.gmra.mxu0 %v5279_v42  ;;  %v4707_v18 = vld [vmem:[#allocation2 + $0x394] sm:$0xf0] }
 0x15c   : > { %2282 = vmatmul.bf16.gmra.mxu3 %v5670_v40  ;;  %v4420_v48 = vor.u32 %v4707_v18, %v4419_v11  ;;  %v784_v40 = vsel %vm5434_vm5, %v3883_v47, %v783_v22  ;;  %v1030_v11 = vunpack.c.l.b16 %v787_v9  ;;  %v5691_v9 = vld [vmem:[%s5100_s10 + $0x90] sm:$0xff] }
 0x15d   : > { %2460 = vmatmul.bf16.gmra.mxu1 %v5663_v60  ;;  %v5675_v37 = vadd.f32 %v2418_v6, %v2330_v44  ;;  %v4483_v6 = vld [vmem:[#allocation2 + $0x410] sm:$0xf]  ;;  %v4723_v44 = vld [vmem:[#allocation2 + $0x414] sm:$0xf0]  ;;  %v1029_v54 = vunpack.c.l.b16 %v784_v40  ;;  %6636 = vst [vmem:[#allocation42_spill] sm:$0xff] %v5691_v9 }
 0x15e   : > { %v2154_v25 = vpop.f32.mrf.mxu2  ;;  %2586 = vmatpush.bf16.msra.mxu3 %v4420_v48  ;;  %v4484_v18 = vor.u32 %v4723_v44, %v4483_v6 }
 0x15f   : > { %6632 = vst [vmem:[#allocation39_spill] sm:$0xff] %v5675_v37  ;;  %v2155_v33 = vadd.f32 %v2154_v25, %v5495_v59  ;;  %v2243_v61 = vpop.f32.mrf.mxu3  ;;  %v5685_v47 = vpack.c.b16 %v1030_v11, %v1029_v54  ;;  %v4851_v54 = vld [vmem:[%s5100_s10 + $0xa4] sm:$0x1] }
 0x160   : > { %v2334_v14 = vpop.f32.mrf.mxu0  ;;  %2675 = vmatpush.bf16.msra.mxu0 %v4484_v18  ;;  %v793_v11 = vrot.slane %v4851_v54, 5 }
 0x161   : > { %v2244_v39 = vadd.f32 %v2243_v61, %v2155_v33  ;;  %6634 = vst [vmem:[#allocation41_spill] sm:$0xff] %v5685_v47  ;;  %v4594_v33 = vld [vmem:[#allocation2 + $0x14] sm:$0xf]  ;;  %v3973_v61 = vld [vmem:[#allocation2 + $0x18] sm:$0xf0] }
 0x162   : > { %v2423_v42 = vpop.f32.mrf.mxu1 }
 0x163   : > { %v2333_v3 = vadd.f32 %v2332_v16, %v2244_v39  ;;  %v4848_v16 = vld [vmem:[%s5100_s10 + $0xa0] sm:$0xf] }
 0x164   : > { %v790_v28 = vrot.slane %v4848_v16, 5 }
 0x165   : > { %v5682_v59 = vadd.f32 %v2421_v19, %v2333_v3  ;;  %v6635_v19 = vld [vmem:[#allocation14_spill] sm:$0xff]  ;;  %v4850_v3 = vld [vmem:[%s5100_s10 + $0x9c] sm:$0xf] }
 0x166   : > { %v2156_v34 = vpop.f32.mrf.mxu2  ;;  %v3884_v6 = vrot.slane %v4850_v3, 9  ;;  %v792_v44 = vrot.slane %v790_v28, 4 }
 0x167   : > { %6633 = vst [vmem:[#allocation40_spill] sm:$0xff] %v5682_v59  ;;  %v2157_v25 = vadd.f32 %v2156_v34, %v5509_v23  ;;  %v2245_v48 = vpop.f32.mrf.mxu3  ;;  %v3976_v23 = vor.u32 %v4594_v33, %v3973_v61 }
 0x168   : > { %v2337_v22 = vpop.f32.mrf.mxu0  ;;  %v791_v59 = vsel %vm5434_vm5, %v3884_v6, %v790_v28  ;;  %v794_v33 = vsel %vm5434_vm5, %v792_v44, %v793_v11  ;;  %v4852_v6 = vld [vmem:[%s5100_s10 + $0xac] sm:$0xf]  ;;  %v5714_v11 = vld [vmem:[%s5100_s10 + $0x9c] sm:$0xff] }
 0x169   : > { %v2246_v29 = vadd.f32 %v2245_v48, %v2157_v25  ;;  %2764 = vmatpush.bf16.msra.mxu1 %v3976_v23  ;;  %v1031_v3 = vunpack.c.l.b16 %v791_v59  ;;  %v6640_v59 = vld [vmem:[#allocation15_spill] sm:$0xff]  ;;  %6641 = vst [vmem:[#allocation46_spill] sm:$0xff] %v5714_v11 }
 0x16a   : > { %v2426_v39 = vpop.f32.mrf.mxu1 }
 0x16b   : > { %v2335_v40 = vadd.f32 %v2334_v14, %v2246_v29  ;;  %2198 = vmatmul.bf16.gmra.mxu2 %v5663_v60  ;;  %2376 = vmatmul.bf16.gmra.mxu0 %v6635_v19 }
 0x16c   : > { %2287 = vmatmul.bf16.gmra.mxu3 %v5691_v9 }
 0x16d   : > { %2465 = vmatmul.bf16.gmra.mxu1 %v5685_v47  ;;  %v5697_v18 = vadd.f32 %v2423_v42, %v2335_v40  ;;  %v1032_v42 = vunpack.c.l.b16 %v794_v33  ;;  %v4411_v33 = vld [vmem:[#allocation2 + $0x380] sm:$0xf] }
 0x16e   : > { %v2159_v14 = vpop.f32.mrf.mxu2 }
 0x16f   : > { %6637 = vst [vmem:[#allocation43_spill] sm:$0xff] %v5697_v18  ;;  %v2160_v34 = vadd.f32 %v2159_v14, %v5516_v20  ;;  %v2248_v25 = vpop.f32.mrf.mxu3  ;;  %v797_v18 = vrot.slane %v4852_v6, 5 }
 0x170   : > { %v2339_v48 = vpop.f32.mrf.mxu0 }
 0x171   : > { %v2249_v29 = vadd.f32 %v2248_v25, %v2160_v34  ;;  %v5707_v34 = vpack.c.b16 %v1032_v42, %v1031_v3  ;;  %v4855_v3 = vld [vmem:[%s5100_s10 + $0xb0] sm:$0x1] }
 0x172   : > { %v2428_v16 = vpop.f32.mrf.mxu1  ;;  %v800_v42 = vrot.slane %v4855_v3, 5 }
 0x173   : > { %v2338_v61 = vadd.f32 %v2337_v22, %v2249_v29  ;;  %6639 = vst [vmem:[#allocation45_spill] sm:$0xff] %v5707_v34  ;;  %v4853_v22 = vld [vmem:[%s5100_s10 + $0xa8] sm:$0xf] }
 0x174   : > { %v4689_v29 = vld [vmem:[#allocation2 + $0x304] sm:$0xf0] }
 0x175   : > { %v5704_v40 = vadd.f32 %v2426_v39, %v2338_v61  ;;  %v3885_v39 = vrot.slane %v4853_v22, 9  ;;  %v799_v61 = vrot.slane %v797_v18, 4 }
 0x176   : > { %v2161_v23 = vpop.f32.mrf.mxu2 }
 0x177   : > { %6638 = vst [vmem:[#allocation44_spill] sm:$0xff] %v5704_v40  ;;  %v2162_v20 = vadd.f32 %v2161_v23, %v5530_v49  ;;  %v2250_v54 = vpop.f32.mrf.mxu3  ;;  %v4347_v49 = vld [vmem:[#allocation2 + $0x300] sm:$0xf]  ;;  %v798_v19 = vsel %vm5434_vm5, %v3885_v39, %v797_v18  ;;  %v801_v3 = vsel %vm5434_vm5, %v799_v61, %v800_v42  ;;  %v4856_v61 = vld [vmem:[%s5100_s10 + $0xb8] sm:$0xf] }
 0x178   : > { %v2342_v14 = vpop.f32.mrf.mxu0  ;;  %v4348_v23 = vor.u32 %v4689_v29, %v4347_v49  ;;  %v1033_v29 = vunpack.c.l.b16 %v798_v19  ;;  %v804_v19 = vrot.slane %v4856_v61, 5 }
 0x179   : > { %v2251_v25 = vadd.f32 %v2250_v54, %v2162_v20 }
 0x17a   : > { %v2431_v28 = vpop.f32.mrf.mxu1  ;;  %2498 = vmatpush.bf16.msra.mxu2 %v4348_v23 }
 0x17b   : > { %v2340_v44 = vadd.f32 %v2339_v48, %v2251_v25  ;;  %2203 = vmatmul.bf16.gmra.mxu2 %v5685_v47  ;;  %2381 = vmatmul.bf16.gmra.mxu0 %v6640_v59  ;;  %v4705_v48 = vld [vmem:[#allocation2 + $0x384] sm:$0xf0] }
 0x17c   : > { %2292 = vmatmul.bf16.gmra.mxu3 %v5714_v11  ;;  %v4412_v25 = vor.u32 %v4705_v48, %v4411_v33  ;;  %v1034_v33 = vunpack.c.l.b16 %v801_v3 }
 0x17d   : > { %2470 = vmatmul.bf16.gmra.mxu1 %v5707_v34  ;;  %v5719_v20 = vadd.f32 %v2428_v16, %v2340_v44  ;;  %v4475_v16 = vld [vmem:[#allocation2 + $0x400] sm:$0xf]  ;;  %v4721_v44 = vld [vmem:[#allocation2 + $0x404] sm:$0xf0] }
 0x17e   : > { %v2164_v54 = vpop.f32.mrf.mxu2  ;;  %2587 = vmatpush.bf16.msra.mxu3 %v4412_v25  ;;  %v4476_v48 = vor.u32 %v4721_v44, %v4475_v16  ;;  %v5729_v39 = vpack.c.b16 %v1034_v33, %v1033_v29  ;;  %v4858_v16 = vld [vmem:[%s5100_s10 + $0xb4] sm:$0xf]  ;;  %v4859_v29 = vld [vmem:[%s5100_s10 + $0xbc] sm:$0x1] }
 0x17f   : > { %6642 = vst [vmem:[#allocation47_spill] sm:$0xff] %v5719_v20  ;;  %v2165_v6 = vadd.f32 %v2164_v54, %v5537_v12  ;;  %v2253_v22 = vpop.f32.mrf.mxu3  ;;  %v3886_v44 = vrot.slane %v4858_v16, 9  ;;  %v807_v33 = vrot.slane %v4859_v29, 5 }
 0x180   : > { %v2344_v40 = vpop.f32.mrf.mxu0  ;;  %2676 = vmatpush.bf16.msra.mxu0 %v4476_v48  ;;  %6644 = vst [vmem:[#allocation49_spill] sm:$0xff] %v5729_v39 }
 0x181   : > { %v2254_v59 = vadd.f32 %v2253_v22, %v2165_v6  ;;  %v3965_v6 = vld [vmem:[#allocation2 + $0x8] sm:$0xf0]  ;;  %v5735_v22 = vld [vmem:[%s5100_s10 + $0xc0] sm:$0xf] }
 0x182   : > { %v2433_v11 = vpop.f32.mrf.mxu1 }
 0x183   : > { %v2343_v49 = vadd.f32 %v2342_v14, %v2254_v59 }
 0x185   : > { %v5726_v12 = vadd.f32 %v2431_v28, %v2343_v49  ;;  %v4592_v28 = vld [vmem:[#allocation2 + $0x4] sm:$0xf] }
 0x186   : > { %v2166_v23 = vpop.f32.mrf.mxu2  ;;  %v3968_v3 = vor.u32 %v4592_v28, %v3965_v6  ;;  %v5743_v49 = vld [vmem:[%s5100_s10 + $0xc4] sm:$0xf] }
 0x187   : > { %6643 = vst [vmem:[#allocation48_spill] sm:$0xff] %v5726_v12  ;;  %v2167_v54 = vadd.f32 %v2166_v23, %v5551_v57  ;;  %v2255_v25 = vpop.f32.mrf.mxu3  ;;  %v5738_v57 = vld [vmem:[%s5100_s10 + $0xa8] sm:$0xff]  ;;  %v819_v28 = vshll.u32 %v5743_v49, 16  ;;  %v823_v6 = vshrl.u32 %v5743_v49, 16 }
 0x188   : > { %v2347_v18 = vpop.f32.mrf.mxu0  ;;  %6645 = vst [vmem:[#allocation50_spill] sm:$0xff] %v5738_v57  ;;  %2765 = vmatpush.bf16.msra.mxu1 %v3968_v3 }
 0x189   : > { %v2256_v14 = vadd.f32 %v2255_v25, %v2167_v54  ;;  %v810_v54 = vshrl.u32 %v5735_v22, 16  ;;  %v813_v25 = vshll.u32 %v5735_v22, 16 }
 0x18a   : > { %v2436_v59 = vpop.f32.mrf.mxu1 }
 0x18b   : > { %v2345_v42 = vadd.f32 %v2344_v40, %v2256_v14  ;;  %2208 = vmatmul.bf16.gmra.mxu2 %v5707_v34  ;;  %2386 = vmatmul.bf16.gmra.mxu0 %v5403_v4  ;;  %v806_v40 = vrot.slane %v804_v19, 4  ;;  %v812_v3 = vrot.slane %v810_v54, 4  ;;  %v815_v29 = vrot.slane %v813_v25, 5  ;;  %v255_v34 = vld [vmem:[%s5100_s10 + $0xc8] sm:$0x1] }
 0x18c   : > { %2297 = vmatmul.bf16.gmra.mxu3 %v5738_v57  ;;  %v821_v57 = vrot.slane %v819_v28, 5  ;;  %v4085_v28 = vld [vmem:[#allocation2 + $0xf8] sm:$0xf0] }
 0x18d   : > { %2475 = vmatmul.bf16.gmra.mxu1 %v5729_v39  ;;  %v5747_v48 = vadd.f32 %v2433_v11, %v2345_v42  ;;  %v805_v11 = vsel %vm5434_vm5, %v3886_v44, %v804_v19  ;;  %v808_v42 = vsel %vm5434_vm5, %v806_v40, %v807_v33  ;;  %v816_v37 = vor.u32 %v815_v29, %v812_v3 }
 0x18e   : > { %v2169_v23 = vpop.f32.mrf.mxu2  ;;  %v1036_v20 = vunpack.c.l.b16 %v808_v42  ;;  %v829_v44 = vshll.u32 %v255_v34, 16 }
 0x18f   : > { %6646 = vst [vmem:[#allocation51_spill] sm:$0xff] %v5747_v48  ;;  %v2170_v14 = vadd.f32 %v2169_v23, %v5558_v45  ;;  %v2258_v61 = vpop.f32.mrf.mxu3  ;;  %v825_v45 = vrot.slane %v823_v6, 4  ;;  %v1035_v23 = vunpack.c.l.b16 %v805_v11  ;;  %v817_v54 = vrot.slane %v816_v37, 4  ;;  %v4638_v6 = vld [vmem:[#allocation2 + $0x174] sm:$0xf] }
 0x190   : > { %v2349_v16 = vpop.f32.mrf.mxu0  ;;  %v841_v37 = vrot.slane %v255_v34, 5  ;;  %v4149_v11 = vld [vmem:[#allocation2 + $0x178] sm:$0xf0] }
 0x191   : > { %v2259_v12 = vadd.f32 %v2258_v61, %v2170_v14  ;;  %v826_v19 = vor.u32 %v825_v45, %v821_v57  ;;  %v5762_v40 = vpack.c.b16 %v1036_v20, %v1035_v23  ;;  %v4622_v20 = vld [vmem:[#allocation2 + $0xf4] sm:$0xf]  ;;  %v4152_v29 = vor.u32 %v4638_v6, %v4149_v11 }
 0x192   : > { %v2438_v4 = vpop.f32.mrf.mxu1 }
 0x193   : > { %v2348_v48 = vadd.f32 %v2347_v18, %v2259_v12  ;;  %6647 = vst [vmem:[#allocation52_spill] sm:$0xff] %v5762_v40  ;;  %v838_v18 = vrot.slane %v5743_v49, 5  ;;  %2936 = vmatpush.bf16.msrb.mxu3 %v4152_v29 }
 0x195   : > { %v5759_v47 = vadd.f32 %v2436_v59, %v2348_v48  ;;  %v827_v59 = vrot.slane %v826_v19, 4  ;;  %v831_v48 = vrot.slane %v829_v44, 5  ;;  %v840_v49 = vrot.slane %v838_v18, 4 }
 0x196   : > { %v2171_v9 = vpop.f32.mrf.mxu2 }
 0x197   : > { %v2172_v14 = vadd.f32 %v2171_v9, %v5572_v21  ;;  %v2260_v61 = vpop.f32.mrf.mxu3  ;;  %v3887_v21 = vrot.slane %v5735_v22, 9  ;;  %v5769_v9 = vld [vmem:[%s5100_s10 + $0xb4] sm:$0xff]  ;;  %v842_v44 = vsel %vm5434_vm5, %v840_v49, %v841_v37  ;;  %v5790_v49 = vld [vmem:[%s5100_s10 + $0xc0] sm:$0xff] }
 0x198   : > { %v2352_v60 = vpop.f32.mrf.mxu0 }
 0x199   : > { %v2261_v33 = vadd.f32 %v2260_v61, %v2172_v14  ;;  %v822_v14 = vsel %vm5113_vm2, %v817_v54, %v821_v57  ;;  %v832_v61 = vsel %vm5113_vm2, %v827_v59, %v831_v48  ;;  %v1078_v57 = vunpack.c.l.b16 %v842_v44 }
 0x19a   : > { %v2441_v12 = vpop.f32.mrf.mxu1 }
 0x19b   : > { %v2350_v25 = vadd.f32 %v2349_v16, %v2261_v33  ;;  %2213 = vmatmul.bf16.gmra.mxu2 %v5729_v39  ;;  %2391 = vmatmul.bf16.gmra.mxu0 %v5423_v30  ;;  %v4088_v16 = vor.u32 %v4622_v20, %v4085_v28  ;;  %v1073_v33 = vunpack.c.l.b16 %v822_v14  ;;  %v4654_v20 = vld [vmem:[#allocation2 + $0x1f4] sm:$0xf]  ;;  %v4213_v28 = vld [vmem:[#allocation2 + $0x1f8] sm:$0xf0] }
 0x19c   : > { %2302 = vmatmul.bf16.gmra.mxu3 %v5769_v9  ;;  %v4216_v54 = vor.u32 %v4654_v20, %v4213_v28 }
 0x19d   : > { %2480 = vmatmul.bf16.gmra.mxu1 %v5762_v40  ;;  %v5773_v42 = vadd.f32 %v2438_v4, %v2350_v25  ;;  %2847 = vmatpush.bf16.msrb.mxu2 %v4088_v16  ;;  %v839_v4 = vsel %vm5434_vm5, %v3887_v21, %v838_v18  ;;  %v1074_v25 = vunpack.c.l.b16 %v832_v61 }
 0x19e   : > { %v2174_v3 = vpop.f32.mrf.mxu2  ;;  %v1077_v6 = vunpack.c.l.b16 %v839_v4  ;;  %3025 = vmatpush.bf16.msrb.mxu0 %v4216_v54 }
 0x19f   : > { %v2175_v45 = vadd.f32 %v2174_v3, %v5579_v46  ;;  %v2263_v22 = vpop.f32.mrf.mxu3  ;;  %v5787_v18 = vpack.c.b16 %v1074_v25, %v1073_v33 }
 0x1a0   : > { %v2354_v23 = vpop.f32.mrf.mxu0 }
 0x1a1   : > { %v2264_v19 = vadd.f32 %v2263_v22, %v2175_v45  ;;  %v4277_v45 = vld [vmem:[#allocation2 + $0x278] sm:$0xf0] }
 0x1a2   : > { %v2443_v34 = vpop.f32.mrf.mxu1 }
 0x1a3   : > { %v2353_v46 = vadd.f32 %v2352_v60, %v2264_v19  ;;  %v5792_v60 = vpack.c.b16 %v1078_v57, %v1077_v6 }
 0x1a5   : > { %v5784_v16 = vadd.f32 %v2441_v12, %v2353_v46  ;;  %6648 = vst [vmem:[#allocation53_spill] sm:$0xff] %v5792_v60  ;;  %v4670_v12 = vld [vmem:[#allocation2 + $0x274] sm:$0xf] }
 0x1a6   : > { %v2176_v59 = vpop.f32.mrf.mxu2 }
 0x1a7   : > { %v2177_v48 = vadd.f32 %v2176_v59, %v5593_v17  ;;  %v2265_v11 = vpop.f32.mrf.mxu3  ;;  %v4280_v17 = vor.u32 %v4670_v12, %v4277_v45  ;;  %v5805_v59 = vld [vmem:[%s5100_s10 + $0x18] sm:$0xff] }
 0x1a8   : > { %v2357_v21 = vpop.f32.mrf.mxu0 }
 0x1a9   : > { %v2266_v37 = vadd.f32 %v2265_v11, %v2177_v48  ;;  %3114 = vmatpush.bf16.msrb.mxu1 %v4280_v17  ;;  %v4620_v48 = vld [vmem:[#allocation2 + $0xe4] sm:$0xf]  ;;  %v4077_v11 = vld [vmem:[#allocation2 + $0xe8] sm:$0xf0] }
 0x1aa   : > { %v2446_v3 = vpop.f32.mrf.mxu1 }
 0x1ab   : > { %v2355_v29 = vadd.f32 %v2354_v23, %v2266_v37  ;;  %2218 = vmatmul.bf16.gmra.mxu2 %v5762_v40  ;;  %2396 = vmatmul.bf16.gmra.mxu0 %v5787_v18  ;;  %v4080_v37 = vor.u32 %v4620_v48, %v4077_v11  ;;  %v5818_v11 = vld [vmem:[%s5100_s10 + $0x24] sm:$0xff] }
 0x1ac   : > { %2307 = vmatmul.bf16.gmra.mxu3 %v5790_v49 }
 0x1ad   : > { %2485 = vmatmul.bf16.gmra.mxu1 %v5792_v60  ;;  %v5798_v22 = vadd.f32 %v2443_v34, %v2355_v29  ;;  %2848 = vmatpush.bf16.msrb.mxu2 %v4080_v37 }
 0x1ae   : > { %v2179_v14 = vpop.f32.mrf.mxu2 }
 0x1af   : > { %v2180_v61 = vadd.f32 %v2179_v14, %v5600_v24  ;;  %v2268_v19 = vpop.f32.mrf.mxu3  ;;  %v4862_v24 = vld [vmem:[%s5100_s10] sm:$0xff] }
 0x1b0   : > { %v2359_v23 = vpop.f32.mrf.mxu0 }
 0x1b1   : > { %v2269_v4 = vadd.f32 %v2268_v19, %v2180_v61 }
 0x1b2   : > { %v2448_v44 = vpop.f32.mrf.mxu1 }
 0x1b3   : > { %v2358_v46 = vadd.f32 %v2357_v21, %v2269_v4  ;;  %v4636_v21 = vld [vmem:[#allocation2 + $0x164] sm:$0xf] }
 0x1b4   : > { %v4652_v4 = vld [vmem:[#allocation2 + $0x1e4] sm:$0xf] }
 0x1b5   : > { %v5801_v33 = vadd.f32 %v2446_v3, %v2358_v46  ;;  %v4205_v46 = vld [vmem:[#allocation2 + $0x1e8] sm:$0xf0] }
 0x1b6   : > { %v2181_v25 = vpop.f32.mrf.mxu2 }
 0x1b7   : > { %v2182_v20 = vadd.f32 %v2181_v25, %v5617_v5  ;;  %v2270_v28 = vpop.f32.mrf.mxu3  ;;  %v4141_v5 = vld [vmem:[#allocation2 + $0x168] sm:$0xf0]  ;;  %v4208_v25 = vor.u32 %v4652_v4, %v4205_v46 }
 0x1b8   : > { %v2362_v6 = vpop.f32.mrf.mxu0  ;;  %v4144_v12 = vor.u32 %v4636_v21, %v4141_v5  ;;  %v4269_v21 = vld [vmem:[#allocation2 + $0x268] sm:$0xf0] }
 0x1b9   : > { %v2271_v34 = vadd.f32 %v2270_v28, %v2182_v20  ;;  %3026 = vmatpush.bf16.msrb.mxu0 %v4208_v25 }
 0x1ba   : > { %v2451_v57 = vpop.f32.mrf.mxu1  ;;  %2937 = vmatpush.bf16.msrb.mxu3 %v4144_v12 }
 0x1bb   : > { %v2360_v54 = vadd.f32 %v2359_v23, %v2271_v34  ;;  %2499 = vmatmul.bf16.vlgmr.msra.gmra.mxu2 %v5805_v59  ;;  %2677 = vmatmul.bf16.vlgmr.msra.gmra.mxu0 %v5471_v56 }
 0x1bc   : > { %2588 = vmatmul.bf16.vlgmr.msra.gmra.mxu3 %v5237_v27 }
 0x1bd   : > { %2766 = vmatmul.bf16.vlgmr.msra.gmra.mxu1 %v4862_v24  ;;  %v5811_v3 = vadd.f32 %v2448_v44, %v2360_v54 }
 0x1be   : > { %v2184_v29 = vpop.f32.mrf.mxu2 }
 0x1bf   : > { %v2185_v45 = vadd.f32 %v2184_v29, %v5461_v13  ;;  %v2273_v17 = vpop.f32.mrf.mxu3 }
 0x1c0   : > { %v2364_v14 = vpop.f32.mrf.mxu0 }
 0x1c1   : > { %v2274_v61 = vadd.f32 %v2273_v17, %v2185_v45 }
 0x1c2   : > { %v2453_v19 = vpop.f32.mrf.mxu1 }
 0x1c3   : > { %v2363_v23 = vadd.f32 %v2362_v6, %v2274_v61  ;;  %v4668_v6 = vld [vmem:[#allocation2 + $0x264] sm:$0xf] }
 0x1c5   : > { %v5814_v20 = vadd.f32 %v2451_v57, %v2363_v23  ;;  %v5824_v57 = vld [vmem:[%s5100_s10 + $0xc] sm:$0xff] }
 0x1c6   : > { %v2186_v44 = vpop.f32.mrf.mxu2 }
 0x1c7   : > { %v2187_v28 = vadd.f32 %v2186_v44, %v5469_v31  ;;  %v2275_v34 = vpop.f32.mrf.mxu3  ;;  %v4272_v31 = vor.u32 %v4668_v6, %v4269_v21  ;;  %v4133_v6 = vld [vmem:[#allocation2 + $0x158] sm:$0xf0] }
 0x1c8   : > { %v2367_v13 = vpop.f32.mrf.mxu0 }
 0x1c9   : > { %v2276_v54 = vadd.f32 %v2275_v34, %v2187_v28  ;;  %3115 = vmatpush.bf16.msrb.mxu1 %v4272_v31 }
 0x1ca   : > { %v2456_v24 = vpop.f32.mrf.mxu1 }
 0x1cb   : > { %v2365_v48 = vadd.f32 %v2364_v14, %v2276_v54  ;;  %2504 = vmatmul.bf16.gmra.mxu2 %v5818_v11  ;;  %2682 = vmatmul.bf16.gmra.mxu0 %v5492_v38  ;;  %v4865_v54 = vld [vmem:[%s5100_s10 + $0x30] sm:$0xff] }
 0x1cc   : > { %2593 = vmatmul.bf16.gmra.mxu3 %v5281_v43 }
 0x1cd   : > { %2771 = vmatmul.bf16.gmra.mxu1 %v5824_v57  ;;  %v5827_v37 = vadd.f32 %v2453_v19, %v2365_v48 }
 0x1ce   : > { %v2189_v5 = vpop.f32.mrf.mxu2 }
 0x1cf   : > { %v2190_v29 = vadd.f32 %v2189_v5, %v5482_v35  ;;  %v2278_v12 = vpop.f32.mrf.mxu3  ;;  %v4618_v35 = vld [vmem:[#allocation2 + $0xd4] sm:$0xf] }
 0x1d0   : > { %v2369_v45 = vpop.f32.mrf.mxu0 }
 0x1d1   : > { %v2279_v17 = vadd.f32 %v2278_v12, %v2190_v29 }
 0x1d2   : > { %v2458_v14 = vpop.f32.mrf.mxu1 }
 0x1d3   : > { %v2368_v61 = vadd.f32 %v2367_v13, %v2279_v17  ;;  %v4069_v13 = vld [vmem:[#allocation2 + $0xd8] sm:$0xf0] }
 0x1d4   : > { %v4072_v48 = vor.u32 %v4618_v35, %v4069_v13 }
 0x1d5   : > { %v5830_v23 = vadd.f32 %v2456_v24, %v2368_v61  ;;  %v4634_v24 = vld [vmem:[#allocation2 + $0x154] sm:$0xf] }
 0x1d6   : > { %v2191_v4 = vpop.f32.mrf.mxu2  ;;  %v4136_v31 = vor.u32 %v4634_v24, %v4133_v6  ;;  %2849 = vmatpush.bf16.msrb.mxu2 %v4072_v48  ;;  %v5844_v48 = vld [vmem:[%s5100_s10 + $0x3c] sm:$0xff] }
 0x1d7   : > { %v2192_v46 = vadd.f32 %v2191_v4, %v5490_v1  ;;  %v2280_v25 = vpop.f32.mrf.mxu3  ;;  %v4197_v4 = vld [vmem:[#allocation2 + $0x1d8] sm:$0xf0] }
 0x1d8   : > { %v2372_v44 = vpop.f32.mrf.mxu0  ;;  %2938 = vmatpush.bf16.msrb.mxu3 %v4136_v31  ;;  %v4261_v6 = vld [vmem:[#allocation2 + $0x258] sm:$0xf0] }
 0x1d9   : > { %v2281_v28 = vadd.f32 %v2280_v25, %v2192_v46 }
 0x1da   : > { %v2461_v19 = vpop.f32.mrf.mxu1 }
 0x1db   : > { %v2370_v34 = vadd.f32 %v2369_v45, %v2281_v28  ;;  %2509 = vmatmul.bf16.gmra.mxu2 %v4865_v54  ;;  %2687 = vmatmul.bf16.gmra.mxu0 %v5513_v36 }
 0x1dc   : > { %2598 = vmatmul.bf16.gmra.mxu3 %v5324_v2 }
 0x1dd   : > { %2776 = vmatmul.bf16.gmra.mxu1 %v5805_v59  ;;  %v5837_v21 = vadd.f32 %v2458_v14, %v2370_v34  ;;  %v4650_v59 = vld [vmem:[#allocation2 + $0x1d4] sm:$0xf] }
 0x1de   : > { %v2194_v1 = vpop.f32.mrf.mxu2  ;;  %v4200_v46 = vor.u32 %v4650_v59, %v4197_v4 }
 0x1df   : > { %v2195_v5 = vadd.f32 %v2194_v1, %v5503_v63  ;;  %v2283_v29 = vpop.f32.mrf.mxu3 }
 0x1e0   : > { %v2374_v12 = vpop.f32.mrf.mxu0  ;;  %3027 = vmatpush.bf16.msrb.mxu0 %v4200_v46 }
 0x1e1   : > { %v2284_v45 = vadd.f32 %v2283_v29, %v2195_v5 }
 0x1e2   : > { %v2463_v17 = vpop.f32.mrf.mxu1 }
 0x1e3   : > { %v2373_v61 = vadd.f32 %v2372_v44, %v2284_v45  ;;  %v4666_v44 = vld [vmem:[#allocation2 + $0x254] sm:$0xf] }
 0x1e5   : > { %v5840_v25 = vadd.f32 %v2461_v19, %v2373_v61  ;;  %v4264_v19 = vor.u32 %v4666_v44, %v4261_v6  ;;  %v4125_v44 = vld [vmem:[#allocation2 + $0x148] sm:$0xf0] }
 0x1e6   : > { %v2196_v28 = vpop.f32.mrf.mxu2 }
 0x1e7   : > { %v2197_v14 = vadd.f32 %v2196_v28, %v5511_v58  ;;  %v2285_v34 = vpop.f32.mrf.mxu3  ;;  %3116 = vmatpush.bf16.msrb.mxu1 %v4264_v19 }
 0x1e8   : > { %v2377_v35 = vpop.f32.mrf.mxu0 }
 0x1e9   : > { %v2286_v63 = vadd.f32 %v2285_v34, %v2197_v14 }
 0x1ea   : > { %v2466_v13 = vpop.f32.mrf.mxu1 }
 0x1eb   : > { %v2375_v24 = vadd.f32 %v2374_v12, %v2286_v63  ;;  %2514 = vmatmul.bf16.gmra.mxu2 %v5844_v48  ;;  %2692 = vmatmul.bf16.gmra.mxu0 %v5534_v15  ;;  %v4867_v63 = vld [vmem:[%s5100_s10 + $0x48] sm:$0xff] }
 0x1ec   : > { %2603 = vmatmul.bf16.gmra.mxu3 %v5368_v50 }
 0x1ed   : > { %2781 = vmatmul.bf16.gmra.mxu1 %v5818_v11  ;;  %v5850_v1 = vadd.f32 %v2463_v17, %v2375_v24  ;;  %v4061_v24 = vld [vmem:[#allocation2 + $0xc8] sm:$0xf0] }
 0x1ee   : > { %v2199_v58 = vpop.f32.mrf.mxu2 }
 0x1ef   : > { %v2200_v31 = vadd.f32 %v2199_v58, %v5524_v51  ;;  %v2288_v5 = vpop.f32.mrf.mxu3  ;;  %v4616_v51 = vld [vmem:[#allocation2 + $0xc4] sm:$0xf] }
 0x1f0   : > { %v2379_v29 = vpop.f32.mrf.mxu0 }
 0x1f1   : > { %v2289_v12 = vadd.f32 %v2288_v5, %v2200_v31 }
 0x1f2   : > { %v2468_v45 = vpop.f32.mrf.mxu1 }
 0x1f3   : > { %v2378_v61 = vadd.f32 %v2377_v35, %v2289_v12  ;;  %v4632_v35 = vld [vmem:[#allocation2 + $0x144] sm:$0xf] }
 0x1f4   : > { %v4128_v19 = vor.u32 %v4632_v35, %v4125_v44  ;;  %v4868_v44 = vld [vmem:[%s5100_s10 + $0x54] sm:$0xff] }
 0x1f5   : > { %v5853_v59 = vadd.f32 %v2466_v13, %v2378_v61  ;;  %v4064_v13 = vor.u32 %v4616_v51, %v4061_v24 }
 0x1f6   : > { %v2201_v4 = vpop.f32.mrf.mxu2  ;;  %2939 = vmatpush.bf16.msrb.mxu3 %v4128_v19  ;;  %v4664_v19 = vld [vmem:[#allocation2 + $0x244] sm:$0xf] }
 0x1f7   : > { %v2202_v46 = vadd.f32 %v2201_v4, %v5532_v0  ;;  %v2290_v28 = vpop.f32.mrf.mxu3  ;;  %2850 = vmatpush.bf16.msrb.mxu2 %v4064_v13  ;;  %v4189_v4 = vld [vmem:[#allocation2 + $0x1c8] sm:$0xf0] }
 0x1f8   : > { %v2382_v11 = vpop.f32.mrf.mxu0 }
 0x1f9   : > { %v2291_v14 = vadd.f32 %v2290_v28, %v2202_v46 }
 0x1fa   : > { %v2471_v17 = vpop.f32.mrf.mxu1 }
 0x1fb   : > { %v2380_v34 = vadd.f32 %v2379_v29, %v2291_v14  ;;  %2519 = vmatmul.bf16.gmra.mxu2 %v4867_v63  ;;  %2697 = vmatmul.bf16.gmra.mxu0 %v5555_v52 }
 0x1fc   : > { %2608 = vmatmul.bf16.gmra.mxu3 %v5405_v41 }
 0x1fd   : > { %2786 = vmatmul.bf16.gmra.mxu1 %v4865_v54  ;;  %v5859_v6 = vadd.f32 %v2468_v45, %v2380_v34  ;;  %v4648_v54 = vld [vmem:[#allocation2 + $0x1c4] sm:$0xf]  ;;  %v6649_v45 = vld [vmem:[#allocation21_spill] sm:$0xff] }
 0x1fe   : > { %v2204_v0 = vpop.f32.mrf.mxu2  ;;  %v4192_v46 = vor.u32 %v4648_v54, %v4189_v4 }
 0x1ff   : > { %v2205_v58 = vadd.f32 %v2204_v0, %v5545_v10  ;;  %v2293_v31 = vpop.f32.mrf.mxu3  ;;  %v6650_v0 = vld [vmem:[#allocation25_spill] sm:$0xff] }
 0x200   : > { %v2384_v5 = vpop.f32.mrf.mxu0  ;;  %3028 = vmatpush.bf16.msrb.mxu0 %v4192_v46 }
 0x201   : > { %v2294_v29 = vadd.f32 %v2293_v31, %v2205_v58  ;;  %v6651_v58 = vld [vmem:[#allocation18_spill] sm:$0xff] }
 0x202   : > { %v2473_v12 = vpop.f32.mrf.mxu1 }
 0x203   : > { %v2383_v61 = vadd.f32 %v2382_v11, %v2294_v29  ;;  %v4253_v11 = vld [vmem:[#allocation2 + $0x248] sm:$0xf0] }
 0x205   : > { %v5862_v28 = vadd.f32 %v2471_v17, %v2383_v61  ;;  %v4256_v17 = vor.u32 %v4664_v19, %v4253_v11  ;;  %v6652_v61 = vld [vmem:[#allocation23_spill] sm:$0xff]  ;;  %v6656_v11 = vld [vmem:[#allocation28_spill] sm:$0xff] }
 0x206   : > { %v2206_v14 = vpop.f32.mrf.mxu2 }
 0x207   : > { %v2207_v34 = vadd.f32 %v2206_v14, %v6649_v45  ;;  %v2295_v51 = vpop.f32.mrf.mxu3  ;;  %3117 = vmatpush.bf16.msrb.mxu1 %v4256_v17  ;;  %v6657_v17 = vld [vmem:[#allocation8_spill] sm:$0xff] }
 0x208   : > { %v2387_v24 = vpop.f32.mrf.mxu0 }
 0x209   : > { %v2296_v10 = vadd.f32 %v2295_v51, %v2207_v34 }
 0x20a   : > { %v2476_v35 = vpop.f32.mrf.mxu1 }
 0x20b   : > { %v2385_v13 = vadd.f32 %v2384_v5, %v2296_v10  ;;  %2524 = vmatmul.bf16.gmra.mxu2 %v4868_v44  ;;  %2702 = vmatmul.bf16.gmra.mxu0 %v6650_v0  ;;  %v6654_v10 = vld [vmem:[#allocation24_spill] sm:$0xff] }
 0x20c   : > { %2613 = vmatmul.bf16.gmra.mxu3 %v6651_v58 }
 0x20d   : > { %2791 = vmatmul.bf16.gmra.mxu1 %v5844_v48  ;;  %v5869_v31 = vadd.f32 %v2473_v12, %v2385_v13  ;;  %v6655_v13 = vld [vmem:[#allocation29_spill] sm:$0xff] }
 0x20e   : > { %v2209_v29 = vpop.f32.mrf.mxu2 }
 0x20f   : > { %v2210_v54 = vadd.f32 %v2209_v29, %v6652_v61  ;;  %v2298_v4 = vpop.f32.mrf.mxu3  ;;  %v4614_v29 = vld [vmem:[#allocation2 + $0xb4] sm:$0xf]  ;;  %v4053_v61 = vld [vmem:[#allocation2 + $0xb8] sm:$0xf0] }
 0x210   : > { %v2389_v46 = vpop.f32.mrf.mxu0 }
 0x211   : > { %v2299_v5 = vadd.f32 %v2298_v4, %v2210_v54  ;;  %v4117_v54 = vld [vmem:[#allocation2 + $0x138] sm:$0xf0] }
 0x212   : > { %v2478_v14 = vpop.f32.mrf.mxu1 }
 0x213   : > { %v2388_v45 = vadd.f32 %v2387_v24, %v2299_v5  ;;  %v4630_v24 = vld [vmem:[#allocation2 + $0x134] sm:$0xf] }
 0x215   : > { %v5872_v34 = vadd.f32 %v2476_v35, %v2388_v45  ;;  %v4056_v35 = vor.u32 %v4614_v29, %v4053_v61  ;;  %v4120_v45 = vor.u32 %v4630_v24, %v4117_v54  ;;  %v4181_v24 = vld [vmem:[#allocation2 + $0x1b8] sm:$0xf0] }
 0x216   : > { %v2211_v51 = vpop.f32.mrf.mxu2 }
 0x217   : > { %6653 = vst [vmem:[#allocation21_spill] sm:$0xff] %v5872_v34  ;;  %v2212_v0 = vadd.f32 %v2211_v51, %v6654_v10  ;;  %v2300_v58 = vpop.f32.mrf.mxu3  ;;  %v6659_v51 = vld [vmem:[#allocation26_spill] sm:$0xff]  ;;  %2851 = vmatpush.bf16.msrb.mxu2 %v4056_v35  ;;  %2940 = vmatpush.bf16.msrb.mxu3 %v4120_v45 }
 0x218   : > { %v2392_v52 = vpop.f32.mrf.mxu0  ;;  %v6662_v35 = vld [vmem:[#allocation10_spill] sm:$0xff] }
 0x219   : > { %v2301_v48 = vadd.f32 %v2300_v58, %v2212_v0 }
 0x21a   : > { %v2481_v19 = vpop.f32.mrf.mxu1 }
 0x21b   : > { %v2390_v12 = vadd.f32 %v2389_v46, %v2301_v48  ;;  %2529 = vmatmul.bf16.gmra.mxu2 %v6655_v13  ;;  %2707 = vmatmul.bf16.gmra.mxu0 %v6656_v11 }
 0x21c   : > { %2618 = vmatmul.bf16.gmra.mxu3 %v6657_v17  ;;  %v6660_v17 = vld [vmem:[#allocation27_spill] sm:$0xff] }
 0x21d   : > { %2796 = vmatmul.bf16.gmra.mxu1 %v4867_v63  ;;  %v5878_v4 = vadd.f32 %v2478_v14, %v2390_v12 }
 0x21e   : > { %v2214_v5 = vpop.f32.mrf.mxu2 }
 0x21f   : > { %6658 = vst [vmem:[#allocation23_spill] sm:$0xff] %v5878_v4  ;;  %v2215_v0 = vadd.f32 %v2214_v5, %v6659_v51  ;;  %v2303_v58 = vpop.f32.mrf.mxu3  ;;  %v4646_v4 = vld [vmem:[#allocation2 + $0x1b4] sm:$0xf]  ;;  %v6661_v51 = vld [vmem:[#allocation33_spill] sm:$0xff] }
 0x220   : > { %v2394_v46 = vpop.f32.mrf.mxu0  ;;  %v4184_v54 = vor.u32 %v4646_v4, %v4181_v24  ;;  %v4245_v4 = vld [vmem:[#allocation2 + $0x238] sm:$0xf0] }
 0x221   : > { %v2304_v10 = vadd.f32 %v2303_v58, %v2215_v0 }
 0x222   : > { %v2483_v48 = vpop.f32.mrf.mxu1  ;;  %3029 = vmatpush.bf16.msrb.mxu0 %v4184_v54 }
 0x223   : > { %v2393_v13 = vadd.f32 %v2392_v52, %v2304_v10 }
 0x225   : > { %v5881_v11 = vadd.f32 %v2481_v19, %v2393_v13  ;;  %v4662_v13 = vld [vmem:[#allocation2 + $0x234] sm:$0xf] }
 0x226   : > { %v2216_v63 = vpop.f32.mrf.mxu2 }
 0x227   : > { %v2217_v34 = vadd.f32 %v2216_v63, %v6660_v17  ;;  %v2305_v29 = vpop.f32.mrf.mxu3  ;;  %v6663_v17 = vld [vmem:[#allocation30_spill] sm:$0xff] }
 0x228   : > { %v2397_v61 = vpop.f32.mrf.mxu0 }
 0x229   : > { %v2306_v14 = vadd.f32 %v2305_v29, %v2217_v34 }
 0x22a   : > { %v2486_v12 = vpop.f32.mrf.mxu1 }
 0x22b   : > { %v2395_v5 = vadd.f32 %v2394_v46, %v2306_v14  ;;  %2534 = vmatmul.bf16.gmra.mxu2 %v6661_v51  ;;  %2712 = vmatmul.bf16.gmra.mxu0 %v5621_v7  ;;  %v4248_v46 = vor.u32 %v4662_v13, %v4245_v4  ;;  %v4612_v4 = vld [vmem:[#allocation2 + $0xa4] sm:$0xf] }
 0x22c   : > { %2623 = vmatmul.bf16.gmra.mxu3 %v6662_v35 }
 0x22d   : > { %2801 = vmatmul.bf16.gmra.mxu1 %v4868_v44  ;;  %v5887_v52 = vadd.f32 %v2483_v48, %v2395_v5  ;;  %v6664_v44 = vld [vmem:[#allocation31_spill] sm:$0xff] }
 0x22e   : > { %v2219_v19 = vpop.f32.mrf.mxu2  ;;  %3118 = vmatpush.bf16.msrb.mxu1 %v4248_v46  ;;  %v4045_v46 = vld [vmem:[#allocation2 + $0xa8] sm:$0xf0] }
 0x22f   : > { %v2220_v45 = vadd.f32 %v2219_v19, %v6663_v17  ;;  %v2308_v0 = vpop.f32.mrf.mxu3 }
 0x230   : > { %v2399_v34 = vpop.f32.mrf.mxu0 }
 0x231   : > { %v2309_v58 = vadd.f32 %v2308_v0, %v2220_v45 }
 0x232   : > { %v2488_v10 = vpop.f32.mrf.mxu1 }
 0x233   : > { %v2398_v63 = vadd.f32 %v2397_v61, %v2309_v58  ;;  %v4869_v61 = vld [vmem:[%s5100_s10 + $0x60] sm:$0xff] }
 0x235   : > { %v5890_v29 = vadd.f32 %v2486_v12, %v2398_v63  ;;  %v4628_v63 = vld [vmem:[#allocation2 + $0x124] sm:$0xf] }
 0x236   : > { %v2221_v14 = vpop.f32.mrf.mxu2 }
 0x237   : > { %v2222_v48 = vadd.f32 %v2221_v14, %v6664_v44  ;;  %v2310_v24 = vpop.f32.mrf.mxu3  ;;  %v4048_v14 = vor.u32 %v4612_v4, %v4045_v46 }
 0x238   : > { %v2678_v54 = vpop.f32.mrf.mxu0 }
 0x239   : > { %v2311_v5 = vadd.f32 %v2310_v24, %v2222_v48  ;;  %2852 = vmatpush.bf16.msrb.mxu2 %v4048_v14  ;;  %v6668_v14 = vld [vmem:[#allocation38_spill] sm:$0xff] }
 0x23a   : > { %v5893_v51 = vpop.f32.mrf.mxu1 }
 0x23b   : > { %v2400_v19 = vadd.f32 %v2399_v34, %v2311_v5  ;;  %2539 = vmatmul.bf16.gmra.mxu2 %v5647_v32  ;;  %2717 = vmatmul.bf16.gmra.mxu0 %v5641_v8  ;;  %v5906_v34 = vld [vmem:[%s6528_s2] ss:$0 sm:$0xff] }
 0x23c   : > { %2628 = vmatmul.bf16.gmra.mxu3 %v5235_v26 }
 0x23d   : > { %2806 = vmatmul.bf16.gmra.mxu1 %v4869_v61  ;;  %v5899_v12 = vadd.f32 %v2488_v10, %v2400_v19  ;;  %v4109_v10 = vld [vmem:[#allocation2 + $0x128] sm:$0xf0]  ;;  %v6666_v19 = vld [vmem:[#allocation35_spill] sm:$0xff] }
 0x23e   : > { %v2500_v17 = vpop.f32.mrf.mxu2 }
 0x23f   : > { %v2501_v45 = vadd.f32 %v2500_v17, %v5638_v53  ;;  %v2589_v0 = vpop.f32.mrf.mxu3  ;;  %v4112_v53 = vor.u32 %v4628_v63, %v4109_v10  ;;  %v6669_v10 = vld [vmem:[#allocation37_spill] sm:$0xff] }
 0x240   : > { %v2680_v32 = vpop.f32.mrf.mxu0 }
 0x241   : > { %v2590_v58 = vadd.f32 %v2589_v0, %v2501_v45  ;;  %2941 = vmatpush.bf16.msrb.mxu3 %v4112_v53  ;;  %v5923_v53 = vld [vmem:[%s5100_s10 + $0x6c] sm:$0xff] }
 0x242   : > { %v5908_v13 = vpop.f32.mrf.mxu1 }
 0x243   : > { %6665 = vst [vmem:[#allocation24_spill] sm:$0xff] %v5908_v13  ;;  %v2679_v44 = vadd.f32 %v2678_v54, %v2590_v58  ;;  %v4644_v54 = vld [vmem:[#allocation2 + $0x1a4] sm:$0xf]  ;;  %v4173_v58 = vld [vmem:[#allocation2 + $0x1a8] sm:$0xf0] }
 0x244   : > { %v4176_v46 = vor.u32 %v4644_v54, %v4173_v58  ;;  %v4660_v58 = vld [vmem:[#allocation2 + $0x224] sm:$0xf] }
 0x245   : > { %v3563_v48 = vadd.f32 %v5906_v34, %v2679_v44  ;;  %v6670_v44 = vld [vmem:[#allocation13_spill] sm:$0xff] }
 0x246   : > { %v2502_v24 = vpop.f32.mrf.mxu2  ;;  %3030 = vmatpush.bf16.msrb.mxu0 %v4176_v46 }
 0x247   : > { %v3595_v5 = vmax.f32 %v3563_v48, 0.0  ;;  %v2503_v61 = vadd.f32 %v2502_v24, %v6666_v19  ;;  %v2591_v17 = vpop.f32.mrf.mxu3  ;;  %v6671_v19 = vld [vmem:[#allocation36_spill] sm:$0xff] }
 0x248   : > { %v2683_v45 = vpop.f32.mrf.mxu0 }
 0x249   : > { %3627 = vst [vmem:[%s5914_s23] sm:$0xff] %v3595_v5  ;;  %v2592_v0 = vadd.f32 %v2591_v17, %v2503_v61 }
 0x24a   : > { %v5917_v4 = vpop.f32.mrf.mxu1 }
 0x24b   : > { %6667 = vst [vmem:[#allocation29_spill] sm:$0xff] %v5917_v4  ;;  %v2681_v63 = vadd.f32 %v2680_v32, %v2592_v0  ;;  %2544 = vmatmul.bf16.gmra.mxu2 %v6668_v14  ;;  %2722 = vmatmul.bf16.gmra.mxu0 %v6669_v10  ;;  %v4237_v14 = vld [vmem:[#allocation2 + $0x228] sm:$0xf0] }
 0x24c   : > { %2633 = vmatmul.bf16.gmra.mxu3 %v6670_v44  ;;  %v4240_v10 = vor.u32 %v4660_v58, %v4237_v14  ;;  %v6676_v58 = vld [vmem:[#allocation41_spill] sm:$0xff] }
 0x24d   : > { %2811 = vmatmul.bf16.gmra.mxu1 %v5923_v53  ;;  %v3564_v48 = vadd.f32 %v5906_v34, %v2681_v63 }
 0x24e   : > { %v2505_v24 = vpop.f32.mrf.mxu2  ;;  %3119 = vmatpush.bf16.msrb.mxu1 %v4240_v10  ;;  %v4871_v10 = vld [vmem:[%s5100_s10 + $0x78] sm:$0xff] }
 0x24f   : > { %v3596_v5 = vmax.f32 %v3564_v48, 0.0  ;;  %v2506_v61 = vadd.f32 %v2505_v24, %v6671_v19  ;;  %v2594_v17 = vpop.f32.mrf.mxu3  ;;  %v6673_v48 = vld [vmem:[#allocation39_spill] sm:$0xff] }
 0x250   : > { %v2685_v32 = vpop.f32.mrf.mxu0 }
 0x251   : > { %3628 = vst [vmem:[%s5914_s23 + $0x8] sm:$0xff] %v3596_v5  ;;  %v2595_v0 = vadd.f32 %v2594_v17, %v2506_v61 }
 0x252   : > { %v5929_v54 = vpop.f32.mrf.mxu1 }
 0x253   : > { %6672 = vst [vmem:[#allocation26_spill] sm:$0xff] %v5929_v54  ;;  %v2684_v44 = vadd.f32 %v2683_v45, %v2595_v0  ;;  %v6675_v54 = vld [vmem:[#allocation42_spill] sm:$0xff] }
 0x254   : > { %v6677_v45 = vld [vmem:[#allocation14_spill] sm:$0xff] }
 0x255   : > { %v3565_v63 = vadd.f32 %v5906_v34, %v2684_v44 }
 0x256   : > { %v2507_v46 = vpop.f32.mrf.mxu2 }
 0x257   : > { %v3597_v8 = vmax.f32 %v3565_v63, 0.0  ;;  %v2508_v4 = vadd.f32 %v2507_v46, %v6673_v48  ;;  %v2596_v24 = vpop.f32.mrf.mxu3  ;;  %v6678_v63 = vld [vmem:[#allocation40_spill] sm:$0xff] }
 0x258   : > { %v2688_v19 = vpop.f32.mrf.mxu0 }
 0x259   : > { %3629 = vst [vmem:[%s5914_s23 + $0x20] sm:$0xff] %v3597_v8  ;;  %v2597_v5 = vadd.f32 %v2596_v24, %v2508_v4 }
 0x25a   : > { %v5934_v61 = vpop.f32.mrf.mxu1 }
 0x25b   : > { %6674 = vst [vmem:[#allocation27_spill] sm:$0xff] %v5934_v61  ;;  %v2686_v17 = vadd.f32 %v2685_v32, %v2597_v5  ;;  %2549 = vmatmul.bf16.gmra.mxu2 %v6675_v54  ;;  %2727 = vmatmul.bf16.gmra.mxu0 %v6676_v58  ;;  %v4610_v32 = vld [vmem:[#allocation2 + $0x94] sm:$0xf]  ;;  %v4037_v54 = vld [vmem:[#allocation2 + $0x98] sm:$0xf0] }
 0x25c   : > { %2638 = vmatmul.bf16.gmra.mxu3 %v6677_v45  ;;  %v4040_v5 = vor.u32 %v4610_v32, %v4037_v54  ;;  %v4626_v58 = vld [vmem:[#allocation2 + $0x114] sm:$0xf]  ;;  %v4101_v45 = vld [vmem:[#allocation2 + $0x118] sm:$0xf0] }
 0x25d   : > { %2816 = vmatmul.bf16.gmra.mxu1 %v4871_v10  ;;  %v3566_v44 = vadd.f32 %v5906_v34, %v2686_v17  ;;  %v4104_v10 = vor.u32 %v4626_v58, %v4101_v45  ;;  %v4642_v32 = vld [vmem:[#allocation2 + $0x194] sm:$0xf]  ;;  %v4165_v54 = vld [vmem:[#allocation2 + $0x198] sm:$0xf0] }
 0x25e   : > { %v2510_v0 = vpop.f32.mrf.mxu2  ;;  %2853 = vmatpush.bf16.msrb.mxu2 %v4040_v5  ;;  %v6682_v45 = vld [vmem:[#allocation46_spill] sm:$0xff]  ;;  %v5954_v5 = vld [vmem:[%s5100_s10 + $0x84] sm:$0xff] }
 0x25f   : > { %v3598_v14 = vmax.f32 %v3566_v44, 0.0  ;;  %v2511_v46 = vadd.f32 %v2510_v0, %v6678_v63  ;;  %v2599_v48 = vpop.f32.mrf.mxu3  ;;  %2942 = vmatpush.bf16.msrb.mxu3 %v4104_v10  ;;  %v6680_v63 = vld [vmem:[#allocation43_spill] sm:$0xff]  ;;  %6685 = vst [vmem:[#allocation31_spill] sm:$0xff] %v5954_v5 }
 0x260   : > { %v2690_v8 = vpop.f32.mrf.mxu0 }
 0x261   : > { %3630 = vst [vmem:[%s5914_s23 + $0x28] sm:$0xff] %v3598_v14  ;;  %v2600_v4 = vadd.f32 %v2599_v48, %v2511_v46 }
 0x262   : > { %v5943_v24 = vpop.f32.mrf.mxu1 }
 0x263   : > { %6679 = vst [vmem:[#allocation33_spill] sm:$0xff] %v5943_v24  ;;  %v2689_v61 = vadd.f32 %v2688_v19, %v2600_v4  ;;  %v4168_v19 = vor.u32 %v4642_v32, %v4165_v54  ;;  %v6684_v4 = vld [vmem:[#allocation15_spill] sm:$0xff]  ;;  %v4658_v32 = vld [vmem:[#allocation2 + $0x214] sm:$0xf] }
 0x264   : > { %v4229_v54 = vld [vmem:[#allocation2 + $0x218] sm:$0xf0] }
 0x265   : > { %v3567_v17 = vadd.f32 %v5906_v34, %v2689_v61  ;;  %v6683_v61 = vld [vmem:[#allocation45_spill] sm:$0xff]  ;;  %3031 = vmatpush.bf16.msrb.mxu0 %v4168_v19 }
 0x266   : > { %v2512_v44 = vpop.f32.mrf.mxu2 }
 0x267   : > { %v3599_v0 = vmax.f32 %v3567_v17, 0.0  ;;  %v2513_v14 = vadd.f32 %v2512_v44, %v6680_v63  ;;  %v2601_v46 = vpop.f32.mrf.mxu3 }
 0x268   : > { %v2693_v48 = vpop.f32.mrf.mxu0 }
 0x269   : > { %3631 = vst [vmem:[%s5914_s23 + $0x40] sm:$0xff] %v3599_v0  ;;  %v2602_v24 = vadd.f32 %v2601_v46, %v2513_v14  ;;  %v6686_v0 = vld [vmem:[#allocation44_spill] sm:$0xff] }
 0x26a   : > { %v5948_v26 = vpop.f32.mrf.mxu1 }
 0x26b   : > { %6681 = vst [vmem:[#allocation30_spill] sm:$0xff] %v5948_v26  ;;  %v2691_v58 = vadd.f32 %v2690_v8, %v2602_v24  ;;  %2554 = vmatmul.bf16.gmra.mxu2 %v6682_v45  ;;  %2732 = vmatmul.bf16.gmra.mxu0 %v6683_v61  ;;  %v4232_v45 = vor.u32 %v4658_v32, %v4229_v54 }
 0x26c   : > { %2643 = vmatmul.bf16.gmra.mxu3 %v6684_v4 }
 0x26d   : > { %2821 = vmatmul.bf16.gmra.mxu1 %v5954_v5  ;;  %v3568_v10 = vadd.f32 %v5906_v34, %v2691_v58  ;;  %v258_v5 = vld [vmem:[%s5100_s10 + $0xd4] sm:$0x1] }
 0x26e   : > { %v2515_v17 = vpop.f32.mrf.mxu2  ;;  %3120 = vmatpush.bf16.msrb.mxu1 %v4232_v45  ;;  %v6693_v45 = vld [vmem:[#allocation48_spill] sm:$0xff] }
 0x26f   : > { %v3600_v44 = vmax.f32 %v3568_v10, 0.0  ;;  %v2516_v63 = vadd.f32 %v2515_v17, %v6686_v0  ;;  %v2604_v14 = vpop.f32.mrf.mxu3  ;;  %v6688_v10 = vld [vmem:[#allocation47_spill] sm:$0xff] }
 0x270   : > { %v2695_v8 = vpop.f32.mrf.mxu0 }
 0x271   : > { %3632 = vst [vmem:[%s5914_s23 + $0x48] sm:$0xff] %v3600_v44  ;;  %v2605_v24 = vadd.f32 %v2604_v14, %v2516_v63 }
 0x272   : > { %v5960_v46 = vpop.f32.mrf.mxu1 }
 0x273   : > { %6687 = vst [vmem:[#allocation35_spill] sm:$0xff] %v5960_v46  ;;  %v2694_v61 = vadd.f32 %v2693_v48, %v2605_v24  ;;  %v6690_v46 = vld [vmem:[#allocation50_spill] sm:$0xff]  ;;  %v6691_v48 = vld [vmem:[#allocation16_spill] sm:$0xff] }
 0x274   : > { %v5971_v24 = vld [vmem:[%s5100_s10 + $0x90] sm:$0xff] }
 0x275   : > { %v3569_v58 = vadd.f32 %v5906_v34, %v2694_v61  ;;  %6692 = vst [vmem:[#allocation36_spill] sm:$0xff] %v5971_v24 }
 0x276   : > { %v2517_v19 = vpop.f32.mrf.mxu2 }
 0x277   : > { %v3601_v4 = vmax.f32 %v3569_v58, 0.0  ;;  %v2518_v26 = vadd.f32 %v2517_v19, %v6688_v10  ;;  %v2606_v17 = vpop.f32.mrf.mxu3  ;;  %v4029_v10 = vld [vmem:[#allocation2 + $0x88] sm:$0xf0] }
 0x278   : > { %v2698_v0 = vpop.f32.mrf.mxu0 }
 0x279   : > { %3633 = vst [vmem:[%s5914_s23 + $0x60] sm:$0xff] %v3601_v4  ;;  %v2607_v44 = vadd.f32 %v2606_v17, %v2518_v26 }
 0x27a   : > { %v5965_v63 = vpop.f32.mrf.mxu1 }
 0x27b   : > { %6689 = vst [vmem:[#allocation38_spill] sm:$0xff] %v5965_v63  ;;  %v2696_v14 = vadd.f32 %v2695_v8, %v2607_v44  ;;  %2559 = vmatmul.bf16.gmra.mxu2 %v6690_v46  ;;  %2737 = vmatmul.bf16.gmra.mxu0 %v5729_v39  ;;  %v4608_v46 = vld [vmem:[#allocation2 + $0x84] sm:$0xf]  ;;  %v4093_v39 = vld [vmem:[#allocation2 + $0x108] sm:$0xf0] }
 0x27c   : > { %2648 = vmatmul.bf16.gmra.mxu3 %v6691_v48  ;;  %v4032_v17 = vor.u32 %v4608_v46, %v4029_v10  ;;  %v4624_v44 = vld [vmem:[#allocation2 + $0x104] sm:$0xf] }
 0x27d   : > { %2826 = vmatmul.bf16.gmra.mxu1 %v5971_v24  ;;  %v3570_v61 = vadd.f32 %v5906_v34, %v2696_v14  ;;  %v4096_v63 = vor.u32 %v4624_v44, %v4093_v39  ;;  %v4640_v10 = vld [vmem:[#allocation2 + $0x184] sm:$0xf]  ;;  %v257_v44 = vld [vmem:[%s5100_s10 + $0xd0] sm:$0xf] }
 0x27e   : > { %v2520_v32 = vpop.f32.mrf.mxu2  ;;  %2854 = vmatpush.bf16.msrb.mxu2 %v4032_v17  ;;  %v256_v17 = vld [vmem:[%s5100_s10 + $0xcc] sm:$0xf]  ;;  %v872_v7 = vrot.slane %v257_v44, 5 }
 0x27f   : > { %v3602_v54 = vmax.f32 %v3570_v61, 0.0  ;;  %v2521_v4 = vadd.f32 %v2520_v32, %v6693_v45  ;;  %v2609_v26 = vpop.f32.mrf.mxu3  ;;  %2943 = vmatpush.bf16.msrb.mxu3 %v4096_v63  ;;  %v6695_v45 = vld [vmem:[#allocation51_spill] sm:$0xff] }
 0x280   : > { %v2700_v58 = vpop.f32.mrf.mxu0  ;;  %v5988_v63 = vld [vmem:[%s5100_s10 + $0x9c] sm:$0xff] }
 0x281   : > { %3634 = vst [vmem:[%s5914_s23 + $0x68] sm:$0xff] %v3602_v54  ;;  %v2610_v8 = vadd.f32 %v2609_v26, %v2521_v4 }
 0x282   : > { %v5977_v19 = vpop.f32.mrf.mxu1  ;;  %6697 = vst [vmem:[#allocation40_spill] sm:$0xff] %v5988_v63 }
 0x283   : > { %6694 = vst [vmem:[#allocation39_spill] sm:$0xff] %v5977_v19  ;;  %v2699_v48 = vadd.f32 %v2698_v0, %v2610_v8  ;;  %v4157_v0 = vld [vmem:[#allocation2 + $0x188] sm:$0xf0] }
 0x284   : > { %v4160_v39 = vor.u32 %v4640_v10, %v4157_v0  ;;  %v4656_v0 = vld [vmem:[#allocation2 + $0x204] sm:$0xf] }
 0x285   : > { %v3571_v14 = vadd.f32 %v5906_v34, %v2699_v48 }
 0x286   : > { %v2522_v61 = vpop.f32.mrf.mxu2  ;;  %3032 = vmatpush.bf16.msrb.mxu0 %v4160_v39 }
 0x287   : > { %v3603_v32 = vmax.f32 %v3571_v14, 0.0  ;;  %v2523_v54 = vadd.f32 %v2522_v61, %v6695_v45  ;;  %v2611_v4 = vpop.f32.mrf.mxu3  ;;  %v847_v45 = vshll.u32 %v256_v17, 16 }
 0x288   : > { %v2703_v26 = vpop.f32.mrf.mxu0 }
 0x289   : > { %3635 = vst [vmem:[%s5914_s23 + $0x80] sm:$0xff] %v3603_v32  ;;  %v2612_v19 = vadd.f32 %v2611_v4, %v2523_v54  ;;  %v844_v32 = vshrl.u32 %v256_v17, 16  ;;  %v853_v54 = vshll.u32 %v257_v44, 16 }
 0x28a   : > { %v5982_v46 = vpop.f32.mrf.mxu1 }
 0x28b   : > { %6696 = vst [vmem:[#allocation42_spill] sm:$0xff] %v5982_v46  ;;  %v2701_v8 = vadd.f32 %v2700_v58, %v2612_v19  ;;  %2564 = vmatmul.bf16.gmra.mxu2 %v5769_v9  ;;  %2742 = vmatmul.bf16.gmra.mxu0 %v5762_v40  ;;  %v4221_v40 = vld [vmem:[#allocation2 + $0x208] sm:$0xf0]  ;;  %v855_v46 = vrot.slane %v853_v54, 5 }
 0x28c   : > { %2653 = vmatmul.bf16.gmra.mxu3 %v5423_v30  ;;  %v4224_v39 = vor.u32 %v4656_v0, %v4221_v40 }
 0x28d   : > { %2831 = vmatmul.bf16.gmra.mxu1 %v5988_v63  ;;  %v3572_v48 = vadd.f32 %v5906_v34, %v2701_v8  ;;  %v857_v8 = vshrl.u32 %v257_v44, 16  ;;  %v875_v44 = vrot.slane %v258_v5, 5 }
 0x28e   : > { %v2525_v14 = vpop.f32.mrf.mxu2  ;;  %3121 = vmatpush.bf16.msrb.mxu1 %v4224_v39 }
 0x28f   : > { %v3604_v61 = vmax.f32 %v3572_v48, 0.0  ;;  %v2526_v58 = vadd.f32 %v2525_v14, %v5759_v47  ;;  %v2614_v19 = vpop.f32.mrf.mxu3  ;;  %v846_v48 = vrot.slane %v844_v32, 4  ;;  %v849_v14 = vrot.slane %v847_v45, 5  ;;  %v6008_v45 = vld [vmem:[%s5100_s10 + $0xa8] sm:$0xff] }
 0x290   : > { %v2705_v9 = vpop.f32.mrf.mxu0  ;;  %v859_v63 = vrot.slane %v857_v8, 4 }
 0x291   : > { %3636 = vst [vmem:[%s5914_s23 + $0x88] sm:$0xff] %v3604_v61  ;;  %v2615_v4 = vadd.f32 %v2614_v19, %v2526_v58 }
 0x292   : > { %v5996_v10 = vpop.f32.mrf.mxu1  ;;  %v860_v32 = vor.u32 %v859_v63, %v855_v46 }
 0x293   : > { %6698 = vst [vmem:[#allocation43_spill] sm:$0xff] %v5996_v10  ;;  %v2704_v30 = vadd.f32 %v2703_v26, %v2615_v4  ;;  %v850_v26 = vor.u32 %v849_v14, %v846_v48  ;;  %v863_v4 = vshll.u32 %v258_v5, 16 }
 0x294   : > { %v861_v63 = vrot.slane %v860_v32, 4  ;;  %v4702_v32 = vld [vmem:[#allocation2 + $0x374] sm:$0xf] }
 0x295   : > { %v3573_v47 = vadd.f32 %v5906_v34, %v2704_v30  ;;  %v851_v0 = vrot.slane %v850_v26, 4  ;;  %v865_v8 = vrot.slane %v863_v4, 5  ;;  %v4405_v4 = vld [vmem:[#allocation2 + $0x378] sm:$0xf0] }
 0x296   : > { %v2527_v24 = vpop.f32.mrf.mxu2 }
 0x297   : > { %v3605_v61 = vmax.f32 %v3573_v47, 0.0  ;;  %v2528_v58 = vadd.f32 %v2527_v24, %v5773_v42  ;;  %v2616_v19 = vpop.f32.mrf.mxu3  ;;  %v3888_v42 = vrot.slane %v256_v17, 9  ;;  %v874_v24 = vrot.slane %v872_v7, 4 }
 0x298   : > { %v2708_v10 = vpop.f32.mrf.mxu0 }
 0x299   : > { %3637 = vst [vmem:[%s5914_s23 + $0xa0] sm:$0xff] %v3605_v61  ;;  %v2617_v13 = vadd.f32 %v2616_v19, %v2528_v58  ;;  %v873_v47 = vsel %vm5434_vm5, %v3888_v42, %v872_v7  ;;  %v876_v14 = vsel %vm5434_vm5, %v874_v24, %v875_v44  ;;  %v856_v61 = vsel %vm5113_vm2, %v851_v0, %v855_v46  ;;  %v4686_v19 = vld [vmem:[#allocation2 + $0x2f4] sm:$0xf] }
 0x29a   : > { %v6002_v40 = vpop.f32.mrf.mxu1  ;;  %v866_v58 = vsel %vm5113_vm2, %v861_v63, %v865_v8  ;;  %v1090_v55 = vunpack.c.l.b16 %v876_v14  ;;  %v4408_v42 = vor.u32 %v4702_v32, %v4405_v4  ;;  %v1085_v24 = vunpack.c.l.b16 %v856_v61  ;;  %v4591_v8 = vld [vmem:[%s5100_s10 + $0xcc] sm:$0xff]  ;;  %v4469_v14 = vld [vmem:[#allocation2 + $0x3f8] sm:$0xf0] }
 0x29b   : > { %v2706_v30 = vadd.f32 %v2705_v9, %v2617_v13  ;;  %2569 = vmatmul.bf16.gmra.mxu2 %v5790_v49  ;;  %2747 = vmatmul.bf16.gmra.mxu0 %v5792_v60  ;;  %v1086_v44 = vunpack.c.l.b16 %v866_v58  ;;  %v4710_v60 = vld [vmem:[#allocation2 + $0x3b4] sm:$0xf] }
 0x29c   : > { %2658 = vmatmul.bf16.gmra.mxu3 %v5787_v18 }
 0x29d   : > { %2836 = vmatmul.bf16.gmra.mxu1 %v6008_v45  ;;  %v3574_v54 = vadd.f32 %v5906_v34, %v2706_v30  ;;  %v1089_v30 = vunpack.c.l.b16 %v873_v47  ;;  %3292 = vmatpush.bf16.msra.mxu3 %v4408_v42  ;;  %v4718_v47 = vld [vmem:[#allocation2 + $0x3f4] sm:$0xf] }
 0x29e   : > { %v2530_v13 = vpop.f32.mrf.mxu2 }
 0x29f   : > { %v3606_v9 = vmax.f32 %v3574_v54, 0.0  ;;  %v2531_v49 = vadd.f32 %v2530_v13, %v5784_v16  ;;  %v2619_v39 = vpop.f32.mrf.mxu3  ;;  %v4341_v16 = vld [vmem:[#allocation2 + $0x2f8] sm:$0xf0]  ;;  %v6027_v13 = vpack.c.b16 %v1090_v55, %v1089_v30  ;;  %v4734_v30 = vld [vmem:[#allocation2 + $0x474] sm:$0xf] }
 0x2a0   : > { %v2710_v48 = vpop.f32.mrf.mxu0  ;;  %v4344_v26 = vor.u32 %v4686_v19, %v4341_v16  ;;  %v4533_v55 = vld [vmem:[#allocation2 + $0x478] sm:$0xf0] }
 0x2a1   : > { %3638 = vst [vmem:[%s5914_s23 + $0xa8] sm:$0xff] %v3606_v9  ;;  %v2620_v17 = vadd.f32 %v2619_v39, %v2531_v49  ;;  %v6029_v9 = vpack.c.b16 %v1086_v44, %v1085_v24  ;;  %v4536_v42 = vor.u32 %v4734_v30, %v4533_v55  ;;  %v4700_v30 = vld [vmem:[#allocation2 + $0x364] sm:$0xf]  ;;  %v4397_v55 = vld [vmem:[#allocation2 + $0x368] sm:$0xf0] }
 0x2a2   : > { %v6018_v5 = vpop.f32.mrf.mxu1  ;;  %3203 = vmatpush.bf16.msra.mxu2 %v4344_v26  ;;  %6699 = vst [vmem:[#allocation46_spill] sm:$0xff] %v6027_v13 }
 0x2a3   : > { %v2709_v7 = vadd.f32 %v2708_v10, %v2620_v17  ;;  %6700 = vst [vmem:[#allocation44_spill] sm:$0xff] %v6029_v9  ;;  %v4472_v17 = vor.u32 %v4718_v47, %v4469_v14  ;;  %3470 = vmatpush.bf16.msra.mxu1 %v4536_v42  ;;  %v6701_v47 = vld [vmem:[#allocation9_spill] sm:$0xff]  ;;  %v6703_v14 = vld [vmem:[#allocation11_spill] sm:$0xff] }
 0x2a5   : > { %v3575_v54 = vadd.f32 %v5906_v34, %v2709_v7  ;;  %3381 = vmatpush.bf16.msra.mxu0 %v4472_v17 }
 0x2a6   : > { %v2532_v46 = vpop.f32.mrf.mxu2 }
 0x2a7   : > { %v3607_v62 = vmax.f32 %v3575_v54, 0.0  ;;  %v2533_v0 = vadd.f32 %v2532_v46, %v5798_v22  ;;  %v2621_v63 = vpop.f32.mrf.mxu3  ;;  %v6037_v22 = vld [vmem:[%s5100_s10 + $0xb4] sm:$0xff] }
 0x2a8   : > { %v2713_v10 = vpop.f32.mrf.mxu0 }
 0x2a9   : > { %3639 = vst [vmem:[%s5914_s23 + $0xc0] sm:$0xff] %v3607_v62  ;;  %v2622_v49 = vadd.f32 %v2621_v63, %v2533_v0 }
 0x2aa   : > { %v6032_v39 = vpop.f32.mrf.mxu1 }
 0x2ab   : > { %v2711_v61 = vadd.f32 %v2710_v48, %v2622_v49  ;;  %2574 = vmatmul.bf16.gmra.mxu2 %v4591_v8  ;;  %2752 = vmatmul.bf16.gmra.mxu0 %v6027_v13 }
 0x2ac   : > { %2663 = vmatmul.bf16.gmra.mxu3 %v6029_v9 }
 0x2ad   : > { %2841 = vmatmul.bf16.gmra.mxu1 %v6037_v22  ;;  %v3576_v58 = vadd.f32 %v5906_v34, %v2711_v61 }
 0x2ae   : > { %v2535_v19 = vpop.f32.mrf.mxu2 }
 0x2af   : > { %v3608_v16 = vmax.f32 %v3576_v58, 0.0  ;;  %v2536_v26 = vadd.f32 %v2535_v19, %v5801_v33  ;;  %v2624_v32 = vpop.f32.mrf.mxu3 }
 0x2b0   : > { %v2715_v4 = vpop.f32.mrf.mxu0 }
 0x2b1   : > { %3640 = vst [vmem:[%s5914_s23 + $0xc8] sm:$0xff] %v3608_v16  ;;  %v2625_v48 = vadd.f32 %v2624_v32, %v2536_v26 }
 0x2b2   : > { %v6043_v7 = vpop.f32.mrf.mxu1 }
 0x2b3   : > { %v2714_v24 = vadd.f32 %v2713_v10, %v2625_v48  ;;  %v6702_v10 = vld [vmem:[#allocation19_spill] sm:$0xff]  ;;  %v4333_v48 = vld [vmem:[#allocation2 + $0x2e8] sm:$0xf0] }
 0x2b5   : > { %v3577_v44 = vadd.f32 %v5906_v34, %v2714_v24  ;;  %v4400_v24 = vor.u32 %v4700_v30, %v4397_v55  ;;  %v4525_v30 = vld [vmem:[#allocation2 + $0x468] sm:$0xf0] }
 0x2b6   : > { %v2537_v54 = vpop.f32.mrf.mxu2 }
 0x2b7   : > { %v3609_v46 = vmax.f32 %v3577_v44, 0.0  ;;  %v2538_v62 = vadd.f32 %v2537_v54, %v5811_v3  ;;  %v2626_v0 = vpop.f32.mrf.mxu3  ;;  %3293 = vmatpush.bf16.msra.mxu3 %v4400_v24 }
 0x2b8   : > { %v2718_v33 = vpop.f32.mrf.mxu0 }
 0x2b9   : > { %3641 = vst [vmem:[%s5914_s23 + $0xe0] sm:$0xff] %v3609_v46  ;;  %v2627_v63 = vadd.f32 %v2626_v0, %v2538_v62 }
 0x2ba   : > { %v6048_v8 = vpop.f32.mrf.mxu1 }
 0x2bb   : > { %v2716_v49 = vadd.f32 %v2715_v4, %v2627_v63  ;;  %2855 = vmatmul.bf16.vlgmr.msrb.gmra.mxu2 %v6701_v47  ;;  %3033 = vmatmul.bf16.vlgmr.msrb.gmra.mxu0 %v5824_v57  ;;  %v4684_v4 = vld [vmem:[#allocation2 + $0x2e4] sm:$0xf] }
 0x2bc   : > { %2944 = vmatmul.bf16.vlgmr.msrb.gmra.mxu3 %v6702_v10  ;;  %v4336_v57 = vor.u32 %v4684_v4, %v4333_v48  ;;  %v4716_v47 = vld [vmem:[#allocation2 + $0x3e4] sm:$0xf]  ;;  %v4461_v10 = vld [vmem:[#allocation2 + $0x3e8] sm:$0xf0] }
 0x2bd   : > { %3122 = vmatmul.bf16.vlgmr.msrb.gmra.mxu1 %v6703_v14  ;;  %v3578_v17 = vadd.f32 %v5906_v34, %v2716_v49 }
 0x2be   : > { %v2540_v61 = vpop.f32.mrf.mxu2  ;;  %3204 = vmatpush.bf16.msra.mxu2 %v4336_v57  ;;  %v4732_v57 = vld [vmem:[#allocation2 + $0x464] sm:$0xf] }
 0x2bf   : > { %v3610_v3 = vmax.f32 %v3578_v17, 0.0  ;;  %v2541_v58 = vadd.f32 %v2540_v61, %v5814_v20  ;;  %v2629_v19 = vpop.f32.mrf.mxu3  ;;  %v6066_v61 = vld [vmem:[%s5100_s10 + $0x18] sm:$0xff]  ;;  %v4528_v55 = vor.u32 %v4732_v57, %v4525_v30  ;;  %v4698_v57 = vld [vmem:[#allocation2 + $0x354] sm:$0xf] }
 0x2c0   : > { %v2720_v16 = vpop.f32.mrf.mxu0  ;;  %v4389_v30 = vld [vmem:[#allocation2 + $0x358] sm:$0xf0] }
 0x2c1   : > { %3642 = vst [vmem:[%s5914_s23 + $0xe8] sm:$0xff] %v3610_v3  ;;  %v2630_v26 = vadd.f32 %v2629_v19, %v2541_v58  ;;  %v6704_v3 = vld [vmem:[#allocation20_spill] sm:$0xff]  ;;  %3471 = vmatpush.bf16.msra.mxu1 %v4528_v55 }
 0x2c2   : > { %v6057_v32 = vpop.f32.mrf.mxu1 }
 0x2c3   : > { %v2719_v42 = vadd.f32 %v2718_v33, %v2630_v26  ;;  %v4464_v33 = vor.u32 %v4716_v47, %v4461_v10  ;;  %v6083_v10 = vld [vmem:[%s5100_s10 + $0x24] sm:$0xff] }
 0x2c5   : > { %v3579_v44 = vadd.f32 %v5906_v34, %v2719_v42  ;;  %3382 = vmatpush.bf16.msra.mxu0 %v4464_v33 }
 0x2c6   : > { %v2542_v20 = vpop.f32.mrf.mxu2 }
 0x2c7   : > { %v3611_v54 = vmax.f32 %v3579_v44, 0.0  ;;  %v2543_v46 = vadd.f32 %v2542_v20, %v5827_v37  ;;  %v2631_v62 = vpop.f32.mrf.mxu3 }
 0x2c8   : > { %v2723_v0 = vpop.f32.mrf.mxu0 }
 0x2c9   : > { %3643 = vst [vmem:[%s5914_s23 + $0x100] sm:$0xff] %v3611_v54  ;;  %v2632_v63 = vadd.f32 %v2631_v62, %v2543_v46 }
 0x2ca   : > { %v6062_v49 = vpop.f32.mrf.mxu1 }
 0x2cb   : > { %v2721_v17 = vadd.f32 %v2720_v16, %v2632_v63  ;;  %2860 = vmatmul.bf16.gmra.mxu2 %v6703_v14  ;;  %3038 = vmatmul.bf16.gmra.mxu0 %v6066_v61 }
 0x2cc   : > { %2949 = vmatmul.bf16.gmra.mxu3 %v6704_v3 }
 0x2cd   : > { %3127 = vmatmul.bf16.gmra.mxu1 %v5237_v27  ;;  %v3580_v37 = vadd.f32 %v5906_v34, %v2721_v17 }
 0x2ce   : > { %v2545_v58 = vpop.f32.mrf.mxu2 }
 0x2cf   : > { %v3612_v19 = vmax.f32 %v3580_v37, 0.0  ;;  %v2546_v26 = vadd.f32 %v2545_v58, %v5830_v23  ;;  %v2634_v4 = vpop.f32.mrf.mxu3 }
 0x2d0   : > { %v2725_v16 = vpop.f32.mrf.mxu0 }
 0x2d1   : > { %3644 = vst [vmem:[%s5914_s23 + $0x108] sm:$0xff] %v3612_v19  ;;  %v2635_v14 = vadd.f32 %v2634_v4, %v2546_v26  ;;  %v4682_v4 = vld [vmem:[#allocation2 + $0x2d4] sm:$0xf] }
 0x2d2   : > { %v6074_v48 = vpop.f32.mrf.mxu1 }
 0x2d3   : > { %v2724_v42 = vadd.f32 %v2723_v0, %v2635_v14 }
 0x2d5   : > { %v3581_v24 = vadd.f32 %v5906_v34, %v2724_v42  ;;  %v4392_v42 = vor.u32 %v4698_v57, %v4389_v30  ;;  %v4730_v30 = vld [vmem:[#allocation2 + $0x454] sm:$0xf] }
 0x2d6   : > { %v2547_v44 = vpop.f32.mrf.mxu2 }
 0x2d7   : > { %v3613_v20 = vmax.f32 %v3581_v24, 0.0  ;;  %v2548_v54 = vadd.f32 %v2547_v44, %v5837_v21  ;;  %v2636_v23 = vpop.f32.mrf.mxu3  ;;  %3294 = vmatpush.bf16.msra.mxu3 %v4392_v42 }
 0x2d8   : > { %v2728_v46 = vpop.f32.mrf.mxu0 }
 0x2d9   : > { %3645 = vst [vmem:[%s5914_s23 + $0x120] sm:$0xff] %v3613_v20  ;;  %v2637_v62 = vadd.f32 %v2636_v23, %v2548_v54 }
 0x2da   : > { %v6079_v63 = vpop.f32.mrf.mxu1 }
 0x2db   : > { %v2726_v47 = vadd.f32 %v2725_v16, %v2637_v62  ;;  %2865 = vmatmul.bf16.gmra.mxu2 %v5237_v27  ;;  %3043 = vmatmul.bf16.gmra.mxu0 %v6083_v10  ;;  %v4325_v16 = vld [vmem:[#allocation2 + $0x2d8] sm:$0xf0] }
 0x2dc   : > { %2954 = vmatmul.bf16.gmra.mxu3 %v5471_v56  ;;  %v4328_v14 = vor.u32 %v4682_v4, %v4325_v16 }
 0x2dd   : > { %3132 = vmatmul.bf16.gmra.mxu1 %v5281_v43  ;;  %v3582_v21 = vadd.f32 %v5906_v34, %v2726_v47 }
 0x2de   : > { %v2550_v0 = vpop.f32.mrf.mxu2  ;;  %3205 = vmatpush.bf16.msra.mxu2 %v4328_v14 }
 0x2df   : > { %v3614_v33 = vmax.f32 %v3582_v21, 0.0  ;;  %v2551_v17 = vadd.f32 %v2550_v0, %v5840_v25  ;;  %v2639_v37 = vpop.f32.mrf.mxu3  ;;  %v4714_v21 = vld [vmem:[#allocation2 + $0x3d4] sm:$0xf]  ;;  %v4453_v0 = vld [vmem:[#allocation2 + $0x3d8] sm:$0xf0] }
 0x2e0   : > { %v2730_v58 = vpop.f32.mrf.mxu0 }
 0x2e1   : > { %3646 = vst [vmem:[%s5914_s23 + $0x128] sm:$0xff] %v3614_v33  ;;  %v2640_v19 = vadd.f32 %v2639_v37, %v2551_v17  ;;  %v6100_v17 = vld [vmem:[%s5100_s10 + $0x30] sm:$0xff] }
 0x2e2   : > { %v6091_v26 = vpop.f32.mrf.mxu1 }
 0x2e3   : > { %v2729_v55 = vadd.f32 %v2728_v46, %v2640_v19  ;;  %v4456_v46 = vor.u32 %v4714_v21, %v4453_v0 }
 0x2e5   : > { %v3583_v24 = vadd.f32 %v5906_v34, %v2729_v55  ;;  %3383 = vmatpush.bf16.msra.mxu0 %v4456_v46  ;;  %v4517_v55 = vld [vmem:[#allocation2 + $0x458] sm:$0xf0] }
 0x2e6   : > { %v2552_v25 = vpop.f32.mrf.mxu2  ;;  %v4520_v42 = vor.u32 %v4730_v30, %v4517_v55  ;;  %v4317_v30 = vld [vmem:[#allocation2 + $0x2c8] sm:$0xf0] }
 0x2e7   : > { %v3615_v44 = vmax.f32 %v3583_v24, 0.0  ;;  %v2553_v20 = vadd.f32 %v2552_v25, %v5850_v1  ;;  %v2641_v54 = vpop.f32.mrf.mxu3 }
 0x2e8   : > { %v2733_v23 = vpop.f32.mrf.mxu0  ;;  %3472 = vmatpush.bf16.msra.mxu1 %v4520_v42  ;;  %v4696_v42 = vld [vmem:[#allocation2 + $0x344] sm:$0xf] }
 0x2e9   : > { %3647 = vst [vmem:[%s5914_s23 + $0x140] sm:$0xff] %v3615_v44  ;;  %v2642_v62 = vadd.f32 %v2641_v54, %v2553_v20 }
 0x2ea   : > { %v6096_v47 = vpop.f32.mrf.mxu1 }
 0x2eb   : > { %v2731_v33 = vadd.f32 %v2730_v58, %v2642_v62  ;;  %2870 = vmatmul.bf16.gmra.mxu2 %v5281_v43  ;;  %3048 = vmatmul.bf16.gmra.mxu0 %v6100_v17 }
 0x2ec   : > { %2959 = vmatmul.bf16.gmra.mxu3 %v5492_v38 }
 0x2ed   : > { %3137 = vmatmul.bf16.gmra.mxu1 %v5324_v2  ;;  %v3584_v1 = vadd.f32 %v5906_v34, %v2731_v33  ;;  %v6117_v33 = vld [vmem:[%s5100_s10 + $0x3c] sm:$0xff] }
 0x2ee   : > { %v2555_v37 = vpop.f32.mrf.mxu2 }
 0x2ef   : > { %v3616_v19 = vmax.f32 %v3584_v1, 0.0  ;;  %v2556_v4 = vadd.f32 %v2555_v37, %v5853_v59  ;;  %v2644_v16 = vpop.f32.mrf.mxu3 }
 0x2f0   : > { %v2735_v58 = vpop.f32.mrf.mxu0 }
 0x2f1   : > { %3648 = vst [vmem:[%s5914_s23 + $0x148] sm:$0xff] %v3616_v19  ;;  %v2645_v14 = vadd.f32 %v2644_v16, %v2556_v4 }
 0x2f2   : > { %v6108_v57 = vpop.f32.mrf.mxu1 }
 0x2f3   : > { %v2734_v24 = vadd.f32 %v2733_v23, %v2645_v14  ;;  %v4680_v14 = vld [vmem:[#allocation2 + $0x2c4] sm:$0xf] }
 0x2f4   : > { %v4320_v55 = vor.u32 %v4680_v14, %v4317_v30 }
 0x2f5   : > { %v3585_v25 = vadd.f32 %v5906_v34, %v2734_v24  ;;  %v4381_v24 = vld [vmem:[#allocation2 + $0x348] sm:$0xf0] }
 0x2f6   : > { %v2557_v44 = vpop.f32.mrf.mxu2  ;;  %3206 = vmatpush.bf16.msra.mxu2 %v4320_v55  ;;  %v6705_v55 = vld [vmem:[#allocation21_spill] sm:$0xff] }
 0x2f7   : > { %v3617_v20 = vmax.f32 %v3585_v25, 0.0  ;;  %v2558_v54 = vadd.f32 %v2557_v44, %v5859_v6  ;;  %v2646_v59 = vpop.f32.mrf.mxu3  ;;  %v4384_v44 = vor.u32 %v4696_v42, %v4381_v24 }
 0x2f8   : > { %v2738_v62 = vpop.f32.mrf.mxu0 }
 0x2f9   : > { %3649 = vst [vmem:[%s5914_s23 + $0x160] sm:$0xff] %v3617_v20  ;;  %v2647_v21 = vadd.f32 %v2646_v59, %v2558_v54  ;;  %3295 = vmatpush.bf16.msra.mxu3 %v4384_v44 }
 0x2fa   : > { %v6113_v0 = vpop.f32.mrf.mxu1 }
 0x2fb   : > { %v2736_v46 = vadd.f32 %v2735_v58, %v2647_v21  ;;  %2875 = vmatmul.bf16.gmra.mxu2 %v5324_v2  ;;  %3053 = vmatmul.bf16.gmra.mxu0 %v6117_v33 }
 0x2fc   : > { %2964 = vmatmul.bf16.gmra.mxu3 %v5513_v36 }
 0x2fd   : > { %3142 = vmatmul.bf16.gmra.mxu1 %v5368_v50  ;;  %v3586_v6 = vadd.f32 %v5906_v34, %v2736_v46 }
 0x2fe   : > { %v2560_v23 = vpop.f32.mrf.mxu2 }
 0x2ff   : > { %v3618_v1 = vmax.f32 %v3586_v6, 0.0  ;;  %v2561_v37 = vadd.f32 %v2560_v23, %v5862_v28  ;;  %v2649_v19 = vpop.f32.mrf.mxu3 }
 0x300   : > { %v2740_v4 = vpop.f32.mrf.mxu0 }
 0x301   : > { %3650 = vst [vmem:[%s5914_s23 + $0x168] sm:$0xff] %v3618_v1  ;;  %v2650_v16 = vadd.f32 %v2649_v19, %v2561_v37  ;;  %v4712_v1 = vld [vmem:[#allocation2 + $0x3c4] sm:$0xf]  ;;  %v4445_v37 = vld [vmem:[#allocation2 + $0x3c8] sm:$0xf0] }
 0x302   : > { %v6125_v58 = vpop.f32.mrf.mxu1 }
 0x303   : > { %v2739_v25 = vadd.f32 %v2738_v62, %v2650_v16  ;;  %v4448_v62 = vor.u32 %v4712_v1, %v4445_v37  ;;  %v6134_v16 = vld [vmem:[%s5100_s10 + $0x48] sm:$0xff]  ;;  %v6706_v37 = vld [vmem:[#allocation23_spill] sm:$0xff] }
 0x305   : > { %v3587_v20 = vadd.f32 %v5906_v34, %v2739_v25  ;;  %3384 = vmatpush.bf16.msra.mxu0 %v4448_v62 }
 0x306   : > { %v2562_v28 = vpop.f32.mrf.mxu2 }
 0x307   : > { %v3619_v54 = vmax.f32 %v3587_v20, 0.0  ;;  %v2563_v59 = vadd.f32 %v2562_v28, %v5869_v31  ;;  %v2651_v21 = vpop.f32.mrf.mxu3  ;;  %v4728_v20 = vld [vmem:[#allocation2 + $0x444] sm:$0xf]  ;;  %v4509_v28 = vld [vmem:[#allocation2 + $0x448] sm:$0xf0] }
 0x308   : > { %v2743_v46 = vpop.f32.mrf.mxu0 }
 0x309   : > { %3651 = vst [vmem:[%s5914_s23 + $0x180] sm:$0xff] %v3619_v54  ;;  %v2652_v6 = vadd.f32 %v2651_v21, %v2563_v59  ;;  %v4512_v54 = vor.u32 %v4728_v20, %v4509_v28 }
 0x30a   : > { %v6130_v23 = vpop.f32.mrf.mxu1 }
 0x30b   : > { %v2741_v19 = vadd.f32 %v2740_v4, %v2652_v6  ;;  %2880 = vmatmul.bf16.gmra.mxu2 %v5368_v50  ;;  %3058 = vmatmul.bf16.gmra.mxu0 %v6134_v16 }
 0x30c   : > { %2969 = vmatmul.bf16.gmra.mxu3 %v5534_v15  ;;  %3473 = vmatpush.bf16.msra.mxu1 %v4512_v54 }
 0x30d   : > { %3147 = vmatmul.bf16.gmra.mxu1 %v5405_v41  ;;  %v3588_v31 = vadd.f32 %v5906_v34, %v2741_v19 }
 0x30e   : > { %v2565_v14 = vpop.f32.mrf.mxu2 }
 0x30f   : > { %v3620_v30 = vmax.f32 %v3588_v31, 0.0  ;;  %v2566_v42 = vadd.f32 %v2565_v14, %v6705_v55  ;;  %v2654_v24 = vpop.f32.mrf.mxu3 }
 0x310   : > { %v2745_v4 = vpop.f32.mrf.mxu0 }
 0x311   : > { %3652 = vst [vmem:[%s5914_s23 + $0x188] sm:$0xff] %v3620_v30  ;;  %v2655_v25 = vadd.f32 %v2654_v24, %v2566_v42  ;;  %v6151_v42 = vld [vmem:[%s5100_s10 + $0x54] sm:$0xff] }
 0x312   : > { %v6142_v44 = vpop.f32.mrf.mxu1  ;;  %v6709_v24 = vld [vmem:[#allocation18_spill] sm:$0xff] }
 0x313   : > { %v2744_v59 = vadd.f32 %v2743_v46, %v2655_v25  ;;  %v6708_v46 = vld [vmem:[#allocation22_spill] sm:$0xff] }
 0x315   : > { %v3589_v21 = vadd.f32 %v5906_v34, %v2744_v59 }
 0x316   : > { %v2567_v6 = vpop.f32.mrf.mxu2 }
 0x317   : > { %v3621_v1 = vmax.f32 %v3589_v21, 0.0  ;;  %v2568_v62 = vadd.f32 %v2567_v6, %v6706_v37  ;;  %v2656_v19 = vpop.f32.mrf.mxu3  ;;  %v4309_v37 = vld [vmem:[#allocation2 + $0x2b8] sm:$0xf0] }
 0x318   : > { %v2748_v31 = vpop.f32.mrf.mxu0 }
 0x319   : > { %3653 = vst [vmem:[%s5914_s23 + $0x1a0] sm:$0xff] %v3621_v1  ;;  %v2657_v14 = vadd.f32 %v2656_v19, %v2568_v62  ;;  %v4678_v1 = vld [vmem:[#allocation2 + $0x2b4] sm:$0xf] }
 0x31a   : > { %v6147_v30 = vpop.f32.mrf.mxu1  ;;  %v4312_v62 = vor.u32 %v4678_v1, %v4309_v37  ;;  %v4694_v19 = vld [vmem:[#allocation2 + $0x334] sm:$0xf] }
 0x31b   : > { %6707 = vst [vmem:[#allocation47_spill] sm:$0xff] %v6147_v30  ;;  %v2746_v55 = vadd.f32 %v2745_v4, %v2657_v14  ;;  %2885 = vmatmul.bf16.gmra.mxu2 %v5405_v41  ;;  %3063 = vmatmul.bf16.gmra.mxu0 %v6151_v42  ;;  %v4373_v14 = vld [vmem:[#allocation2 + $0x338] sm:$0xf0] }
 0x31c   : > { %2974 = vmatmul.bf16.gmra.mxu3 %v6708_v46  ;;  %v4376_v9 = vor.u32 %v4694_v19, %v4373_v14  ;;  %3207 = vmatpush.bf16.msra.mxu2 %v4312_v62  ;;  %v6176_v62 = vld [vmem:[%s6528_s2] ss:$0 sm:$0xff] }
 0x31d   : > { %3152 = vmatmul.bf16.gmra.mxu1 %v6709_v24  ;;  %v3590_v25 = vadd.f32 %v5906_v34, %v2746_v55  ;;  %v4437_v55 = vld [vmem:[#allocation2 + $0x3b8] sm:$0xf0]  ;;  %6714 = vst [vmem:[#allocation51_spill] sm:$0xff] %v6176_v62 }
 0x31e   : > { %v2570_v20 = vpop.f32.mrf.mxu2  ;;  %3296 = vmatpush.bf16.msra.mxu3 %v4376_v9  ;;  %v6713_v9 = vld [vmem:[#allocation8_spill] sm:$0xff] }
 0x31f   : > { %v3622_v28 = vmax.f32 %v3590_v25, 0.0  ;;  %v2571_v54 = vadd.f32 %v2570_v20, %v5881_v11  ;;  %v2659_v59 = vpop.f32.mrf.mxu3  ;;  %v4440_v25 = vor.u32 %v4710_v60, %v4437_v55  ;;  %v4726_v60 = vld [vmem:[#allocation2 + $0x434] sm:$0xf] }
 0x320   : > { %v2750_v21 = vpop.f32.mrf.mxu0 }
 0x321   : > { %3654 = vst [vmem:[%s5914_s23 + $0x1a8] sm:$0xff] %v3622_v28  ;;  %v2660_v4 = vadd.f32 %v2659_v59, %v2571_v54  ;;  %3385 = vmatpush.bf16.msra.mxu0 %v4440_v25 }
 0x322   : > { %v6159_v6 = vpop.f32.mrf.mxu1 }
 0x323   : > { %6710 = vst [vmem:[#allocation50_spill] sm:$0xff] %v6159_v6  ;;  %v2749_v13 = vadd.f32 %v2748_v31, %v2660_v4  ;;  %v6168_v4 = vld [vmem:[%s5100_s10 + $0x60] sm:$0xff] }
 0x325   : > { %v3591_v11 = vadd.f32 %v5906_v34, %v2749_v13  ;;  %v4501_v34 = vld [vmem:[#allocation2 + $0x438] sm:$0xf0]  ;;  %v6712_v13 = vld [vmem:[#allocation25_spill] sm:$0xff] }
 0x326   : > { %v2572_v20 = vpop.f32.mrf.mxu2 }
 0x327   : > { %v3623_v28 = vmax.f32 %v3591_v11, 0.0  ;;  %v2573_v54 = vadd.f32 %v2572_v20, %v5887_v52  ;;  %v2661_v59 = vpop.f32.mrf.mxu3  ;;  %v4504_v52 = vor.u32 %v4726_v60, %v4501_v34 }
 0x328   : > { %v2753_v1 = vpop.f32.mrf.mxu0 }
 0x329   : > { %3655 = vst [vmem:[%s5914_s23 + $0x1c0] sm:$0xff] %v3623_v28  ;;  %v2662_v37 = vadd.f32 %v2661_v59, %v2573_v54  ;;  %3474 = vmatpush.bf16.msra.mxu1 %v4504_v52 }
 0x32a   : > { %v6164_v6 = vpop.f32.mrf.mxu1 }
 0x32b   : > { %6711 = vst [vmem:[#allocation48_spill] sm:$0xff] %v6164_v6  ;;  %v2751_v31 = vadd.f32 %v2750_v21, %v2662_v37  ;;  %2890 = vmatmul.bf16.gmra.mxu2 %v6709_v24  ;;  %3068 = vmatmul.bf16.gmra.mxu0 %v6168_v4 }
 0x32c   : > { %2979 = vmatmul.bf16.gmra.mxu3 %v6712_v13 }
 0x32d   : > { %3157 = vmatmul.bf16.gmra.mxu1 %v6713_v9  ;;  %v3592_v21 = vadd.f32 %v6176_v62, %v2751_v31 }
 0x32e   : > { %v2575_v19 = vpop.f32.mrf.mxu2 }
 0x32f   : > { %v3624_v14 = vmax.f32 %v3592_v21, 0.0  ;;  %v2576_v55 = vadd.f32 %v2575_v19, %v5890_v29  ;;  %v2664_v25 = vpop.f32.mrf.mxu3  ;;  %v6716_v29 = vld [vmem:[#allocation28_spill] sm:$0xff]  ;;  %v4301_v19 = vld [vmem:[#allocation2 + $0x2a8] sm:$0xf0] }
 0x330   : > { %v2755_v11 = vpop.f32.mrf.mxu0 }
 0x331   : > { %3656 = vst [vmem:[%s5914_s23 + $0x1c8] sm:$0xff] %v3624_v14  ;;  %v2665_v20 = vadd.f32 %v2664_v25, %v2576_v55  ;;  %v4692_v14 = vld [vmem:[#allocation2 + $0x324] sm:$0xf]  ;;  %v4365_v25 = vld [vmem:[#allocation2 + $0x328] sm:$0xf0] }
 0x332   : > { %v6181_v28 = vpop.f32.mrf.mxu1 }
 0x333   : > { %6715 = vst [vmem:[#allocation9_spill] sm:$0xff] %v6181_v28  ;;  %v2754_v54 = vadd.f32 %v2753_v1, %v2665_v20  ;;  %v4676_v1 = vld [vmem:[#allocation2 + $0x2a4] sm:$0xf]  ;;  %v4429_v28 = vld [vmem:[#allocation2 + $0x3a8] sm:$0xf0] }
 0x334   : > { %v4304_v55 = vor.u32 %v4676_v1, %v4301_v19  ;;  %v6718_v19 = vld [vmem:[#allocation24_spill] sm:$0xff] }
 0x335   : > { %v3593_v59 = vadd.f32 %v6176_v62, %v2754_v54  ;;  %v4368_v54 = vor.u32 %v4692_v14, %v4365_v25 }
 0x336   : > { %v2577_v37 = vpop.f32.mrf.mxu2  ;;  %3208 = vmatpush.bf16.msra.mxu2 %v4304_v55 }
 0x337   : > { %v3625_v60 = vmax.f32 %v3593_v59, 0.0  ;;  %v2578_v34 = vadd.f32 %v2577_v37, %v5899_v12  ;;  %v2666_v31 = vpop.f32.mrf.mxu3  ;;  %3297 = vmatpush.bf16.msra.mxu3 %v4368_v54  ;;  %v6198_v54 = vld [vmem:[%s5100_s10 + $0x78] sm:$0xff] }
 0x338   : > { %v3034_v6 = vpop.f32.mrf.mxu0  ;;  %6719 = vst [vmem:[#allocation11_spill] sm:$0xff] %v6198_v54 }
 0x339   : > { %3657 = vst [vmem:[%s5914_s23 + $0x1e0] sm:$0xff] %v3625_v60  ;;  %v2667_v52 = vadd.f32 %v2666_v31, %v2578_v34 }
 0x33a   : > { %v3123_v21 = vpop.f32.mrf.mxu1 }
 0x33b   : > { %v2756_v30 = vadd.f32 %v2755_v11, %v2667_v52  ;;  %2895 = vmatmul.bf16.gmra.mxu2 %v6713_v9  ;;  %3073 = vmatmul.bf16.gmra.mxu0 %v5923_v53  ;;  %v4708_v52 = vld [vmem:[#allocation2 + $0x3a4] sm:$0xf] }
 0x33c   : > { %2984 = vmatmul.bf16.gmra.mxu3 %v6716_v29  ;;  %v4432_v29 = vor.u32 %v4708_v52, %v4429_v28  ;;  %v6720_v28 = vld [vmem:[#allocation32_spill] sm:$0xff] }
 0x33d   : > { %3162 = vmatmul.bf16.gmra.mxu1 %v6662_v35  ;;  %v3594_v12 = vadd.f32 %v6176_v62, %v2756_v30  ;;  %v6725_v62 = vld [vmem:[#allocation26_spill] sm:$0xff] }
 0x33e   : > { %v2856_v20 = vpop.f32.mrf.mxu2  ;;  %3386 = vmatpush.bf16.msra.mxu0 %v4432_v29 }
 0x33f   : > { %v3626_v59 = vmax.f32 %v3594_v12, 0.0  ;;  %v2857_v11 = vadd.f32 %v2856_v20, %v5893_v51  ;;  %v2945_v37 = vpop.f32.mrf.mxu3 }
 0x340   : > { %v3036_v53 = vpop.f32.mrf.mxu0 }
 0x341   : > { %3658 = vst [vmem:[%s5914_s23 + $0x1e8] sm:$0xff] %v3626_v59  ;;  %v2946_v60 = vadd.f32 %v2945_v37, %v2857_v11  ;;  %v4493_v59 = vld [vmem:[#allocation2 + $0x428] sm:$0xf0] }
 0x342   : > { %v3125_v34 = vpop.f32.mrf.mxu1 }
 0x343   : > { %v3035_v31 = vadd.f32 %v3034_v6, %v2946_v60  ;;  %v4724_v6 = vld [vmem:[#allocation2 + $0x424] sm:$0xf]  ;;  %v6723_v60 = vld [vmem:[#allocation29_spill] sm:$0xff] }
 0x344   : > { %v4496_v29 = vor.u32 %v4724_v6, %v4493_v59  ;;  %v6727_v59 = vld [vmem:[#allocation34_spill] sm:$0xff] }
 0x345   : > { %v6193_v30 = vadd.f32 %v3123_v21, %v3035_v31  ;;  %v6721_v21 = vld [vmem:[#allocation12_spill] sm:$0xff] }
 0x346   : > { %v2858_v1 = vpop.f32.mrf.mxu2  ;;  %3475 = vmatpush.bf16.msra.mxu1 %v4496_v29  ;;  %v6728_v29 = vld [vmem:[#allocation13_spill] sm:$0xff] }
 0x347   : > { %6717 = vst [vmem:[#allocation19_spill] sm:$0xff] %v6193_v30  ;;  %v2859_v14 = vadd.f32 %v2858_v1, %v6718_v19  ;;  %v2947_v12 = vpop.f32.mrf.mxu3 }
 0x348   : > { %v3039_v51 = vpop.f32.mrf.mxu0 }
 0x349   : > { %v2948_v25 = vadd.f32 %v2947_v12, %v2859_v14 }
 0x34a   : > { %v3128_v55 = vpop.f32.mrf.mxu1 }
 0x34b   : > { %v3037_v20 = vadd.f32 %v3036_v53, %v2948_v25  ;;  %2900 = vmatmul.bf16.gmra.mxu2 %v6662_v35  ;;  %3078 = vmatmul.bf16.gmra.mxu0 %v6198_v54 }
 0x34c   : > { %2989 = vmatmul.bf16.gmra.mxu3 %v6720_v28 }
 0x34d   : > { %3167 = vmatmul.bf16.gmra.mxu1 %v6721_v21  ;;  %v6203_v11 = vadd.f32 %v3125_v34, %v3037_v20  ;;  %v6726_v20 = vld [vmem:[#allocation31_spill] sm:$0xff] }
 0x34e   : > { %v2861_v37 = vpop.f32.mrf.mxu2 }
 0x34f   : > { %6722 = vst [vmem:[#allocation20_spill] sm:$0xff] %v6203_v11  ;;  %v2862_v31 = vadd.f32 %v2861_v37, %v6723_v60  ;;  %v2950_v53 = vpop.f32.mrf.mxu3  ;;  %v4674_v37 = vld [vmem:[#allocation2 + $0x294] sm:$0xf]  ;;  %v4421_v11 = vld [vmem:[#allocation2 + $0x398] sm:$0xf0] }
 0x350   : > { %v3041_v52 = vpop.f32.mrf.mxu0 }
 0x351   : > { %v2951_v1 = vadd.f32 %v2950_v53, %v2862_v31  ;;  %v4357_v31 = vld [vmem:[#allocation2 + $0x318] sm:$0xf0] }
 0x352   : > { %v3130_v19 = vpop.f32.mrf.mxu1 }
 0x353   : > { %v3040_v14 = vadd.f32 %v3039_v51, %v2951_v1  ;;  %v4293_v51 = vld [vmem:[#allocation2 + $0x298] sm:$0xf0] }
 0x354   : > { %v4296_v60 = vor.u32 %v4674_v37, %v4293_v51 }
 0x355   : > { %v6206_v12 = vadd.f32 %v3128_v55, %v3040_v14  ;;  %v4690_v55 = vld [vmem:[#allocation2 + $0x314] sm:$0xf] }
 0x356   : > { %v2863_v25 = vpop.f32.mrf.mxu2  ;;  %v4360_v1 = vor.u32 %v4690_v55, %v4357_v31  ;;  %3209 = vmatpush.bf16.msra.mxu2 %v4296_v60  ;;  %v6733_v60 = vld [vmem:[#allocation36_spill] sm:$0xff] }
 0x357   : > { %6724 = vst [vmem:[#allocation21_spill] sm:$0xff] %v6206_v12  ;;  %v2864_v30 = vadd.f32 %v2863_v25, %v6725_v62  ;;  %v2952_v54 = vpop.f32.mrf.mxu3  ;;  %v4706_v12 = vld [vmem:[#allocation2 + $0x394] sm:$0xf] }
 0x358   : > { %v3044_v28 = vpop.f32.mrf.mxu0  ;;  %3298 = vmatpush.bf16.msra.mxu3 %v4360_v1  ;;  %v4722_v1 = vld [vmem:[#allocation2 + $0x414] sm:$0xf] }
 0x359   : > { %v2953_v35 = vadd.f32 %v2952_v54, %v2864_v30  ;;  %v6730_v30 = vld [vmem:[#allocation27_spill] sm:$0xff] }
 0x35a   : > { %v3133_v6 = vpop.f32.mrf.mxu1 }
 0x35b   : > { %v3042_v34 = vadd.f32 %v3041_v52, %v2953_v35  ;;  %2905 = vmatmul.bf16.gmra.mxu2 %v6721_v21  ;;  %3083 = vmatmul.bf16.gmra.mxu0 %v6726_v20 }
 0x35c   : > { %2994 = vmatmul.bf16.gmra.mxu3 %v6727_v59  ;;  %v4424_v59 = vor.u32 %v4706_v12, %v4421_v11  ;;  %v6735_v11 = vld [vmem:[#allocation14_spill] sm:$0xff] }
 0x35d   : > { %3172 = vmatmul.bf16.gmra.mxu1 %v6728_v29  ;;  %v6213_v53 = vadd.f32 %v3130_v19, %v3042_v34  ;;  %v6732_v19 = vld [vmem:[#allocation33_spill] sm:$0xff] }
 0x35e   : > { %v2866_v62 = vpop.f32.mrf.mxu2  ;;  %3387 = vmatpush.bf16.msra.mxu0 %v4424_v59 }
 0x35f   : > { %6729 = vst [vmem:[#allocation23_spill] sm:$0xff] %v6213_v53  ;;  %v2867_v54 = vadd.f32 %v2866_v62, %v6730_v30  ;;  %v2955_v35 = vpop.f32.mrf.mxu3 }
 0x360   : > { %v3046_v52 = vpop.f32.mrf.mxu0 }
 0x361   : > { %v2956_v14 = vadd.f32 %v2955_v35, %v2867_v54  ;;  %v6734_v54 = vld [vmem:[#allocation37_spill] sm:$0xff]  ;;  %v6737_v35 = vld [vmem:[#allocation30_spill] sm:$0xff] }
 0x362   : > { %v3135_v25 = vpop.f32.mrf.mxu1 }
 0x363   : > { %v3045_v20 = vadd.f32 %v3044_v28, %v2956_v14  ;;  %v4485_v28 = vld [vmem:[#allocation2 + $0x418] sm:$0xf0] }
 0x364   : > { %v4488_v12 = vor.u32 %v4722_v1, %v4485_v28  ;;  %v6741_v28 = vld [vmem:[#allocation41_spill] sm:$0xff] }
 0x365   : > { %v6216_v21 = vadd.f32 %v3133_v6, %v3045_v20 }
 0x366   : > { %v2868_v37 = vpop.f32.mrf.mxu2  ;;  %3476 = vmatpush.bf16.msra.mxu1 %v4488_v12  ;;  %v6742_v12 = vld [vmem:[#allocation15_spill] sm:$0xff] }
 0x367   : > { %6731 = vst [vmem:[#allocation22_spill] sm:$0xff] %v6216_v21  ;;  %v2869_v34 = vadd.f32 %v2868_v37, %v6732_v19  ;;  %v2957_v51 = vpop.f32.mrf.mxu3 }
 0x368   : > { %v3049_v55 = vpop.f32.mrf.mxu0 }
 0x369   : > { %v2958_v31 = vadd.f32 %v2957_v51, %v2869_v34 }
 0x36a   : > { %v3138_v62 = vpop.f32.mrf.mxu1 }
 0x36b   : > { %v3047_v30 = vadd.f32 %v3046_v52, %v2958_v31  ;;  %2910 = vmatmul.bf16.gmra.mxu2 %v6728_v29  ;;  %3088 = vmatmul.bf16.gmra.mxu0 %v6733_v60  ;;  %v6739_v60 = vld [vmem:[#allocation35_spill] sm:$0xff] }
 0x36c   : > { %2999 = vmatmul.bf16.gmra.mxu3 %v6734_v54 }
 0x36d   : > { %3177 = vmatmul.bf16.gmra.mxu1 %v6735_v11  ;;  %v6223_v6 = vadd.f32 %v3135_v25, %v3047_v30  ;;  %v6740_v30 = vld [vmem:[#allocation40_spill] sm:$0xff] }
 0x36e   : > { %v2871_v59 = vpop.f32.mrf.mxu2 }
 0x36f   : > { %6736 = vst [vmem:[#allocation18_spill] sm:$0xff] %v6223_v6  ;;  %v2872_v14 = vadd.f32 %v2871_v59, %v6737_v35  ;;  %v2960_v20 = vpop.f32.mrf.mxu3  ;;  %v4672_v59 = vld [vmem:[#allocation2 + $0x284] sm:$0xf]  ;;  %v4413_v6 = vld [vmem:[#allocation2 + $0x388] sm:$0xf0] }
 0x370   : > { %v3051_v37 = vpop.f32.mrf.mxu0 }
 0x371   : > { %v2961_v52 = vadd.f32 %v2960_v20, %v2872_v14  ;;  %v4349_v14 = vld [vmem:[#allocation2 + $0x308] sm:$0xf0] }
 0x372   : > { %v3140_v19 = vpop.f32.mrf.mxu1 }
 0x373   : > { %v3050_v34 = vadd.f32 %v3049_v55, %v2961_v52  ;;  %v4285_v55 = vld [vmem:[#allocation2 + $0x288] sm:$0xf0] }
 0x374   : > { %v4288_v35 = vor.u32 %v4672_v59, %v4285_v55 }
 0x375   : > { %v6226_v51 = vadd.f32 %v3138_v62, %v3050_v34  ;;  %v4688_v62 = vld [vmem:[#allocation2 + $0x304] sm:$0xf] }
 0x376   : > { %v2873_v31 = vpop.f32.mrf.mxu2  ;;  %v4352_v34 = vor.u32 %v4688_v62, %v4349_v14  ;;  %3210 = vmatpush.bf16.msra.mxu2 %v4288_v35  ;;  %v4720_v35 = vld [vmem:[#allocation2 + $0x404] sm:$0xf] }
 0x377   : > { %6738 = vst [vmem:[#allocation25_spill] sm:$0xff] %v6226_v51  ;;  %v2874_v21 = vadd.f32 %v2873_v31, %v6739_v60  ;;  %v2962_v53 = vpop.f32.mrf.mxu3  ;;  %v4704_v51 = vld [vmem:[#allocation2 + $0x384] sm:$0xf] }
 0x378   : > { %v3054_v54 = vpop.f32.mrf.mxu0  ;;  %3299 = vmatpush.bf16.msra.mxu3 %v4352_v34  ;;  %v6747_v34 = vld [vmem:[#allocation45_spill] sm:$0xff] }
 0x379   : > { %v2963_v29 = vadd.f32 %v2962_v53, %v2874_v21  ;;  %v6744_v21 = vld [vmem:[#allocation38_spill] sm:$0xff] }
 0x37a   : > { %v3143_v1 = vpop.f32.mrf.mxu1 }
 0x37b   : > { %v3052_v25 = vadd.f32 %v3051_v37, %v2963_v29  ;;  %2915 = vmatmul.bf16.gmra.mxu2 %v6735_v11  ;;  %3093 = vmatmul.bf16.gmra.mxu0 %v6740_v30 }
 0x37c   : > { %3004 = vmatmul.bf16.gmra.mxu3 %v6741_v28  ;;  %v4416_v28 = vor.u32 %v4704_v51, %v4413_v6  ;;  %v6748_v6 = vld [vmem:[#allocation16_spill] sm:$0xff] }
 0x37d   : > { %3182 = vmatmul.bf16.gmra.mxu1 %v6742_v12  ;;  %v6233_v20 = vadd.f32 %v3140_v19, %v3052_v25  ;;  %v6746_v19 = vld [vmem:[#allocation39_spill] sm:$0xff] }
 0x37e   : > { %v2876_v52 = vpop.f32.mrf.mxu2  ;;  %3388 = vmatpush.bf16.msra.mxu0 %v4416_v28 }
 0x37f   : > { %6743 = vst [vmem:[#allocation8_spill] sm:$0xff] %v6233_v20  ;;  %v2877_v53 = vadd.f32 %v2876_v52, %v6744_v21  ;;  %v2965_v29 = vpop.f32.mrf.mxu3 }
 0x380   : > { %v3056_v37 = vpop.f32.mrf.mxu0 }
 0x381   : > { %v2966_v31 = vadd.f32 %v2965_v29, %v2877_v53  ;;  %v6749_v53 = vld [vmem:[#allocation42_spill] sm:$0xff] }
 0x382   : > { %v3145_v60 = vpop.f32.mrf.mxu1 }
 0x383   : > { %v3055_v30 = vadd.f32 %v3054_v54, %v2966_v31  ;;  %v4477_v54 = vld [vmem:[#allocation2 + $0x408] sm:$0xf0] }
 0x384   : > { %v4480_v51 = vor.u32 %v4720_v35, %v4477_v54  ;;  %v6752_v54 = vld [vmem:[#allocation17_spill] sm:$0xff] }
 0x385   : > { %v6236_v11 = vadd.f32 %v3143_v1, %v3055_v30 }
 0x386   : > { %v2878_v59 = vpop.f32.mrf.mxu2  ;;  %3477 = vmatpush.bf16.msra.mxu1 %v4480_v51 }
 0x387   : > { %6745 = vst [vmem:[#allocation24_spill] sm:$0xff] %v6236_v11  ;;  %v2879_v25 = vadd.f32 %v2878_v59, %v6746_v19  ;;  %v2967_v55 = vpop.f32.mrf.mxu3 }
 0x388   : > { %v3059_v62 = vpop.f32.mrf.mxu0 }
 0x389   : > { %v2968_v14 = vadd.f32 %v2967_v55, %v2879_v25  ;;  %v6750_v55 = vld [vmem:[#allocation43_spill] sm:$0xff] }
 0x38a   : > { %v3148_v52 = vpop.f32.mrf.mxu1 }
 0x38b   : > { %v3057_v21 = vadd.f32 %v3056_v37, %v2968_v14  ;;  %2920 = vmatmul.bf16.gmra.mxu2 %v6742_v12  ;;  %3098 = vmatmul.bf16.gmra.mxu0 %v6008_v45 }
 0x38c   : > { %3009 = vmatmul.bf16.gmra.mxu3 %v6747_v34 }
 0x38d   : > { %3187 = vmatmul.bf16.gmra.mxu1 %v6748_v6  ;;  %v6243_v1 = vadd.f32 %v3145_v60, %v3057_v21  ;;  %v6751_v21 = vld [vmem:[#allocation49_spill] sm:$0xff] }
 0x38e   : > { %v2881_v28 = vpop.f32.mrf.mxu2 }
 0x38f   : > { %v2882_v29 = vadd.f32 %v2881_v28, %v6749_v53  ;;  %v2970_v31 = vpop.f32.mrf.mxu3 }
 0x390   : > { %v3061_v30 = vpop.f32.mrf.mxu0 }
 0x391   : > { %v2971_v37 = vadd.f32 %v2970_v31, %v2882_v29 }
 0x392   : > { %v3150_v59 = vpop.f32.mrf.mxu1 }
 0x393   : > { %v3060_v19 = vadd.f32 %v3059_v62, %v2971_v37 }
 0x395   : > { %v6246_v25 = vadd.f32 %v3148_v52, %v3060_v19 }
 0x396   : > { %v2883_v45 = vpop.f32.mrf.mxu2 }
 0x397   : > { %v2884_v14 = vadd.f32 %v2883_v45, %v6750_v55  ;;  %v2972_v11 = vpop.f32.mrf.mxu3 }
 0x398   : > { %v3064_v20 = vpop.f32.mrf.mxu0 }
 0x399   : > { %v2973_v34 = vadd.f32 %v2972_v11, %v2884_v14  ;;  %v6261_v14 = vld [vmem:[%s5100_s10 + $0xc0] sm:$0xff] }
 0x39a   : > { %v3153_v35 = vpop.f32.mrf.mxu1  ;;  %6754 = vst [vmem:[#allocation26_spill] sm:$0xff] %v6261_v14 }
 0x39b   : > { %v3062_v60 = vadd.f32 %v3061_v30, %v2973_v34  ;;  %2925 = vmatmul.bf16.gmra.mxu2 %v6748_v6  ;;  %3103 = vmatmul.bf16.gmra.mxu0 %v6037_v22 }
 0x39c   : > { %3014 = vmatmul.bf16.gmra.mxu3 %v6751_v21 }
 0x39d   : > { %3192 = vmatmul.bf16.gmra.mxu1 %v6752_v54  ;;  %v6253_v51 = vadd.f32 %v3150_v59, %v3062_v60 }
 0x39e   : > { %v2886_v62 = vpop.f32.mrf.mxu2 }
 0x39f   : > { %v2887_v52 = vadd.f32 %v2886_v62, %v6002_v40  ;;  %v2975_v28 = vpop.f32.mrf.mxu3  ;;  %v6755_v40 = vld [vmem:[#allocation52_spill] sm:$0xff] }
 0x3a0   : > { %v3066_v53 = vpop.f32.mrf.mxu0 }
 0x3a1   : > { %v2976_v29 = vadd.f32 %v2975_v28, %v2887_v52 }
 0x3a2   : > { %v3155_v11 = vpop.f32.mrf.mxu1 }
 0x3a3   : > { %v3065_v31 = vadd.f32 %v3064_v20, %v2976_v29 }
 0x3a5   : > { %v6256_v34 = vadd.f32 %v3153_v35, %v3065_v31 }
 0x3a6   : > { %v2888_v30 = vpop.f32.mrf.mxu2 }
 0x3a7   : > { %6753 = vst [vmem:[#allocation29_spill] sm:$0xff] %v6256_v34  ;;  %v2889_v22 = vadd.f32 %v2888_v30, %v6018_v5  ;;  %v2977_v37 = vpop.f32.mrf.mxu3 }
 0x3a8   : > { %v3069_v19 = vpop.f32.mrf.mxu0 }
 0x3a9   : > { %v2978_v45 = vadd.f32 %v2977_v37, %v2889_v22 }
 0x3aa   : > { %v3158_v55 = vpop.f32.mrf.mxu1 }
 0x3ab   : > { %v3067_v59 = vadd.f32 %v3066_v53, %v2978_v45  ;;  %2930 = vmatmul.bf16.gmra.mxu2 %v6752_v54  ;;  %3108 = vmatmul.bf16.gmra.mxu0 %v6261_v14 }
 0x3ac   : > { %3019 = vmatmul.bf16.gmra.mxu3 %v6755_v40 }
 0x3ad   : > { %3197 = vmatmul.bf16.gmra.mxu1 %v5787_v18  ;;  %v6266_v20 = vadd.f32 %v3155_v11, %v3067_v59 }
 0x3ae   : > { %v2891_v35 = vpop.f32.mrf.mxu2 }
 0x3af   : > { %v2892_v5 = vadd.f32 %v2891_v35, %v6032_v39  ;;  %v2980_v60 = vpop.f32.mrf.mxu3 }
 0x3b0   : > { %v3071_v62 = vpop.f32.mrf.mxu0 }
 0x3b1   : > { %v2981_v52 = vadd.f32 %v2980_v60, %v2892_v5 }
 0x3b2   : > { %v3160_v28 = vpop.f32.mrf.mxu1 }
 0x3b3   : > { %v3070_v53 = vadd.f32 %v3069_v19, %v2981_v52 }
 0x3b5   : > { %v6269_v29 = vadd.f32 %v3158_v55, %v3070_v53 }
 0x3b6   : > { %v2893_v31 = vpop.f32.mrf.mxu2 }
 0x3b7   : > { %v2894_v30 = vadd.f32 %v2893_v31, %v6043_v7  ;;  %v2982_v22 = vpop.f32.mrf.mxu3 }
 0x3b8   : > { %v3074_v37 = vpop.f32.mrf.mxu0 }
 0x3b9   : > { %v2983_v45 = vadd.f32 %v2982_v22, %v2894_v30 }
 0x3ba   : > { %v3163_v34 = vpop.f32.mrf.mxu1 }
 0x3bb   : > { %v3072_v14 = vadd.f32 %v3071_v62, %v2983_v45  ;;  %3211 = vmatmul.bf16.vlgmr.msra.gmra.mxu2 %v6704_v3  ;;  %3389 = vmatmul.bf16.vlgmr.msra.gmra.mxu0 %v5237_v27 }
 0x3bc   : > { %3300 = vmatmul.bf16.vlgmr.msra.gmra.mxu3 %v6066_v61 }
 0x3bd   : > { %3478 = vmatmul.bf16.vlgmr.msra.gmra.mxu1 %v5471_v56  ;;  %v6276_v39 = vadd.f32 %v3160_v28, %v3072_v14 }
 0x3be   : > { %v2896_v11 = vpop.f32.mrf.mxu2 }
 0x3bf   : > { %v2897_v19 = vadd.f32 %v2896_v11, %v6048_v8  ;;  %v2985_v55 = vpop.f32.mrf.mxu3 }
 0x3c0   : > { %v3076_v7 = vpop.f32.mrf.mxu0 }
 0x3c1   : > { %v2986_v59 = vadd.f32 %v2985_v55, %v2897_v19 }
 0x3c2   : > { %v3165_v35 = vpop.f32.mrf.mxu1 }
 0x3c3   : > { %v3075_v5 = vadd.f32 %v3074_v37, %v2986_v59 }
 0x3c5   : > { %v6279_v60 = vadd.f32 %v3163_v34, %v3075_v5 }
 0x3c6   : > { %v2898_v62 = vpop.f32.mrf.mxu2 }
 0x3c7   : > { %v2899_v3 = vadd.f32 %v2898_v62, %v6057_v32  ;;  %v2987_v27 = vpop.f32.mrf.mxu3 }
 0x3c8   : > { %v3079_v52 = vpop.f32.mrf.mxu0 }
 0x3c9   : > { %v2988_v61 = vadd.f32 %v2987_v27, %v2899_v3 }
 0x3ca   : > { %v3168_v53 = vpop.f32.mrf.mxu1 }
 0x3cb   : > { %v3077_v31 = vadd.f32 %v3076_v7, %v2988_v61  ;;  %3216 = vmatmul.bf16.gmra.mxu2 %v5471_v56  ;;  %3394 = vmatmul.bf16.gmra.mxu0 %v5281_v43 }
 0x3cc   : > { %3305 = vmatmul.bf16.gmra.mxu3 %v6083_v10 }
 0x3cd   : > { %3483 = vmatmul.bf16.gmra.mxu1 %v5492_v38  ;;  %v6286_v8 = vadd.f32 %v3165_v35, %v3077_v31 }
 0x3ce   : > { %v2901_v34 = vpop.f32.mrf.mxu2 }
 0x3cf   : > { %v2902_v14 = vadd.f32 %v2901_v34, %v6062_v49  ;;  %v2990_v28 = vpop.f32.mrf.mxu3 }
 0x3d0   : > { %v3081_v32 = vpop.f32.mrf.mxu0 }
 0x3d1   : > { %v2991_v30 = vadd.f32 %v2990_v28, %v2902_v14 }
 0x3d2   : > { %v3170_v22 = vpop.f32.mrf.mxu1 }
 0x3d3   : > { %v3080_v37 = vadd.f32 %v3079_v52, %v2991_v30 }
 0x3d5   : > { %v6289_v45 = vadd.f32 %v3168_v53, %v3080_v37 }
 0x3d6   : > { %v2903_v11 = vpop.f32.mrf.mxu2 }
 0x3d7   : > { %v2904_v56 = vadd.f32 %v2903_v11, %v6074_v48  ;;  %v2992_v43 = vpop.f32.mrf.mxu3 }
 0x3d8   : > { %v3084_v19 = vpop.f32.mrf.mxu0 }
 0x3d9   : > { %v2993_v10 = vadd.f32 %v2992_v43, %v2904_v56 }
 0x3da   : > { %v3173_v55 = vpop.f32.mrf.mxu1 }
 0x3db   : > { %v3082_v7 = vadd.f32 %v3081_v32, %v2993_v10  ;;  %3221 = vmatmul.bf16.gmra.mxu2 %v5492_v38  ;;  %3399 = vmatmul.bf16.gmra.mxu0 %v5324_v2 }
 0x3dc   : > { %3310 = vmatmul.bf16.gmra.mxu3 %v6100_v17 }
 0x3dd   : > { %3488 = vmatmul.bf16.gmra.mxu1 %v5513_v36  ;;  %v6296_v49 = vadd.f32 %v3170_v22, %v3082_v7 }
 0x3de   : > { %v2906_v59 = vpop.f32.mrf.mxu2 }
 0x3df   : > { %v2907_v35 = vadd.f32 %v2906_v59, %v6079_v63  ;;  %v2995_v5 = vpop.f32.mrf.mxu3 }
 0x3e0   : > { %v3086_v48 = vpop.f32.mrf.mxu0 }
 0x3e1   : > { %v2996_v62 = vadd.f32 %v2995_v5, %v2907_v35 }
 0x3e2   : > { %v3175_v3 = vpop.f32.mrf.mxu1 }
 0x3e3   : > { %v3085_v27 = vadd.f32 %v3084_v19, %v2996_v62 }
 0x3e5   : > { %v6299_v52 = vadd.f32 %v3173_v55, %v3085_v27 }
 0x3e6   : > { %v2908_v61 = vpop.f32.mrf.mxu2 }
 0x3e7   : > { %v2909_v38 = vadd.f32 %v2908_v61, %v6091_v26  ;;  %v2997_v2 = vpop.f32.mrf.mxu3 }
 0x3e8   : > { %v3089_v53 = vpop.f32.mrf.mxu0 }
 0x3e9   : > { %v2998_v17 = vadd.f32 %v2997_v2, %v2909_v38 }
 0x3ea   : > { %v3178_v31 = vpop.f32.mrf.mxu1 }
 0x3eb   : > { %v3087_v34 = vadd.f32 %v3086_v48, %v2998_v17  ;;  %3226 = vmatmul.bf16.gmra.mxu2 %v5513_v36  ;;  %3404 = vmatmul.bf16.gmra.mxu0 %v5368_v50 }
 0x3ec   : > { %3315 = vmatmul.bf16.gmra.mxu3 %v6117_v33 }
 0x3ed   : > { %3493 = vmatmul.bf16.gmra.mxu1 %v5534_v15  ;;  %v6306_v63 = vadd.f32 %v3175_v3, %v3087_v34 }
 0x3ee   : > { %v2911_v14 = vpop.f32.mrf.mxu2 }
 0x3ef   : > { %v2912_v28 = vadd.f32 %v2911_v14, %v6096_v47  ;;  %v3000_v32 = vpop.f32.mrf.mxu3 }
 0x3f0   : > { %v3091_v26 = vpop.f32.mrf.mxu0 }
 0x3f1   : > { %v3001_v30 = vadd.f32 %v3000_v32, %v2912_v28 }
 0x3f2   : > { %v3180_v22 = vpop.f32.mrf.mxu1 }
 0x3f3   : > { %v3090_v37 = vadd.f32 %v3089_v53, %v3001_v30 }
 0x3f5   : > { %v6309_v11 = vadd.f32 %v3178_v31, %v3090_v37 }
 0x3f6   : > { %v2913_v56 = vpop.f32.mrf.mxu2 }
 0x3f7   : > { %v2914_v36 = vadd.f32 %v2913_v56, %v6108_v57  ;;  %v3002_v50 = vpop.f32.mrf.mxu3 }
 0x3f8   : > { %v3094_v43 = vpop.f32.mrf.mxu0 }
 0x3f9   : > { %v3003_v33 = vadd.f32 %v3002_v50, %v2914_v36  ;;  %v6757_v36 = vld [vmem:[#allocation47_spill] sm:$0xff] }
 0x3fa   : > { %v3183_v19 = vpop.f32.mrf.mxu1 }
 0x3fb   : > { %v3092_v10 = vadd.f32 %v3091_v26, %v3003_v33  ;;  %3231 = vmatmul.bf16.gmra.mxu2 %v5534_v15  ;;  %3409 = vmatmul.bf16.gmra.mxu0 %v5405_v41 }
 0x3fc   : > { %3320 = vmatmul.bf16.gmra.mxu3 %v6134_v16 }
 0x3fd   : > { %3498 = vmatmul.bf16.gmra.mxu1 %v6708_v46  ;;  %v6316_v47 = vadd.f32 %v3180_v22, %v3092_v10 }
 0x3fe   : > { %v2916_v55 = vpop.f32.mrf.mxu2 }
 0x3ff   : > { %v2917_v7 = vadd.f32 %v2916_v55, %v6113_v0  ;;  %v3005_v59 = vpop.f32.mrf.mxu3 }
 0x400   : > { %v3096_v57 = vpop.f32.mrf.mxu0 }
 0x401   : > { %v3006_v35 = vadd.f32 %v3005_v59, %v2917_v7  ;;  %v6758_v7 = vld [vmem:[#allocation50_spill] sm:$0xff] }
 0x402   : > { %v3185_v5 = vpop.f32.mrf.mxu1 }
 0x403   : > { %v3095_v48 = vadd.f32 %v3094_v43, %v3006_v35 }
 0x405   : > { %v6319_v62 = vadd.f32 %v3183_v19, %v3095_v48  ;;  %v6759_v48 = vld [vmem:[#allocation10_spill] sm:$0xff] }
 0x406   : > { %v2918_v3 = vpop.f32.mrf.mxu2 }
 0x407   : > { %v2919_v15 = vadd.f32 %v2918_v3, %v6125_v58  ;;  %v3007_v41 = vpop.f32.mrf.mxu3  ;;  %v4887_v3 = vld [vmem:[%s5100_s10 + $0x6c] sm:$0xff] }
 0x408   : > { %v3099_v27 = vpop.f32.mrf.mxu0 }
 0x409   : > { %v3008_v16 = vadd.f32 %v3007_v41, %v2919_v15  ;;  %v6760_v15 = vld [vmem:[#allocation32_spill] sm:$0xff] }
 0x40a   : > { %v3188_v61 = vpop.f32.mrf.mxu1 }
 0x40b   : > { %v3097_v38 = vadd.f32 %v3096_v57, %v3008_v16  ;;  %3236 = vmatmul.bf16.gmra.mxu2 %v6708_v46  ;;  %3414 = vmatmul.bf16.gmra.mxu0 %v6709_v24  ;;  %v6761_v16 = vld [vmem:[#allocation48_spill] sm:$0xff] }
 0x40c   : > { %3325 = vmatmul.bf16.gmra.mxu3 %v6151_v42 }
 0x40d   : > { %3503 = vmatmul.bf16.gmra.mxu1 %v6712_v13  ;;  %v6326_v0 = vadd.f32 %v3185_v5, %v3097_v38 }
 0x40e   : > { %v2921_v2 = vpop.f32.mrf.mxu2 }
 0x40f   : > { %v2922_v53 = vadd.f32 %v2921_v2, %v6130_v23  ;;  %v3010_v17 = vpop.f32.mrf.mxu3  ;;  %v6756_v23 = vld [vmem:[#allocation28_spill] sm:$0xff] }
 0x410   : > { %v3101_v58 = vpop.f32.mrf.mxu0 }
 0x411   : > { %v3011_v31 = vadd.f32 %v3010_v17, %v2922_v53 }
 0x412   : > { %v3190_v34 = vpop.f32.mrf.mxu1 }
 0x413   : > { %v3100_v14 = vadd.f32 %v3099_v27, %v3011_v31 }
 0x415   : > { %v6329_v28 = vadd.f32 %v3188_v61, %v3100_v14  ;;  %v6762_v14 = vld [vmem:[#allocation9_spill] sm:$0xff] }
 0x416   : > { %v2923_v32 = vpop.f32.mrf.mxu2 }
 0x417   : > { %v2924_v46 = vadd.f32 %v2923_v32, %v6142_v44  ;;  %v3012_v24 = vpop.f32.mrf.mxu3 }
 0x418   : > { %v3104_v26 = vpop.f32.mrf.mxu0 }
 0x419   : > { %v3013_v42 = vadd.f32 %v3012_v24, %v2924_v46 }
 0x41a   : > { %v3193_v30 = vpop.f32.mrf.mxu1 }
 0x41b   : > { %v3102_v22 = vadd.f32 %v3101_v58, %v3013_v42  ;;  %3241 = vmatmul.bf16.gmra.mxu2 %v6712_v13  ;;  %3419 = vmatmul.bf16.gmra.mxu0 %v6713_v9 }
 0x41c   : > { %3330 = vmatmul.bf16.gmra.mxu3 %v6168_v4 }
 0x41d   : > { %3508 = vmatmul.bf16.gmra.mxu1 %v6756_v23  ;;  %v6336_v37 = vadd.f32 %v3190_v34, %v3102_v22  ;;  %v6763_v22 = vld [vmem:[#allocation12_spill] sm:$0xff] }
 0x41e   : > { %v2926_v56 = vpop.f32.mrf.mxu2 }
 0x41f   : > { %v2927_v50 = vadd.f32 %v2926_v56, %v6757_v36  ;;  %v3015_v44 = vpop.f32.mrf.mxu3  ;;  %v6765_v56 = vld [vmem:[#allocation34_spill] sm:$0xff] }
 0x420   : > { %v3106_v43 = vpop.f32.mrf.mxu0 }
 0x421   : > { %v3016_v33 = vadd.f32 %v3015_v44, %v2927_v50  ;;  %v6766_v44 = vld [vmem:[#allocation19_spill] sm:$0xff] }
 0x422   : > { %v3195_v19 = vpop.f32.mrf.mxu1 }
 0x423   : > { %v3105_v10 = vadd.f32 %v3104_v26, %v3016_v33 }
 0x425   : > { %v6339_v55 = vadd.f32 %v3193_v30, %v3105_v10 }
 0x426   : > { %v2928_v13 = vpop.f32.mrf.mxu2 }
 0x427   : > { %v2929_v9 = vadd.f32 %v2928_v13, %v6758_v7  ;;  %v3017_v59 = vpop.f32.mrf.mxu3 }
 0x428   : > { %v3109_v4 = vpop.f32.mrf.mxu0 }
 0x429   : > { %v3018_v57 = vadd.f32 %v3017_v59, %v2929_v9 }
 0x42a   : > { %v3198_v35 = vpop.f32.mrf.mxu1 }
 0x42b   : > { %v3107_v5 = vadd.f32 %v3106_v43, %v3018_v57  ;;  %3246 = vmatmul.bf16.gmra.mxu2 %v6756_v23  ;;  %3424 = vmatmul.bf16.gmra.mxu0 %v6759_v48  ;;  %v6764_v23 = vld [vmem:[#allocation11_spill] sm:$0xff] }
 0x42c   : > { %3335 = vmatmul.bf16.gmra.mxu3 %v4887_v3 }
 0x42d   : > { %3513 = vmatmul.bf16.gmra.mxu1 %v6760_v15  ;;  %v6346_v41 = vadd.f32 %v3195_v19, %v3107_v5 }
 0x42e   : > { %v2931_v27 = vpop.f32.mrf.mxu2 }
 0x42f   : > { %v2932_v61 = vadd.f32 %v2931_v27, %v6761_v16  ;;  %v3020_v38 = vpop.f32.mrf.mxu3 }
 0x430   : > { %v3111_v2 = vpop.f32.mrf.mxu0 }
 0x431   : > { %v3021_v53 = vadd.f32 %v3020_v38, %v2932_v61  ;;  %v6769_v38 = vld [vmem:[#allocation13_spill] sm:$0xff] }
 0x432   : > { %v3200_v17 = vpop.f32.mrf.mxu1 }
 0x433   : > { %v3110_v58 = vadd.f32 %v3109_v4, %v3021_v53  ;;  %v6767_v4 = vld [vmem:[#allocation51_spill] sm:$0xff]  ;;  %v6770_v53 = vld [vmem:[#allocation37_spill] sm:$0xff] }
 0x435   : > { %v6349_v31 = vadd.f32 %v3198_v35, %v3110_v58  ;;  %v6768_v35 = vld [vmem:[#allocation20_spill] sm:$0xff] }
 0x436   : > { %v2933_v34 = vpop.f32.mrf.mxu2 }
 0x437   : > { %v2934_v32 = vadd.f32 %v2933_v34, %v6762_v14  ;;  %v3022_v46 = vpop.f32.mrf.mxu3  ;;  %v6771_v14 = vld [vmem:[#allocation21_spill] sm:$0xff] }
 0x438   : > { %v3390_v24 = vpop.f32.mrf.mxu0 }
 0x439   : > { %v3023_v26 = vadd.f32 %v3022_v46, %v2934_v32 }
 0x43a   : > { %v3479_v42 = vpop.f32.mrf.mxu1 }
 0x43b   : > { %v3112_v30 = vadd.f32 %v3111_v2, %v3023_v26  ;;  %3251 = vmatmul.bf16.gmra.mxu2 %v6760_v15  ;;  %3429 = vmatmul.bf16.gmra.mxu0 %v6763_v22  ;;  %v4888_v2 = vld [vmem:[%s5100_s10 + $0x84] sm:$0xff] }
 0x43c   : > { %3340 = vmatmul.bf16.gmra.mxu3 %v6764_v23 }
 0x43d   : > { %3518 = vmatmul.bf16.gmra.mxu1 %v6765_v56  ;;  %v6356_v36 = vadd.f32 %v3200_v17, %v3112_v30 }
 0x43e   : > { %v3212_v50 = vpop.f32.mrf.mxu2 }
 0x43f   : > { %v3213_v43 = vadd.f32 %v3212_v50, %v6766_v44  ;;  %v3301_v33 = vpop.f32.mrf.mxu3  ;;  %v6772_v44 = vld [vmem:[#allocation23_spill] sm:$0xff] }
 0x440   : > { %v3392_v19 = vpop.f32.mrf.mxu0 }
 0x441   : > { %v3302_v10 = vadd.f32 %v3301_v33, %v3213_v43 }
 0x442   : > { %v3481_v13 = vpop.f32.mrf.mxu1 }
 0x443   : > { %v3391_v7 = vadd.f32 %v3390_v24, %v3302_v10 }
 0x445   : > { %v3480_v9 = vadd.f32 %v3479_v42, %v3391_v7 }
 0x446   : > { %v3214_v59 = vpop.f32.mrf.mxu2 }
 0x447   : > { %v3659_v57 = vadd.f32 %v6767_v4, %v3480_v9  ;;  %v3215_v5 = vadd.f32 %v3214_v59, %v6768_v35  ;;  %v3303_v48 = vpop.f32.mrf.mxu3  ;;  %v6773_v59 = vld [vmem:[#allocation14_spill] sm:$0xff]  ;;  %v6774_v35 = vld [vmem:[#allocation41_spill] sm:$0xff] }
 0x448   : > { %v3395_v3 = vpop.f32.mrf.mxu0 }
 0x449   : > { %v3691_v15 = vmax.f32 %v3659_v57, 0.0  ;;  %v3304_v27 = vadd.f32 %v3303_v48, %v3215_v5  ;;  %v4889_v57 = vld [vmem:[%s5100_s10 + $0x90] sm:$0xff] }
 0x44a   : > { %v3484_v16 = vpop.f32.mrf.mxu1 }
 0x44b   : > { %4537 = vst [vmem:[%s5914_s23 + $0x10] sm:$0xff] %v3691_v15  ;;  %v3393_v61 = vadd.f32 %v3392_v19, %v3304_v27  ;;  %3256 = vmatmul.bf16.gmra.mxu2 %v6765_v56  ;;  %3434 = vmatmul.bf16.gmra.mxu0 %v6769_v38  ;;  %v6775_v15 = vld [vmem:[#allocation22_spill] sm:$0xff] }
 0x44c   : > { %3345 = vmatmul.bf16.gmra.mxu3 %v4888_v2 }
 0x44d   : > { %3523 = vmatmul.bf16.gmra.mxu1 %v6770_v53  ;;  %v3482_v17 = vadd.f32 %v3481_v13, %v3393_v61 }
 0x44e   : > { %v3217_v58 = vpop.f32.mrf.mxu2 }
 0x44f   : > { %v3660_v34 = vadd.f32 %v6767_v4, %v3482_v17  ;;  %v3218_v32 = vadd.f32 %v3217_v58, %v6771_v14  ;;  %v3306_v46 = vpop.f32.mrf.mxu3 }
 0x450   : > { %v3397_v24 = vpop.f32.mrf.mxu0 }
 0x451   : > { %v3692_v26 = vmax.f32 %v3660_v34, 0.0  ;;  %v3307_v42 = vadd.f32 %v3306_v46, %v3218_v32  ;;  %v6776_v32 = vld [vmem:[#allocation18_spill] sm:$0xff] }
 0x452   : > { %v3486_v30 = vpop.f32.mrf.mxu1 }
 0x453   : > { %4538 = vst [vmem:[%s5914_s23 + $0x18] sm:$0xff] %v3692_v26  ;;  %v3396_v22 = vadd.f32 %v3395_v3, %v3307_v42 }
 0x455   : > { %v3485_v23 = vadd.f32 %v3484_v16, %v3396_v22 }
 0x456   : > { %v3219_v56 = vpop.f32.mrf.mxu2 }
 0x457   : > { %v3661_v50 = vadd.f32 %v6767_v4, %v3485_v23  ;;  %v3220_v43 = vadd.f32 %v3219_v56, %v6772_v44  ;;  %v3308_v33 = vpop.f32.mrf.mxu3  ;;  %v4890_v56 = vld [vmem:[%s5100_s10 + $0x9c] sm:$0xff] }
 0x458   : > { %v3400_v19 = vpop.f32.mrf.mxu0 }
 0x459   : > { %v3693_v10 = vmax.f32 %v3661_v50, 0.0  ;;  %v3309_v13 = vadd.f32 %v3308_v33, %v3220_v43  ;;  %v6777_v50 = vld [vmem:[#allocation45_spill] sm:$0xff] }
 0x45a   : > { %v3489_v7 = vpop.f32.mrf.mxu1 }
 0x45b   : > { %4539 = vst [vmem:[%s5914_s23 + $0x30] sm:$0xff] %v3693_v10  ;;  %v3398_v9 = vadd.f32 %v3397_v24, %v3309_v13  ;;  %3261 = vmatmul.bf16.gmra.mxu2 %v6770_v53  ;;  %3439 = vmatmul.bf16.gmra.mxu0 %v6773_v59 }
 0x45c   : > { %3350 = vmatmul.bf16.gmra.mxu3 %v4889_v57 }
 0x45d   : > { %3528 = vmatmul.bf16.gmra.mxu1 %v6774_v35  ;;  %v3487_v5 = vadd.f32 %v3486_v30, %v3398_v9 }
 0x45e   : > { %v3222_v48 = vpop.f32.mrf.mxu2 }
 0x45f   : > { %v3662_v3 = vadd.f32 %v6767_v4, %v3487_v5  ;;  %v3223_v27 = vadd.f32 %v3222_v48, %v6775_v15  ;;  %v3311_v16 = vpop.f32.mrf.mxu3 }
 0x460   : > { %v3402_v61 = vpop.f32.mrf.mxu0 }
 0x461   : > { %v3694_v38 = vmax.f32 %v3662_v3, 0.0  ;;  %v3312_v2 = vadd.f32 %v3311_v16, %v3223_v27  ;;  %v6779_v3 = vld [vmem:[#allocation8_spill] sm:$0xff] }
 0x462   : > { %v3491_v17 = vpop.f32.mrf.mxu1 }
 0x463   : > { %4540 = vst [vmem:[%s5914_s23 + $0x38] sm:$0xff] %v3694_v38  ;;  %v3401_v53 = vadd.f32 %v3400_v19, %v3312_v2  ;;  %v6778_v19 = vld [vmem:[#allocation25_spill] sm:$0xff] }
 0x465   : > { %v3490_v58 = vadd.f32 %v3489_v7, %v3401_v53  ;;  %v4891_v53 = vld [vmem:[%s5100_s10 + $0xa8] sm:$0xff] }
 0x466   : > { %v3224_v34 = vpop.f32.mrf.mxu2 }
 0x467   : > { %v3663_v14 = vadd.f32 %v6767_v4, %v3490_v58  ;;  %v3225_v46 = vadd.f32 %v3224_v34, %v6776_v32  ;;  %v3313_v24 = vpop.f32.mrf.mxu3  ;;  %v6780_v32 = vld [vmem:[#allocation24_spill] sm:$0xff] }
 0x468   : > { %v3405_v26 = vpop.f32.mrf.mxu0 }
 0x469   : > { %v3695_v42 = vmax.f32 %v3663_v14, 0.0  ;;  %v3314_v30 = vadd.f32 %v3313_v24, %v3225_v46 }
 0x46a   : > { %v3494_v22 = vpop.f32.mrf.mxu1 }
 0x46b   : > { %4541 = vst [vmem:[%s5914_s23 + $0x50] sm:$0xff] %v3695_v42  ;;  %v3403_v23 = vadd.f32 %v3402_v61, %v3314_v30  ;;  %3266 = vmatmul.bf16.gmra.mxu2 %v6774_v35  ;;  %3444 = vmatmul.bf16.gmra.mxu0 %v6742_v12 }
 0x46c   : > { %3355 = vmatmul.bf16.gmra.mxu3 %v4890_v56 }
 0x46d   : > { %3533 = vmatmul.bf16.gmra.mxu1 %v6777_v50  ;;  %v3492_v44 = vadd.f32 %v3491_v17, %v3403_v23 }
 0x46e   : > { %v3227_v43 = vpop.f32.mrf.mxu2 }
 0x46f   : > { %v3664_v33 = vadd.f32 %v6767_v4, %v3492_v44  ;;  %v3228_v10 = vadd.f32 %v3227_v43, %v6778_v19  ;;  %v3316_v13 = vpop.f32.mrf.mxu3 }
 0x470   : > { %v3407_v7 = vpop.f32.mrf.mxu0 }
 0x471   : > { %v3696_v9 = vmax.f32 %v3664_v33, 0.0  ;;  %v3317_v59 = vadd.f32 %v3316_v13, %v3228_v10 }
 0x472   : > { %v3496_v57 = vpop.f32.mrf.mxu1 }
 0x473   : > { %4542 = vst [vmem:[%s5914_s23 + $0x58] sm:$0xff] %v3696_v9  ;;  %v3406_v35 = vadd.f32 %v3405_v26, %v3317_v59  ;;  %v4892_v9 = vld [vmem:[%s5100_s10 + $0xb4] sm:$0xff] }
 0x475   : > { %v3495_v12 = vadd.f32 %v3494_v22, %v3406_v35 }
 0x476   : > { %v3229_v5 = vpop.f32.mrf.mxu2 }
 0x477   : > { %v3665_v48 = vadd.f32 %v6767_v4, %v3495_v12  ;;  %v3230_v15 = vadd.f32 %v3229_v5, %v6779_v3  ;;  %v3318_v27 = vpop.f32.mrf.mxu3 }
 0x478   : > { %v3410_v16 = vpop.f32.mrf.mxu0 }
 0x479   : > { %v3697_v61 = vmax.f32 %v3665_v48, 0.0  ;;  %v3319_v38 = vadd.f32 %v3318_v27, %v3230_v15 }
 0x47a   : > { %v3499_v2 = vpop.f32.mrf.mxu1 }
 0x47b   : > { %4543 = vst [vmem:[%s5914_s23 + $0x70] sm:$0xff] %v3697_v61  ;;  %v3408_v17 = vadd.f32 %v3407_v7, %v3319_v38  ;;  %3271 = vmatmul.bf16.gmra.mxu2 %v6777_v50  ;;  %3449 = vmatmul.bf16.gmra.mxu0 %v6748_v6 }
 0x47c   : > { %3360 = vmatmul.bf16.gmra.mxu3 %v4891_v53 }
 0x47d   : > { %3538 = vmatmul.bf16.gmra.mxu1 %v6751_v21  ;;  %v3497_v58 = vadd.f32 %v3496_v57, %v3408_v17 }
 0x47e   : > { %v3232_v34 = vpop.f32.mrf.mxu2 }
 0x47f   : > { %v3666_v14 = vadd.f32 %v6767_v4, %v3497_v58  ;;  %v3233_v46 = vadd.f32 %v3232_v34, %v6780_v32  ;;  %v3321_v24 = vpop.f32.mrf.mxu3  ;;  %v6781_v34 = vld [vmem:[#allocation26_spill] sm:$0xff] }
 0x480   : > { %v3412_v26 = vpop.f32.mrf.mxu0 }
 0x481   : > { %v3698_v42 = vmax.f32 %v3666_v14, 0.0  ;;  %v3322_v30 = vadd.f32 %v3321_v24, %v3233_v46  ;;  %v6782_v14 = vld [vmem:[#allocation53_spill] sm:$0xff] }
 0x482   : > { %v3501_v22 = vpop.f32.mrf.mxu1  ;;  %v6783_v24 = vld [vmem:[#allocation29_spill] sm:$0xff] }
 0x483   : > { %4544 = vst [vmem:[%s5914_s23 + $0x78] sm:$0xff] %v3698_v42  ;;  %v3411_v23 = vadd.f32 %v3410_v16, %v3322_v30 }
 0x485   : > { %v3500_v6 = vadd.f32 %v3499_v2, %v3411_v23 }
 0x486   : > { %v3234_v56 = vpop.f32.mrf.mxu2 }
 0x487   : > { %v3667_v50 = vadd.f32 %v6767_v4, %v3500_v6  ;;  %v3235_v44 = vadd.f32 %v3234_v56, %v6243_v1  ;;  %v3323_v43 = vpop.f32.mrf.mxu3  ;;  %v6409_v1 = vld [vmem:[%s6528_s2] ss:$0 sm:$0xff] }
 0x488   : > { %v3415_v33 = vpop.f32.mrf.mxu0 }
 0x489   : > { %v3699_v19 = vmax.f32 %v3667_v50, 0.0  ;;  %v3324_v10 = vadd.f32 %v3323_v43, %v3235_v44 }
 0x48a   : > { %v3504_v13 = vpop.f32.mrf.mxu1 }
 0x48b   : > { %4545 = vst [vmem:[%s5914_s23 + $0x90] sm:$0xff] %v3699_v19  ;;  %v3413_v7 = vadd.f32 %v3412_v26, %v3324_v10  ;;  %3276 = vmatmul.bf16.gmra.mxu2 %v6751_v21  ;;  %3454 = vmatmul.bf16.gmra.mxu0 %v6752_v54 }
 0x48c   : > { %3365 = vmatmul.bf16.gmra.mxu3 %v4892_v9  ;;  %v6784_v9 = vld [vmem:[#allocation44_spill] sm:$0xff] }
 0x48d   : > { %3543 = vmatmul.bf16.gmra.mxu1 %v6755_v40  ;;  %v3502_v59 = vadd.f32 %v3501_v22, %v3413_v7 }
 0x48e   : > { %v3237_v4 = vpop.f32.mrf.mxu2 }
 0x48f   : > { %v3668_v57 = vadd.f32 %v6409_v1, %v3502_v59  ;;  %v3238_v35 = vadd.f32 %v3237_v4, %v6246_v25  ;;  %v3326_v12 = vpop.f32.mrf.mxu3  ;;  %v4894_v59 = vld [vmem:[%s5100_s10 + $0xcc] sm:$0xff]  ;;  %s4941_s10 = scalar_lea.hbm %s4940_s9, 512 }
 0x490   : > { %v3417_v21 = vpop.f32.mrf.mxu0  ;;  %v6785_v4 = vld [vmem:[#allocation46_spill] sm:$0xff]  ;;  %p4942_p1 = scmp.ne.s32.totalorder %s4940_s9, %s4941_s10  ;;  %p4947_p6 = scmp.lt.s32.totalorder %s4945_s21, %s4941_s10 }
 0x491   : > { %v3700_v5 = vmax.f32 %v3668_v57, 0.0  ;;  %v3327_v54 = vadd.f32 %v3326_v12, %v3238_v35 }
 0x492   : > { %v3506_v48 = vpop.f32.mrf.mxu1  ;;  %p4943_p2 = pnand %p4942_p1, %p5074_p4  ;;  %p4948_p7 = por %p4947_p6, %p4946_p5 }
 0x493   : > { %4546 = vst [vmem:[%s5914_s23 + $0x98] sm:$0xff] %v3700_v5  ;;  %v3416_v3 = vadd.f32 %v3415_v33, %v3327_v54 }
 0x494   : > { %p4944_p3 = pneg %p4943_p2 }
 0x495   : > { %v3505_v15 = vadd.f32 %v3504_v13, %v3416_v3 }
 0x496   : > { %v3239_v27 = vpop.f32.mrf.mxu2  ;;  %p4949_p9 = pnand %p4948_p7, %p4944_p3 }
 0x497   : > { %v3669_v16 = vadd.f32 %v6409_v1, %v3505_v15  ;;  %v3240_v61 = vadd.f32 %v3239_v27, %v6253_v51  ;;  %v3328_v38 = vpop.f32.mrf.mxu3 }
 0x498   : > { %v3420_v2 = vpop.f32.mrf.mxu0 }
 0x499   : > { %v3701_v17 = vmax.f32 %v3669_v16, 0.0  ;;  %v3329_v53 = vadd.f32 %v3328_v38, %v3240_v61 }
 0x49a   : > { %v3509_v58 = vpop.f32.mrf.mxu1 }
 0x49b   : > { %4547 = vst [vmem:[%s5914_s23 + $0xb0] sm:$0xff] %v3701_v17  ;;  %v3418_v25 = vadd.f32 %v3417_v21, %v3329_v53  ;;  %3281 = vmatmul.bf16.gmra.mxu2 %v6755_v40  ;;  %3459 = vmatmul.bf16.gmra.mxu0 %v5787_v18 }
 0x49c   : > { %3370 = vmatmul.bf16.gmra.mxu3 %v6781_v34 }
 0x49d   : > { %3548 = vmatmul.bf16.gmra.mxu1 %v6782_v14  ;;  %v3507_v32 = vadd.f32 %v3506_v48, %v3418_v25 }
 0x49e   : > { %v3242_v46 = vpop.f32.mrf.mxu2 }
 0x49f   : > { %v3670_v51 = vadd.f32 %v6409_v1, %v3507_v32  ;;  %v3243_v26 = vadd.f32 %v3242_v46, %v6783_v24  ;;  %v3331_v42 = vpop.f32.mrf.mxu3 }
 0x4a0   : > { %v3422_v30 = vpop.f32.mrf.mxu0 }
 0x4a1   : > { %v3702_v22 = vmax.f32 %v3670_v51, 0.0  ;;  %v3332_v23 = vadd.f32 %v3331_v42, %v3243_v26 }
 0x4a2   : > { %v3511_v6 = vpop.f32.mrf.mxu1 }
 0x4a3   : > { %4548 = vst [vmem:[%s5914_s23 + $0xb8] sm:$0xff] %v3702_v22  ;;  %v3421_v40 = vadd.f32 %v3420_v2, %v3332_v23 }
 0x4a5   : > { %v3510_v18 = vadd.f32 %v3509_v58, %v3421_v40 }
 0x4a6   : > { %v3244_v56 = vpop.f32.mrf.mxu2 }
 0x4a7   : > { %v3671_v50 = vadd.f32 %v6409_v1, %v3510_v18  ;;  %v3245_v44 = vadd.f32 %v3244_v56, %v6266_v20  ;;  %v3333_v43 = vpop.f32.mrf.mxu3 }
 0x4a8   : > { %v3425_v33 = vpop.f32.mrf.mxu0 }
 0x4a9   : > { %v3703_v19 = vmax.f32 %v3671_v50, 0.0  ;;  %v3334_v10 = vadd.f32 %v3333_v43, %v3245_v44 }
 0x4aa   : > { %v3514_v13 = vpop.f32.mrf.mxu1 }
 0x4ab   : > { %4549 = vst [vmem:[%s5914_s23 + $0xd0] sm:$0xff] %v3703_v19  ;;  %v3423_v7 = vadd.f32 %v3422_v30, %v3334_v10  ;;  %3286 = vmatmul.bf16.gmra.mxu2 %v6782_v14  ;;  %3464 = vmatmul.bf16.gmra.mxu0 %v6784_v9 }
 0x4ac   : > { %3375 = vmatmul.bf16.gmra.mxu3 %v4894_v59 }
 0x4ad   : > { %3553 = vmatmul.bf16.gmra.mxu1 %v6785_v4  ;;  %v3512_v57 = vadd.f32 %v3511_v6, %v3423_v7 }
 0x4ae   : > { %v3247_v35 = vpop.f32.mrf.mxu2 }
 0x4af   : > { %v3672_v20 = vadd.f32 %v6409_v1, %v3512_v57  ;;  %v3248_v12 = vadd.f32 %v3247_v35, %v6269_v29  ;;  %v3336_v21 = vpop.f32.mrf.mxu3 }
 0x4b0   : > { %v3427_v5 = vpop.f32.mrf.mxu0 }
 0x4b1   : > { %v3704_v54 = vmax.f32 %v3672_v20, 0.0  ;;  %v3337_v48 = vadd.f32 %v3336_v21, %v3248_v12 }
 0x4b2   : > { %v3516_v3 = vpop.f32.mrf.mxu1 }
 0x4b3   : > { %4550 = vst [vmem:[%s5914_s23 + $0xd8] sm:$0xff] %v3704_v54  ;;  %v3426_v15 = vadd.f32 %v3425_v33, %v3337_v48 }
 0x4b5   : > { %v3515_v27 = vadd.f32 %v3514_v13, %v3426_v15 }
 0x4b6   : > { %v3249_v16 = vpop.f32.mrf.mxu2 }
 0x4b7   : > { %v3673_v61 = vadd.f32 %v6409_v1, %v3515_v27  ;;  %v3250_v38 = vadd.f32 %v3249_v16, %v6276_v39  ;;  %v3338_v2 = vpop.f32.mrf.mxu3 }
 0x4b8   : > { %v3430_v17 = vpop.f32.mrf.mxu0 }
 0x4b9   : > { %v3705_v53 = vmax.f32 %v3673_v61, 0.0  ;;  %v3339_v58 = vadd.f32 %v3338_v2, %v3250_v38 }
 0x4ba   : > { %v3519_v29 = vpop.f32.mrf.mxu1 }
 0x4bb   : > { %4551 = vst [vmem:[%s5914_s23 + $0xf0] sm:$0xff] %v3705_v53  ;;  %v3428_v25 = vadd.f32 %v3427_v5, %v3339_v58 }
 0x4bd   : > { %v3517_v34 = vadd.f32 %v3516_v3, %v3428_v25 }
 0x4be   : > { %v3252_v14 = vpop.f32.mrf.mxu2 }
 0x4bf   : > { %v3674_v32 = vadd.f32 %v6409_v1, %v3517_v34  ;;  %v3253_v46 = vadd.f32 %v3252_v14, %v6279_v60  ;;  %v3341_v51 = vpop.f32.mrf.mxu3 }
 0x4c0   : > { %v3432_v24 = vpop.f32.mrf.mxu0 }
 0x4c1   : > { %v3706_v26 = vmax.f32 %v3674_v32, 0.0  ;;  %v3342_v42 = vadd.f32 %v3341_v51, %v3253_v46 }
 0x4c2   : > { %v3521_v39 = vpop.f32.mrf.mxu1 }
 0x4c3   : > { %4552 = vst [vmem:[%s5914_s23 + $0xf8] sm:$0xff] %v3706_v26  ;;  %v3431_v30 = vadd.f32 %v3430_v17, %v3342_v42 }
 0x4c5   : > { %v3520_v22 = vadd.f32 %v3519_v29, %v3431_v30 }
 0x4c6   : > { %v3254_v23 = vpop.f32.mrf.mxu2 }
 0x4c7   : > { %v3675_v6 = vadd.f32 %v6409_v1, %v3520_v22  ;;  %v3255_v40 = vadd.f32 %v3254_v23, %v6286_v8  ;;  %v3343_v18 = vpop.f32.mrf.mxu3 }
 0x4c8   : > { %v3435_v56 = vpop.f32.mrf.mxu0 }
 0x4c9   : > { %v3707_v50 = vmax.f32 %v3675_v6, 0.0  ;;  %v3344_v44 = vadd.f32 %v3343_v18, %v3255_v40 }
 0x4ca   : > { %v3524_v60 = vpop.f32.mrf.mxu1 }
 0x4cb   : > { %4553 = vst [vmem:[%s5914_s23 + $0x110] sm:$0xff] %v3707_v50  ;;  %v3433_v43 = vadd.f32 %v3432_v24, %v3344_v44 }
 0x4cd   : > { %v3522_v33 = vadd.f32 %v3521_v39, %v3433_v43 }
 0x4ce   : > { %v3257_v19 = vpop.f32.mrf.mxu2 }
 0x4cf   : > { %v3676_v10 = vadd.f32 %v6409_v1, %v3522_v33  ;;  %v3258_v13 = vadd.f32 %v3257_v19, %v6289_v45  ;;  %v3346_v7 = vpop.f32.mrf.mxu3 }
 0x4d0   : > { %v3437_v9 = vpop.f32.mrf.mxu0 }
 0x4d1   : > { %v3708_v59 = vmax.f32 %v3676_v10, 0.0  ;;  %v3347_v4 = vadd.f32 %v3346_v7, %v3258_v13 }
 0x4d2   : > { %v3526_v8 = vpop.f32.mrf.mxu1 }
 0x4d3   : > { %4554 = vst [vmem:[%s5914_s23 + $0x118] sm:$0xff] %v3708_v59  ;;  %v3436_v57 = vadd.f32 %v3435_v56, %v3347_v4 }
 0x4d5   : > { %v3525_v35 = vadd.f32 %v3524_v60, %v3436_v57 }
 0x4d6   : > { %v3259_v20 = vpop.f32.mrf.mxu2 }
 0x4d7   : > { %v3677_v12 = vadd.f32 %v6409_v1, %v3525_v35  ;;  %v3260_v21 = vadd.f32 %v3259_v20, %v6296_v49  ;;  %v3348_v5 = vpop.f32.mrf.mxu3 }
 0x4d8   : > { %v3440_v54 = vpop.f32.mrf.mxu0 }
 0x4d9   : > { %v3709_v48 = vmax.f32 %v3677_v12, 0.0  ;;  %v3349_v3 = vadd.f32 %v3348_v5, %v3260_v21 }
 0x4da   : > { %v3529_v45 = vpop.f32.mrf.mxu1 }
 0x4db   : > { %4555 = vst [vmem:[%s5914_s23 + $0x130] sm:$0xff] %v3709_v48  ;;  %v3438_v15 = vadd.f32 %v3437_v9, %v3349_v3 }
 0x4dd   : > { %v3527_v27 = vadd.f32 %v3526_v8, %v3438_v15 }
 0x4de   : > { %v3262_v16 = vpop.f32.mrf.mxu2 }
 0x4df   : > { %v3678_v61 = vadd.f32 %v6409_v1, %v3527_v27  ;;  %v3263_v38 = vadd.f32 %v3262_v16, %v6299_v52  ;;  %v3351_v2 = vpop.f32.mrf.mxu3 }
 0x4e0   : > { %v3442_v17 = vpop.f32.mrf.mxu0 }
 0x4e1   : > { %v3710_v53 = vmax.f32 %v3678_v61, 0.0  ;;  %v3352_v58 = vadd.f32 %v3351_v2, %v3263_v38 }
 0x4e2   : > { %v3531_v49 = vpop.f32.mrf.mxu1 }
 0x4e3   : > { %4556 = vst [vmem:[%s5914_s23 + $0x138] sm:$0xff] %v3710_v53  ;;  %v3441_v29 = vadd.f32 %v3440_v54, %v3352_v58 }
 0x4e5   : > { %v3530_v25 = vadd.f32 %v3529_v45, %v3441_v29 }
 0x4e6   : > { %v3264_v34 = vpop.f32.mrf.mxu2 }
 0x4e7   : > { %v3679_v14 = vadd.f32 %v6409_v1, %v3530_v25  ;;  %v3265_v32 = vadd.f32 %v3264_v34, %v6306_v63  ;;  %v3353_v46 = vpop.f32.mrf.mxu3 }
 0x4e8   : > { %v3445_v51 = vpop.f32.mrf.mxu0 }
 0x4e9   : > { %v3711_v24 = vmax.f32 %v3679_v14, 0.0  ;;  %v3354_v26 = vadd.f32 %v3353_v46, %v3265_v32 }
 0x4ea   : > { %v3534_v52 = vpop.f32.mrf.mxu1 }
 0x4eb   : > { %4557 = vst [vmem:[%s5914_s23 + $0x150] sm:$0xff] %v3711_v24  ;;  %v3443_v42 = vadd.f32 %v3442_v17, %v3354_v26 }
 0x4ed   : > { %v3532_v39 = vadd.f32 %v3531_v49, %v3443_v42 }
 0x4ee   : > { %v3267_v30 = vpop.f32.mrf.mxu2 }
 0x4ef   : > { %v3680_v22 = vadd.f32 %v6409_v1, %v3532_v39  ;;  %v3268_v23 = vadd.f32 %v3267_v30, %v6309_v11  ;;  %v3356_v6 = vpop.f32.mrf.mxu3 }
 0x4f0   : > { %v3447_v40 = vpop.f32.mrf.mxu0 }
 0x4f1   : > { %v3712_v18 = vmax.f32 %v3680_v22, 0.0  ;;  %v3357_v56 = vadd.f32 %v3356_v6, %v3268_v23 }
 0x4f2   : > { %v3536_v63 = vpop.f32.mrf.mxu1 }
 0x4f3   : > { %4558 = vst [vmem:[%s5914_s23 + $0x158] sm:$0xff] %v3712_v18  ;;  %v3446_v50 = vadd.f32 %v3445_v51, %v3357_v56 }
 0x4f5   : > { %v3535_v44 = vadd.f32 %v3534_v52, %v3446_v50 }
 0x4f6   : > { %v3269_v60 = vpop.f32.mrf.mxu2 }
 0x4f7   : > { %v3681_v43 = vadd.f32 %v6409_v1, %v3535_v44  ;;  %v3270_v33 = vadd.f32 %v3269_v60, %v6316_v47  ;;  %v3358_v19 = vpop.f32.mrf.mxu3 }
 0x4f8   : > { %v3450_v10 = vpop.f32.mrf.mxu0 }
 0x4f9   : > { %v3713_v13 = vmax.f32 %v3681_v43, 0.0  ;;  %v3359_v7 = vadd.f32 %v3358_v19, %v3270_v33 }
 0x4fa   : > { %v3539_v11 = vpop.f32.mrf.mxu1 }
 0x4fb   : > { %4559 = vst [vmem:[%s5914_s23 + $0x170] sm:$0xff] %v3713_v13  ;;  %v3448_v9 = vadd.f32 %v3447_v40, %v3359_v7 }
 0x4fd   : > { %v3537_v59 = vadd.f32 %v3536_v63, %v3448_v9 }
 0x4fe   : > { %v3272_v4 = vpop.f32.mrf.mxu2 }
 0x4ff   : > { %v3682_v8 = vadd.f32 %v6409_v1, %v3537_v59  ;;  %v3273_v57 = vadd.f32 %v3272_v4, %v6319_v62  ;;  %v3361_v35 = vpop.f32.mrf.mxu3 }
 0x500   : > { %v3452_v20 = vpop.f32.mrf.mxu0 }
 0x501   : > { %v3714_v12 = vmax.f32 %v3682_v8, 0.0  ;;  %v3362_v21 = vadd.f32 %v3361_v35, %v3273_v57 }
 0x502   : > { %v3541_v47 = vpop.f32.mrf.mxu1 }
 0x503   : > { %4560 = vst [vmem:[%s5914_s23 + $0x178] sm:$0xff] %v3714_v12  ;;  %v3451_v5 = vadd.f32 %v3450_v10, %v3362_v21 }
 0x505   : > { %v3540_v54 = vadd.f32 %v3539_v11, %v3451_v5 }
 0x506   : > { %v3274_v48 = vpop.f32.mrf.mxu2 }
 0x507   : > { %v3683_v3 = vadd.f32 %v6409_v1, %v3540_v54  ;;  %v3275_v45 = vadd.f32 %v3274_v48, %v6326_v0  ;;  %v3363_v15 = vpop.f32.mrf.mxu3 }
 0x508   : > { %v3455_v27 = vpop.f32.mrf.mxu0 }
 0x509   : > { %v3715_v16 = vmax.f32 %v3683_v3, 0.0  ;;  %v3364_v61 = vadd.f32 %v3363_v15, %v3275_v45 }
 0x50a   : > { %v3544_v62 = vpop.f32.mrf.mxu1 }
 0x50b   : > { %4561 = vst [vmem:[%s5914_s23 + $0x190] sm:$0xff] %v3715_v16  ;;  %v3453_v38 = vadd.f32 %v3452_v20, %v3364_v61 }
 0x50d   : > { %v3542_v2 = vadd.f32 %v3541_v47, %v3453_v38 }
 0x50e   : > { %v3277_v17 = vpop.f32.mrf.mxu2 }
 0x50f   : > { %v3684_v53 = vadd.f32 %v6409_v1, %v3542_v2  ;;  %v3278_v58 = vadd.f32 %v3277_v17, %v6329_v28  ;;  %v3366_v49 = vpop.f32.mrf.mxu3 }
 0x510   : > { %v3457_v34 = vpop.f32.mrf.mxu0 }
 0x511   : > { %v3716_v29 = vmax.f32 %v3684_v53, 0.0  ;;  %v3367_v25 = vadd.f32 %v3366_v49, %v3278_v58 }
 0x512   : > { %v3546_v14 = vpop.f32.mrf.mxu1 }
 0x513   : > { %4562 = vst [vmem:[%s5914_s23 + $0x198] sm:$0xff] %v3716_v29  ;;  %v3456_v0 = vadd.f32 %v3455_v27, %v3367_v25 }
 0x515   : > { %v3545_v32 = vadd.f32 %v3544_v62, %v3456_v0 }
 0x516   : > { %v3279_v46 = vpop.f32.mrf.mxu2 }
 0x517   : > { %v3685_v51 = vadd.f32 %v6409_v1, %v3545_v32  ;;  %v3280_v24 = vadd.f32 %v3279_v46, %v6336_v37  ;;  %v3368_v26 = vpop.f32.mrf.mxu3 }
 0x518   : > { %v3460_v28 = vpop.f32.mrf.mxu0 }
 0x519   : > { %v3717_v52 = vmax.f32 %v3685_v51, 0.0  ;;  %v3369_v42 = vadd.f32 %v3368_v26, %v3280_v24 }
 0x51a   : > { %v3549_v22 = vpop.f32.mrf.mxu1 }
 0x51b   : > { %4563 = vst [vmem:[%s5914_s23 + $0x1b0] sm:$0xff] %v3717_v52  ;;  %v3458_v39 = vadd.f32 %v3457_v34, %v3369_v42 }
 0x51d   : > { %v3547_v30 = vadd.f32 %v3546_v14, %v3458_v39 }
 0x51e   : > { %v3282_v23 = vpop.f32.mrf.mxu2 }
 0x51f   : > { %v3686_v6 = vadd.f32 %v6409_v1, %v3547_v30  ;;  %v3283_v40 = vadd.f32 %v3282_v23, %v6339_v55  ;;  %v3371_v18 = vpop.f32.mrf.mxu3 }
 0x520   : > { %v3462_v44 = vpop.f32.mrf.mxu0 }
 0x521   : > { %v3718_v56 = vmax.f32 %v3686_v6, 0.0  ;;  %v3372_v63 = vadd.f32 %v3371_v18, %v3283_v40 }
 0x522   : > { %v3551_v10 = vpop.f32.mrf.mxu1 }
 0x523   : > { %4564 = vst [vmem:[%s5914_s23 + $0x1b8] sm:$0xff] %v3718_v56  ;;  %v3461_v50 = vadd.f32 %v3460_v28, %v3372_v63 }
 0x525   : > { %v3550_v37 = vadd.f32 %v3549_v22, %v3461_v50 }
 0x526   : > { %v3284_v60 = vpop.f32.mrf.mxu2 }
 0x527   : > { %v3687_v43 = vadd.f32 %v6409_v1, %v3550_v37  ;;  %v3285_v33 = vadd.f32 %v3284_v60, %v6346_v41  ;;  %v3373_v19 = vpop.f32.mrf.mxu3 }
 0x528   : > { %v3465_v57 = vpop.f32.mrf.mxu0 }
 0x529   : > { %v3719_v13 = vmax.f32 %v3687_v43, 0.0  ;;  %v3374_v7 = vadd.f32 %v3373_v19, %v3285_v33 }
 0x52a   : > { %v3554_v41 = vpop.f32.mrf.mxu1 }
 0x52b   : > { %4565 = vst [vmem:[%s5914_s23 + $0x1d0] sm:$0xff] %v3719_v13  ;;  %v3463_v11 = vadd.f32 %v3462_v44, %v3374_v7 }
 0x52d   : > { %v3552_v55 = vadd.f32 %v3551_v10, %v3463_v11 }
 0x52e   : > { %v3287_v9 = vpop.f32.mrf.mxu2 }
 0x52f   : > { %v3688_v59 = vadd.f32 %v6409_v1, %v3552_v55  ;;  %v3288_v4 = vadd.f32 %v3287_v9, %v6349_v31  ;;  %v3376_v8 = vpop.f32.mrf.mxu3 }
 0x530   : > { %v3467_v45 = vpop.f32.mrf.mxu0 }
 0x531   : > { %v3720_v35 = vmax.f32 %v3688_v59, 0.0  ;;  %v3377_v20 = vadd.f32 %v3376_v8, %v3288_v4 }
 0x532   : > { %v3556_v27 = vpop.f32.mrf.mxu1 }
 0x533   : > { %4566 = vst [vmem:[%s5914_s23 + $0x1d8] sm:$0xff] %v3720_v35  ;;  %v3466_v12 = vadd.f32 %v3465_v57, %v3377_v20 }
 0x535   : > { %v3555_v21 = vadd.f32 %v3554_v41, %v3466_v12 }
 0x536   : > { %v3289_v47 = vpop.f32.mrf.mxu2 }
 0x537   : > { %v3689_v5 = vadd.f32 %v6409_v1, %v3555_v21  ;;  %v3290_v54 = vadd.f32 %v3289_v47, %v6356_v36  ;;  %v3378_v48 = vpop.f32.mrf.mxu3 }
 0x539   : > { %v3721_v31 = vmax.f32 %v3689_v5, 0.0  ;;  %v3379_v3 = vadd.f32 %v3378_v48, %v3290_v54 }
 0x53b   : > { %4567 = vst [vmem:[%s5914_s23 + $0x1f0] sm:$0xff] %v3721_v31  ;;  %v3468_v15 = vadd.f32 %v3467_v45, %v3379_v3 }
 0x53d   : > { %v3557_v16 = vadd.f32 %v3556_v27, %v3468_v15 }
 0x53f   : > { %v3690_v36 = vadd.f32 %v6409_v1, %v3557_v16 }
 0x541   : > { %v3722_v61 = vmax.f32 %v3690_v36, 0.0 }
 0x543   : > { %4568 = vst [vmem:[%s5914_s23 + $0x1f8] sm:$0xff] %v3722_v61 }
 0x544   : > { %4952 = shalt.err (!%p4949_p9)
}
 0x545   : > { %s5012_s11 = smov 128   ;;  %s5013_s23 = smov 8  }
 0x546   : > { %4758 = dma.vmem_to_hbm [thread:$0]  (%p5074_p4), %s3773_s7, 8192, %s3775_s8, %s3757_s15, %s5012_s11, %s5012_s11, %s5013_s23  }
 0x547 PF: > { %p4770_p10 = scmp.ge.s32.totalorder %s5007_s17, 2  ;;  %s3789_s28 = sand.u32 1, %s4987_s12  }
 0x548   : > { %s3790_s29 = scalar_lea.sflag [#allocation4], %s3789_s28 }
 0x549   : > { %p4765_p11 = pnand %p4770_p10, %p5081_p8 }
 0x54b   : > { %p4766_p12 = pneg %p4765_p11 }
 0x54d   : > { %4982 = dma.done.wait (%p4766_p12), %s3790_s29, 8192  }
 0x54e   : > { %4984 = vsyncadd (%p4766_p12), %s3790_s29, 4294959104  ;;  %s17_s17 = sadd.s32 1, %s5007_s17   ;;  %s6786_s12 = smov %s4991_s13 }
 0x54f   : > { %p14_p13 = scmp.ge.s32.totalorder %s17_s17, 4   ;;  %s6787_s13 = smov %s4995_s14 }
 0x550   : > { %s6788_s14 = smov %s5087_s25  ;;  %s6789_s15 = smov %s5003_s16 }
 0x551   : > { %s6790_s16 = smov %s6792_s20  ;;  %16 = sbr.rel (!%p14_p13) target bundleno = 5 (0x5), region = 74 }
 0x556   :  { %3796 = vsyncpa [#allocation3], 1 }
 0x557   :  { %3798 = vsyncpa [#allocation3 + $0x1], 1 }
 0x558   :  { %3799 = vsyncpa [#allocation4], 1 }
 0x559   :  { %3801 = vsyncpa [#allocation4 + $0x1], 1 }

</bundles_post_ra>
